<compile_context>
chip_gen: v6e
topology: v6e:2x2x1
jax: 0.10.0
libtpu: 0.0.40
codegen_flags: <defaults>
</compile_context>

<pallas_src>
import numpy as np

import jax
import jax.numpy as jnp
from jax import lax
from jax.experimental import pallas as pl
from jax.experimental.pallas import tpu as pltpu

EPS = 1e-5                      # nn.BatchNorm2d default eps
VMEM_LIMIT = 32 * 1024 * 1024   # explicit scoped-VMEM limit (safe on v5e/v6e/v7x)


# ------------------------------ Pallas kernels ------------------------------


def _conv1x1_stats_kernel(x_ref, w_ref, o_ref, sum_ref, sq_ref):
    """1x1 conv == matmul over flattened N*H*W rows (bf16 MXU, f32 accumulate);
    also emits per-block BN partial stats in f32."""
    y = jnp.dot(x_ref[...], w_ref[...], preferred_element_type=jnp.float32)
    o_ref[...] = y.astype(o_ref.dtype)                          # bf16 intermediate
    c = y.shape[-1]
    sum_ref[...] = jnp.sum(y, axis=0).reshape(1, 1, c)
    sq_ref[...] = jnp.sum(y * y, axis=0).reshape(1, 1, c)


def _bn_relu_conv1x1_stats_kernel(pre_ref, scale_ref, shift_ref, w_ref,
                                  o_ref, sum_ref, sq_ref):
    """Fused BN-affine + ReLU (f32 math) + 1x1 conv (bf16 MXU) + BN partial stats."""
    a = jnp.maximum(pre_ref[...].astype(jnp.float32) * scale_ref[...]
                    + shift_ref[...], 0.0)
    y = jnp.dot(a.astype(jnp.bfloat16), w_ref[...],
                preferred_element_type=jnp.float32)
    o_ref[...] = y.astype(o_ref.dtype)
    c = y.shape[-1]
    sum_ref[...] = jnp.sum(y, axis=0).reshape(1, 1, c)
    sq_ref[...] = jnp.sum(y * y, axis=0).reshape(1, 1, c)


def _bn_relu_conv3x3_stats_kernel(strip_ref, top_ref, bot_ref, scale_ref,
                                  shift_ref, w_ref, o_ref, sum_ref, sq_ref,
                                  pad_ref):
    """Fused BN1-affine + ReLU + 3x3 stride-1 'same' conv over one row strip.

    The post-ReLU strip (plus a one-row top/bottom halo fetched via clamped
    index_maps and masked to zero at the image boundary) is written into a
    padded VMEM scratch at a tile-aligned sublane offset (8).  Only the halo
    columns are re-zeroed each step; everything else that is read gets fully
    overwritten.  The three kw-shifted views are built once and reused across
    the three kh taps; taps run as bf16 MXU matmuls into a single f32 chain.
    """
    RH, W, C = strip_ref.shape
    CO = o_ref.shape[-1]
    r = pl.program_id(1)
    last = pl.num_programs(1) - 1

    # Halo columns: only cols 7 and 8+W are ever read as zero, but aligned
    # 8-wide chunks are cheaper to store than 1-wide masked columns.
    zcol = jnp.zeros((RH + 2, 8, C), jnp.float32)
    pad_ref[:, 0:8, :] = zcol
    pad_ref[:, 8 + W:, :] = zcol

    def bn_relu(v):                                    # BN1 affine + ReLU in f32
        return jnp.maximum(v.astype(jnp.float32) * scale_ref[...] + shift_ref[...],
                           0.0)

    # Interior strip rows, written at sublane offset 8.
    pad_ref[1:1 + RH, 8:8 + W, :] = bn_relu(strip_ref[...])
    # Top / bottom halo rows (zero when this strip touches the image edge).
    top_mask = jnp.where(r > 0, 1.0, 0.0)
    bot_mask = jnp.where(r < last, 1.0, 0.0)
    pad_ref[0:1, 8:8 + W, :] = bn_relu(top_ref[...]) * top_mask
    pad_ref[RH + 1:RH + 2, 8:8 + W, :] = bn_relu(bot_ref[...]) * bot_mask

    # 3x3 conv: 3 kw-shifted views (sublane slices, built once) reused across the
    # 3 kh offsets (outer-dim slices, cheap); bf16 operands, f32 accumulation.
    ap = pad_ref[...]                                            # (RH+2, W+16, C)
    cols = [ap[:, 7 + kw:7 + kw + W, :].astype(jnp.bfloat16) for kw in range(3)]
    acc = jnp.zeros((RH * W, CO), jnp.float32)
    for kh in range(3):
        for kw in range(3):
            patch = cols[kw][kh:kh + RH].reshape(RH * W, C)
            acc = acc + jnp.dot(patch, w_ref[kh, kw],
                                preferred_element_type=jnp.float32)
    o_ref[...] = acc.reshape(RH, W, CO).astype(o_ref.dtype)      # bf16 intermediate
    sum_ref[...] = jnp.sum(acc, axis=0).reshape(1, 1, 1, CO)
    sq_ref[...] = jnp.sum(acc * acc, axis=0).reshape(1, 1, 1, CO)


def _bn_add_relu_kernel(pre_ref, res_ref, scale_ref, shift_ref, o_ref):
    """Final BN3-affine + identity residual add + ReLU (flattened rows, f32 math)."""
    o_ref[...] = jnp.maximum(
        pre_ref[...].astype(jnp.float32) * scale_ref[...] + shift_ref[...]
        + res_ref[...].astype(jnp.float32), 0.0)


# --------------------------------- wrapper -----------------------------------


def _pick_row_tile(m, row_bytes, budget=8 << 20):
    """Largest power-of-two row tile dividing m that leaves >=2 grid steps and keeps
    the double-buffered blocked operands inside a conservative cross-generation VMEM
    budget (v7x: 64 MiB physical / 32 MiB default scoped; v5e scoped default 16 MiB)."""
    for t in (4096, 2048, 1024, 512, 256, 128, 64, 32, 16):
        if m % t == 0 and m // t >= 2 and 2 * t * row_bytes <= budget:
            return t
    return m


def _pick_row_strip(h):
    """Rows per stage-2 strip: 8-16 rows, keeping >=2 strips per image when possible."""
    for rh in (16, 8):
        if h % rh == 0 and h // rh >= 2:
            return rh
    return h


def _finalize_bn(ssum, ssq, count, gamma, beta):
    """Fold per-block (sum, sum-sq) f32 partials into BN scale/shift (training stats).
    E[x^2]-E[x]^2 in f32 is adequate for near-zero-mean conv outputs; clamp var>=0."""
    c = ssum.shape[-1]
    mean = jnp.sum(ssum.reshape(-1, c), axis=0) / count
    var = jnp.maximum(jnp.sum(ssq.reshape(-1, c), axis=0) / count - mean * mean, 0.0)
    scale = gamma / jnp.sqrt(var + EPS)
    shift = beta - mean * scale
    return scale.reshape(1, -1), shift.reshape(1, -1)


def init_params(key, inplanes, planes):
    """Deterministic conv weights (bias=False like the module), BN gamma=1 / beta=0."""
    k1, k2, k3 = jax.random.split(key, 3)

    def kaiming(k, shape, fan_in):
        return jax.random.normal(k, shape, jnp.float32) * (2.0 / fan_in) ** 0.5

    return {
        "w1": kaiming(k1, (inplanes, planes), inplanes),          # conv1 1x1: (Cin, planes)
        "w2": kaiming(k2, (3, 3, planes, planes), 9 * planes),    # conv2 3x3: HWIO
        "w3": kaiming(k3, (planes, 4 * planes), planes),          # conv3 1x1: (planes, 4p)
        "gamma1": jnp.ones((planes,), jnp.float32),
        "beta1": jnp.zeros((planes,), jnp.float32),
        "gamma2": jnp.ones((planes,), jnp.float32),
        "beta2": jnp.zeros((planes,), jnp.float32),
        "gamma3": jnp.ones((4 * planes,), jnp.float32),
        "beta3": jnp.zeros((4 * planes,), jnp.float32),
    }


def bottleneck_forward(x_nchw, params):
    # TODO(synk): stride>1, dilation>1 and a learned `downsample` branch are not
    # implemented; this covers the module defaults (stride=1, dilation=1, identity skip).
    x = jnp.transpose(x_nchw, (0, 2, 3, 1)).astype(jnp.bfloat16)   # NCHW -> NHWC, bf16
    N, H, W, Cin = x.shape
    C1 = params["w1"].shape[1]        # planes
    C3 = params["w3"].shape[1]        # 4 * planes
    assert Cin == C3, "identity residual requires inplanes == 4*planes"
    M = N * H * W

    # bf16 weights for the MXU (cast once).
    w1 = params["w1"].astype(jnp.bfloat16)
    w2 = params["w2"].astype(jnp.bfloat16)
    w3 = params["w3"].astype(jnp.bfloat16)

    # Channel-aware row tile for the flattened (M, C) stages.
    row_bytes = max((Cin + C1) * 2, (C1 + C3) * 2, C3 * 8)
    TM = _pick_row_tile(M, row_bytes)
    G = M // TM
    RH = _pick_row_strip(H)
    NR = H // RH

    x2d = x.reshape(M, Cin)
    par1 = pltpu.CompilerParams(dimension_semantics=("parallel",),
                                vmem_limit_bytes=VMEM_LIMIT)
    par2 = pltpu.CompilerParams(dimension_semantics=("parallel", "parallel"),
                                vmem_limit_bytes=VMEM_LIMIT)

    stats_shape = lambda g, c: jax.ShapeDtypeStruct((g, 1, c), jnp.float32)
    stats_spec = lambda c: pl.BlockSpec((1, 1, c), lambda i: (i, 0, 0))
    bcast1 = lambda c: pl.BlockSpec((1, c), lambda i: (0, 0))
    bcast2 = lambda c: pl.BlockSpec((1, c), lambda n, r: (0, 0))

    # ---- stage 1: conv1 (1x1, bf16 MXU) + BN1 partial stats ----
    pre1, s1, q1 = pl.pallas_call(
        _conv1x1_stats_kernel,
        out_shape=(jax.ShapeDtypeStruct((M, C1), jnp.bfloat16),
                   stats_shape(G, C1), stats_shape(G, C1)),
        grid_spec=pltpu.PrefetchScalarGridSpec(
            num_scalar_prefetch=0, grid=(G,),
            in_specs=[pl.BlockSpec((TM, Cin), lambda i: (i, 0)),
                      pl.BlockSpec((Cin, C1), lambda i: (0, 0))],
            out_specs=[pl.BlockSpec((TM, C1), lambda i: (i, 0)),
                       stats_spec(C1), stats_spec(C1)]),
        compiler_params=par1,
    )(x2d, w1)
    scale1, shift1 = _finalize_bn(s1, q1, M, params["gamma1"], params["beta1"])

    # ---- stage 2: BN1 + ReLU + conv2 (3x3 'same', row strips) + BN2 partial stats ----
    pre1_4d = pre1.reshape(N, H, W, C1)
    pre2, s2, q2 = pl.pallas_call(
        _bn_relu_conv3x3_stats_kernel,
        out_shape=(jax.ShapeDtypeStruct((N, H, W, C1), jnp.bfloat16),
                   jax.ShapeDtypeStruct((N, NR, 1, C1), jnp.float32),
                   jax.ShapeDtypeStruct((N, NR, 1, C1), jnp.float32)),
        grid_spec=pltpu.PrefetchScalarGridSpec(
            num_scalar_prefetch=0, grid=(N, NR),
            in_specs=[
                # strip rows [r*RH, r*RH+RH)
                pl.BlockSpec((None, RH, W, C1), lambda n, r: (n, r, 0, 0)),
                # one-row top / bottom halos, index clamped at the image boundary
                # (masked to zero in-kernel when the strip touches the edge)
                pl.BlockSpec((None, 1, W, C1),
                             lambda n, r: (n, jnp.maximum(r * RH - 1, 0), 0, 0)),
                pl.BlockSpec((None, 1, W, C1),
                             lambda n, r: (n, jnp.minimum(r * RH + RH, H - 1), 0, 0)),
                bcast2(C1), bcast2(C1),
                pl.BlockSpec((3, 3, C1, C1), lambda n, r: (0, 0, 0, 0)),
            ],
            out_specs=[pl.BlockSpec((None, RH, W, C1), lambda n, r: (n, r, 0, 0)),
                       pl.BlockSpec((1, 1, 1, C1), lambda n, r: (n, r, 0, 0)),
                       pl.BlockSpec((1, 1, 1, C1), lambda n, r: (n, r, 0, 0))],
            scratch_shapes=[pltpu.VMEM((RH + 2, W + 16, C1), jnp.float32)]),
        compiler_params=par2,
    )(pre1_4d, pre1_4d, pre1_4d, scale1, shift1, w2)
    scale2, shift2 = _finalize_bn(s2, q2, M, params["gamma2"], params["beta2"])

    # ---- stage 3: BN2 + ReLU + conv3 (1x1, bf16 MXU) + BN3 partial stats ----
    pre3, s3, q3 = pl.pallas_call(
        _bn_relu_conv1x1_stats_kernel,
        out_shape=(jax.ShapeDtypeStruct((M, C3), jnp.bfloat16),
                   stats_shape(G, C3), stats_shape(G, C3)),
        grid_spec=pltpu.PrefetchScalarGridSpec(
            num_scalar_prefetch=0, grid=(G,),
            in_specs=[pl.BlockSpec((TM, C1), lambda i: (i, 0)),
                      bcast1(C1), bcast1(C1),
                      pl.BlockSpec((C1, C3), lambda i: (0, 0))],
            out_specs=[pl.BlockSpec((TM, C3), lambda i: (i, 0)),
                       stats_spec(C3), stats_spec(C3)]),
        compiler_params=par1,
    )(pre2.reshape(M, C1), scale2, shift2, w3)
    scale3, shift3 = _finalize_bn(s3, q3, M, params["gamma3"], params["beta3"])

    # ---- stage 4: BN3 + identity residual + ReLU (f32 output = module dtype) ----
    out2d = pl.pallas_call(
        _bn_add_relu_kernel,
        out_shape=jax.ShapeDtypeStruct((M, C3), jnp.float32),
        grid_spec=pltpu.PrefetchScalarGridSpec(
            num_scalar_prefetch=0, grid=(G,),
            in_specs=[pl.BlockSpec((TM, C3), lambda i: (i, 0)),
                      pl.BlockSpec((TM, C3), lambda i: (i, 0)),
                      bcast1(C3), bcast1(C3)],
            out_specs=pl.BlockSpec((TM, C3), lambda i: (i, 0))),
        compiler_params=par1,
    )(pre3, x2d, scale3, shift3)

    return jnp.transpose(out2d.reshape(N, H, W, C3), (0, 3, 1, 2))   # NHWC -> NCHW


# ----------------------------- pure-JAX reference -----------------------------


def bottleneck_reference(x_nchw, params):
    x = jnp.transpose(x_nchw, (0, 2, 3, 1)).astype(jnp.float32)

    def bn(y, g, b):
        mean = jnp.mean(y, axis=(0, 1, 2))
        var = jnp.mean(jnp.square(y - mean), axis=(0, 1, 2))  # biased, PyTorch train mode
        return (y - mean) / jnp.sqrt(var + EPS) * g + b

    pre1 = jnp.einsum("nhwc,cd->nhwd", x, params["w1"],
                      precision=lax.Precision.HIGHEST)
    out1 = jnp.maximum(bn(pre1, params["gamma1"], params["beta1"]), 0.0)
    pre2 = lax.conv_general_dilated(
        out1, params["w2"], (1, 1), ((1, 1), (1, 1)),
        dimension_numbers=("NHWC", "HWIO", "NHWC"),
        precision=lax.Precision.HIGHEST)
    out2 = jnp.maximum(bn(pre2, params["gamma2"], params["beta2"]), 0.0)
    pre3 = jnp.einsum("nhwc,cd->nhwd", out2, params["w3"],
                      precision=lax.Precision.HIGHEST)
    out3 = bn(pre3, params["gamma3"], params["beta3"])
    return jnp.transpose(jnp.maximum(out3 + x, 0.0), (0, 3, 1, 2))


# ----------------------------------- main -------------------------------------


if __name__ == "__main__":
    key = jax.random.PRNGKey(0)
    kx, kp = jax.random.split(key)

    planes = 4
    inplanes = 4 * planes            # identity residual path (downsample=None)
    N, H, W = 2, 16, 16
    x = jax.random.normal(kx, (N, inplanes, H, W), jnp.float32)   # NCHW like PyTorch
    params = init_params(kp, inplanes, planes)

    out = jax.block_until_ready(jax.jit(bottleneck_forward)(x, params))
    ref = jax.block_until_ready(bottleneck_reference(x, params))

    out_np, ref_np = np.asarray(out), np.asarray(ref)
    # bf16 matmul operands + bf16 inter-stage activations vs an f32 HIGHEST reference:
    # loose element-wise tolerance plus a tight aggregate (relative Frobenius) check.
    np.testing.assert_allclose(out_np, ref_np, rtol=5e-2, atol=1e-1)
    rel_err = np.linalg.norm(out_np - ref_np) / np.linalg.norm(ref_np)
    assert rel_err < 3e-2, f"relative error too large: {rel_err}"
    assert out.shape == (N, 4 * planes, H, W) and out.dtype == jnp.float32

    print("KERNEL_OK")
</pallas_src>

<mosaic_0001>
module attributes {stable_mosaic.version = 11 : i64} {
  func.func @_conv1x1_stats_kernel(%arg0: i32, %arg1: memref<256x16xbf16, #tpu.memory_space<vmem>>, %arg2: memref<16x4xbf16, #tpu.memory_space<vmem>>, %arg3: memref<256x4xbf16, #tpu.memory_space<vmem>>, %arg4: memref<1x1x4xf32, #tpu.memory_space<vmem>>, %arg5: memref<1x1x4xf32, #tpu.memory_space<vmem>>) attributes {dimension_semantics = [#tpu.dimension_semantics<parallel>], iteration_bounds = array<i64: 2>, scalar_prefetch = 0 : i64, scratch_operands = 0 : i64, tpu.core_type = #tpu.core_type<tc>, window_params = [{transform_indices = @transform_0, window_bounds = array<i64: 256, 16>}, {pipeline_mode = #tpu.pipeline_mode<synchronous>, transform_indices = @transform_1, window_bounds = array<i64: 16, 4>}, {transform_indices = @transform_2, window_bounds = array<i64: 256, 4>}, {transform_indices = @transform_3, window_bounds = array<i64: 1, 1, 4>}, {transform_indices = @transform_4, window_bounds = array<i64: 1, 1, 4>}]} {
    %c0 = arith.constant 0 : index
    %c0_0 = arith.constant 0 : index
    %0 = vector.load %arg1[%c0, %c0_0] : memref<256x16xbf16, #tpu.memory_space<vmem>>, vector<256x16xbf16>
    %c0_1 = arith.constant 0 : index
    %c0_2 = arith.constant 0 : index
    %1 = vector.load %arg2[%c0_1, %c0_2] : memref<16x4xbf16, #tpu.memory_space<vmem>>, vector<16x4xbf16>
    %cst = arith.constant dense<0.000000e+00> : vector<256x4xf32>
    %2 = tpu.matmul %0, %1, %cst {dimension_numbers = #tpu.dot_dimension_numbers<[1], [0], [0], [1], [0, 0, 1, 1], [], []>} : vector<256x16xbf16>, vector<16x4xbf16>, vector<256x4xf32> -> vector<256x4xf32>
    %3 = arith.truncf %2 : vector<256x4xf32> to vector<256x4xbf16>
    %c0_3 = arith.constant 0 : index
    %c0_4 = arith.constant 0 : index
    %4 = vector.load %arg3[%c0_3, %c0_4] : memref<256x4xbf16, #tpu.memory_space<vmem>>, vector<256x4xbf16>
    tpu.vector_store %arg3[%c0_3, %c0_4], %3 {strides = array<i32>} : memref<256x4xbf16, #tpu.memory_space<vmem>>, vector<256x4xbf16>,
    %cst_5 = arith.constant dense<0.000000e+00> : vector<4xf32>
    %5 = vector.multi_reduction <add>, %2, %cst_5 [0] : vector<256x4xf32> to vector<4xf32>
    %6 = vector.shape_cast %5 : vector<4xf32> to vector<1x1x4xf32>
    %c0_6 = arith.constant 0 : index
    %c0_7 = arith.constant 0 : index
    %c0_8 = arith.constant 0 : index
    %7 = vector.load %arg4[%c0_6, %c0_7, %c0_8] : memref<1x1x4xf32, #tpu.memory_space<vmem>>, vector<1x1x4xf32>
    tpu.vector_store %arg4[%c0_6, %c0_7, %c0_8], %6 {strides = array<i32>} : memref<1x1x4xf32, #tpu.memory_space<vmem>>, vector<1x1x4xf32>,
    %8 = arith.mulf %2, %2 : vector<256x4xf32>
    %cst_9 = arith.constant dense<0.000000e+00> : vector<4xf32>
    %9 = vector.multi_reduction <add>, %8, %cst_9 [0] : vector<256x4xf32> to vector<4xf32>
    %10 = vector.shape_cast %9 : vector<4xf32> to vector<1x1x4xf32>
    %c0_10 = arith.constant 0 : index
    %c0_11 = arith.constant 0 : index
    %c0_12 = arith.constant 0 : index
    %11 = vector.load %arg5[%c0_10, %c0_11, %c0_12] : memref<1x1x4xf32, #tpu.memory_space<vmem>>, vector<1x1x4xf32>
    tpu.vector_store %arg5[%c0_10, %c0_11, %c0_12], %10 {strides = array<i32>} : memref<1x1x4xf32, #tpu.memory_space<vmem>>, vector<1x1x4xf32>,
    return
  }
  func.func @transform_0(%arg0: i32) -> (i32, i32) {
    %c0_i32 = arith.constant 0 : i32
    %c0_i32_0 = arith.constant 0 : i32
    return %arg0, %c0_i32 : i32, i32
  }
  func.func @transform_1(%arg0: i32) -> (i32, i32) {
    %c0_i32 = arith.constant 0 : i32
    %c0_i32_0 = arith.constant 0 : i32
    %c0_i32_1 = arith.constant 0 : i32
    return %c0_i32, %c0_i32_0 : i32, i32
  }
  func.func @transform_2(%arg0: i32) -> (i32, i32) {
    %c0_i32 = arith.constant 0 : i32
    %c0_i32_0 = arith.constant 0 : i32
    return %arg0, %c0_i32 : i32, i32
  }
  func.func @transform_3(%arg0: i32) -> (i32, i32, i32) {
    %c0_i32 = arith.constant 0 : i32
    %c0_i32_0 = arith.constant 0 : i32
    %c0_i32_1 = arith.constant 0 : i32
    return %arg0, %c0_i32, %c0_i32_0 : i32, i32, i32
  }
  func.func @transform_4(%arg0: i32) -> (i32, i32, i32) {
    %c0_i32 = arith.constant 0 : i32
    %c0_i32_0 = arith.constant 0 : i32
    %c0_i32_1 = arith.constant 0 : i32
    return %arg0, %c0_i32, %c0_i32_0 : i32, i32, i32
  }
}

module attributes {stable_mosaic.version = 11 : i64} {
  func.func @_bn_relu_conv3x3_stats_kernel(%arg0: i32, %arg1: i32, %arg2: memref<1x8x16x4xbf16, #tpu.memory_space<vmem>>, %arg3: memref<1x1x16x4xbf16, #tpu.memory_space<vmem>>, %arg4: memref<1x1x16x4xbf16, #tpu.memory_space<vmem>>, %arg5: memref<1x4xf32, #tpu.memory_space<vmem>>, %arg6: memref<1x4xf32, #tpu.memory_space<vmem>>, %arg7: memref<3x3x4x4xbf16, #tpu.memory_space<vmem>>, %arg8: memref<1x8x16x4xbf16, #tpu.memory_space<vmem>>, %arg9: memref<1x1x1x4xf32, #tpu.memory_space<vmem>>, %arg10: memref<1x1x1x4xf32, #tpu.memory_space<vmem>>, %arg11: memref<10x32x4xf32, #tpu.memory_space<vmem>>) attributes {dimension_semantics = [#tpu.dimension_semantics<parallel>, #tpu.dimension_semantics<parallel>], iteration_bounds = array<i64: 2, 2>, scalar_prefetch = 0 : i64, scratch_operands = 1 : i64, tpu.core_type = #tpu.core_type<tc>, window_params = [{transform_indices = @transform_0, window_bounds = array<i64: 1, 8, 16, 4>}, {transform_indices = @transform_1, window_bounds = array<i64: 1, 1, 16, 4>}, {transform_indices = @transform_2, window_bounds = array<i64: 1, 1, 16, 4>}, {pipeline_mode = #tpu.pipeline_mode<synchronous>, transform_indices = @transform_3, window_bounds = array<i64: 1, 4>}, {pipeline_mode = #tpu.pipeline_mode<synchronous>, transform_indices = @transform_4, window_bounds = array<i64: 1, 4>}, {pipeline_mode = #tpu.pipeline_mode<synchronous>, transform_indices = @transform_5, window_bounds = array<i64: 3, 3, 4, 4>}, {transform_indices = @transform_6, window_bounds = array<i64: 1, 8, 16, 4>}, {transform_indices = @transform_7, window_bounds = array<i64: 1, 1, 1, 4>}, {transform_indices = @transform_8, window_bounds = array<i64: 1, 1, 1, 4>}]} {
    %cst = arith.constant 0.000000e+00 : f32
    %0 = vector.broadcast %cst : f32 to vector<10x8x4xf32>
    %c0 = arith.constant 0 : index
    %c0_0 = arith.constant 0 : index
    %c0_1 = arith.constant 0 : index
    %1 = vector.load %arg11[%c0, %c0_0, %c0_1] : memref<10x32x4xf32, #tpu.memory_space<vmem>>, vector<10x8x4xf32>
    tpu.vector_store %arg11[%c0, %c0_0, %c0_1], %0 {strides = array<i32>} : memref<10x32x4xf32, #tpu.memory_space<vmem>>, vector<10x8x4xf32>,
    %c0_2 = arith.constant 0 : index
    %c24 = arith.constant 24 : index
    %c0_3 = arith.constant 0 : index
    %2 = vector.load %arg11[%c0_2, %c24, %c0_3] : memref<10x32x4xf32, #tpu.memory_space<vmem>>, vector<10x8x4xf32>
    tpu.vector_store %arg11[%c0_2, %c24, %c0_3], %0 {strides = array<i32>} : memref<10x32x4xf32, #tpu.memory_space<vmem>>, vector<10x8x4xf32>,
    %c0_4 = arith.constant 0 : index
    %c0_5 = arith.constant 0 : index
    %c0_6 = arith.constant 0 : index
    %c0_7 = arith.constant 0 : index
    %3 = vector.load %arg2[%c0_4, %c0_5, %c0_6, %c0_7] : memref<1x8x16x4xbf16, #tpu.memory_space<vmem>>, vector<1x8x16x4xbf16>
    %4 = vector.shape_cast %3 : vector<1x8x16x4xbf16> to vector<8x16x4xbf16>
    %5 = arith.extf %4 : vector<8x16x4xbf16> to vector<8x16x4xf32>
    %c0_8 = arith.constant 0 : index
    %c0_9 = arith.constant 0 : index
    %6 = vector.load %arg5[%c0_8, %c0_9] : memref<1x4xf32, #tpu.memory_space<vmem>>, vector<1x4xf32>
    %7 = vector.shape_cast %6 : vector<1x4xf32> to vector<1x1x4xf32>
    %8 = vector.broadcast %7 : vector<1x1x4xf32> to vector<8x16x4xf32>
    %9 = arith.mulf %5, %8 : vector<8x16x4xf32>
    %c0_10 = arith.constant 0 : index
    %c0_11 = arith.constant 0 : index
    %10 = vector.load %arg6[%c0_10, %c0_11] : memref<1x4xf32, #tpu.memory_space<vmem>>, vector<1x4xf32>
    %11 = vector.shape_cast %10 : vector<1x4xf32> to vector<1x1x4xf32>
    %12 = vector.broadcast %11 : vector<1x1x4xf32> to vector<8x16x4xf32>
    %13 = arith.addf %9, %12 : vector<8x16x4xf32>
    %cst_12 = arith.constant 0.000000e+00 : f32
    %14 = vector.broadcast %cst_12 : f32 to vector<8x16x4xf32>
    %15 = arith.maximumf %13, %14 : vector<8x16x4xf32>
    %c1 = arith.constant 1 : index
    %c8 = arith.constant 8 : index
    %c0_13 = arith.constant 0 : index
    %16 = vector.load %arg11[%c1, %c8, %c0_13] : memref<10x32x4xf32, #tpu.memory_space<vmem>>, vector<8x16x4xf32>
    tpu.vector_store %arg11[%c1, %c8, %c0_13], %15 {strides = array<i32>} : memref<10x32x4xf32, #tpu.memory_space<vmem>>, vector<8x16x4xf32>,
    %c0_i32 = arith.constant 0 : i32
    %17 = arith.cmpi sgt, %arg1, %c0_i32 : i32
    %cst_14 = arith.constant 1.000000e+00 : f32
    %cst_15 = arith.constant 0.000000e+00 : f32
    %18 = arith.select %17, %cst_14, %cst_15 : f32
    %c1_i32 = arith.constant 1 : i32
    %19 = arith.cmpi slt, %arg1, %c1_i32 : i32
    %cst_16 = arith.constant 1.000000e+00 : f32
    %cst_17 = arith.constant 0.000000e+00 : f32
    %20 = arith.select %19, %cst_16, %cst_17 : f32
    %c0_18 = arith.constant 0 : index
    %c0_19 = arith.constant 0 : index
    %c0_20 = arith.constant 0 : index
    %c0_21 = arith.constant 0 : index
    %21 = vector.load %arg3[%c0_18, %c0_19, %c0_20, %c0_21] : memref<1x1x16x4xbf16, #tpu.memory_space<vmem>>, vector<1x1x16x4xbf16>
    %22 = vector.shape_cast %21 : vector<1x1x16x4xbf16> to vector<1x16x4xbf16>
    %23 = arith.extf %22 : vector<1x16x4xbf16> to vector<1x16x4xf32>
    %c0_22 = arith.constant 0 : index
    %c0_23 = arith.constant 0 : index
    %24 = vector.load %arg5[%c0_22, %c0_23] : memref<1x4xf32, #tpu.memory_space<vmem>>, vector<1x4xf32>
    %25 = vector.shape_cast %24 : vector<1x4xf32> to vector<1x1x4xf32>
    %26 = vector.broadcast %25 : vector<1x1x4xf32> to vector<1x16x4xf32>
    %27 = arith.mulf %23, %26 : vector<1x16x4xf32>
    %c0_24 = arith.constant 0 : index
    %c0_25 = arith.constant 0 : index
    %28 = vector.load %arg6[%c0_24, %c0_25] : memref<1x4xf32, #tpu.memory_space<vmem>>, vector<1x4xf32>
    %29 = vector.shape_cast %28 : vector<1x4xf32> to vector<1x1x4xf32>
    %30 = vector.broadcast %29 : vector<1x1x4xf32> to vector<1x16x4xf32>
    %31 = arith.addf %27, %30 : vector<1x16x4xf32>
    %cst_26 = arith.constant 0.000000e+00 : f32
    %32 = vector.broadcast %cst_26 : f32 to vector<1x16x4xf32>
    %33 = arith.maximumf %31, %32 : vector<1x16x4xf32>
    %34 = vector.broadcast %18 : f32 to vector<1x16x4xf32>
    %35 = arith.mulf %33, %34 : vector<1x16x4xf32>
    %c0_27 = arith.constant 0 : index
    %c8_28 = arith.constant 8 : index
    %c0_29 = arith.constant 0 : index
    %36 = vector.load %arg11[%c0_27, %c8_28, %c0_29] : memref<10x32x4xf32, #tpu.memory_space<vmem>>, vector<1x16x4xf32>
    tpu.vector_store %arg11[%c0_27, %c8_28, %c0_29], %35 {strides = array<i32>} : memref<10x32x4xf32, #tpu.memory_space<vmem>>, vector<1x16x4xf32>,
    %c0_30 = arith.constant 0 : index
    %c0_31 = arith.constant 0 : index
    %c0_32 = arith.constant 0 : index
    %c0_33 = arith.constant 0 : index
    %37 = vector.load %arg4[%c0_30, %c0_31, %c0_32, %c0_33] : memref<1x1x16x4xbf16, #tpu.memory_space<vmem>>, vector<1x1x16x4xbf16>
    %38 = vector.shape_cast %37 : vector<1x1x16x4xbf16> to vector<1x16x4xbf16>
    %39 = arith.extf %38 : vector<1x16x4xbf16> to vector<1x16x4xf32>
    %c0_34 = arith.constant 0 : index
    %c0_35 = arith.constant 0 : index
    %40 = vector.load %arg5[%c0_34, %c0_35] : memref<1x4xf32, #tpu.memory_space<vmem>>, vector<1x4xf32>
    %41 = vector.shape_cast %40 : vector<1x4xf32> to vector<1x1x4xf32>
    %42 = vector.broadcast %41 : vector<1x1x4xf32> to vector<1x16x4xf32>
    %43 = arith.mulf %39, %42 : vector<1x16x4xf32>
    %c0_36 = arith.constant 0 : index
    %c0_37 = arith.constant 0 : index
    %44 = vector.load %arg6[%c0_36, %c0_37] : memref<1x4xf32, #tpu.memory_space<vmem>>, vector<1x4xf32>
    %45 = vector.shape_cast %44 : vector<1x4xf32> to vector<1x1x4xf32>
    %46 = vector.broadcast %45 : vector<1x1x4xf32> to vector<1x16x4xf32>
    %47 = arith.addf %43, %46 : vector<1x16x4xf32>
    %cst_38 = arith.constant 0.000000e+00 : f32
    %48 = vector.broadcast %cst_38 : f32 to vector<1x16x4xf32>
    %49 = arith.maximumf %47, %48 : vector<1x16x4xf32>
    %50 = vector.broadcast %20 : f32 to vector<1x16x4xf32>
    %51 = arith.mulf %49, %50 : vector<1x16x4xf32>
    %c9 = arith.constant 9 : index
    %c8_39 = arith.constant 8 : index
    %c0_40 = arith.constant 0 : index
    %52 = vector.load %arg11[%c9, %c8_39, %c0_40] : memref<10x32x4xf32, #tpu.memory_space<vmem>>, vector<1x16x4xf32>
    tpu.vector_store %arg11[%c9, %c8_39, %c0_40], %51 {strides = array<i32>} : memref<10x32x4xf32, #tpu.memory_space<vmem>>, vector<1x16x4xf32>,
    %c0_41 = arith.constant 0 : index
    %c0_42 = arith.constant 0 : index
    %c0_43 = arith.constant 0 : index
    %53 = vector.load %arg11[%c0_41, %c0_42, %c0_43] : memref<10x32x4xf32, #tpu.memory_space<vmem>>, vector<10x32x4xf32>
    %54 = vector.extract_strided_slice %53 {offsets = [0, 7, 0], sizes = [10, 16, 4], strides = [1, 1, 1]} : vector<10x32x4xf32> to vector<10x16x4xf32>
    %55 = arith.truncf %54 : vector<10x16x4xf32> to vector<10x16x4xbf16>
    %56 = vector.extract_strided_slice %53 {offsets = [0, 8, 0], sizes = [10, 16, 4], strides = [1, 1, 1]} : vector<10x32x4xf32> to vector<10x16x4xf32>
    %57 = arith.truncf %56 : vector<10x16x4xf32> to vector<10x16x4xbf16>
    %58 = vector.extract_strided_slice %53 {offsets = [0, 9, 0], sizes = [10, 16, 4], strides = [1, 1, 1]} : vector<10x32x4xf32> to vector<10x16x4xf32>
    %59 = arith.truncf %58 : vector<10x16x4xf32> to vector<10x16x4xbf16>
    %cst_44 = arith.constant 0.000000e+00 : f32
    %60 = vector.broadcast %cst_44 : f32 to vector<128x4xf32>
    %61 = vector.extract_strided_slice %55 {offsets = [0, 0, 0], sizes = [8, 16, 4], strides = [1, 1, 1]} : vector<10x16x4xbf16> to vector<8x16x4xbf16>
    %62 = vector.shape_cast %61 : vector<8x16x4xbf16> to vector<128x4xbf16>
    %c0_45 = arith.constant 0 : index
    %c0_46 = arith.constant 0 : index
    %c0_47 = arith.constant 0 : index
    %c0_48 = arith.constant 0 : index
    %63 = vector.load %arg7[%c0_45, %c0_46, %c0_47, %c0_48] : memref<3x3x4x4xbf16, #tpu.memory_space<vmem>>, vector<1x1x4x4xbf16>
    %64 = vector.shape_cast %63 : vector<1x1x4x4xbf16> to vector<4x4xbf16>
    %cst_49 = arith.constant dense<0.000000e+00> : vector<128x4xf32>
    %65 = tpu.matmul %62, %64, %cst_49 {dimension_numbers = #tpu.dot_dimension_numbers<[1], [0], [0], [1], [0, 0, 1, 1], [], []>} : vector<128x4xbf16>, vector<4x4xbf16>, vector<128x4xf32> -> vector<128x4xf32>
    %66 = arith.addf %60, %65 : vector<128x4xf32>
    %67 = vector.extract_strided_slice %57 {offsets = [0, 0, 0], sizes = [8, 16, 4], strides = [1, 1, 1]} : vector<10x16x4xbf16> to vector<8x16x4xbf16>
    %68 = vector.shape_cast %67 : vector<8x16x4xbf16> to vector<128x4xbf16>
    %c0_50 = arith.constant 0 : index
    %c1_51 = arith.constant 1 : index
    %c0_52 = arith.constant 0 : index
    %c0_53 = arith.constant 0 : index
    %69 = vector.load %arg7[%c0_50, %c1_51, %c0_52, %c0_53] : memref<3x3x4x4xbf16, #tpu.memory_space<vmem>>, vector<1x1x4x4xbf16>
    %70 = vector.shape_cast %69 : vector<1x1x4x4xbf16> to vector<4x4xbf16>
    %cst_54 = arith.constant dense<0.000000e+00> : vector<128x4xf32>
    %71 = tpu.matmul %68, %70, %cst_54 {dimension_numbers = #tpu.dot_dimension_numbers<[1], [0], [0], [1], [0, 0, 1, 1], [], []>} : vector<128x4xbf16>, vector<4x4xbf16>, vector<128x4xf32> -> vector<128x4xf32>
    %72 = arith.addf %66, %71 : vector<128x4xf32>
    %73 = vector.extract_strided_slice %59 {offsets = [0, 0, 0], sizes = [8, 16, 4], strides = [1, 1, 1]} : vector<10x16x4xbf16> to vector<8x16x4xbf16>
    %74 = vector.shape_cast %73 : vector<8x16x4xbf16> to vector<128x4xbf16>
    %c0_55 = arith.constant 0 : index
    %c2 = arith.constant 2 : index
    %c0_56 = arith.constant 0 : index
    %c0_57 = arith.constant 0 : index
    %75 = vector.load %arg7[%c0_55, %c2, %c0_56, %c0_57] : memref<3x3x4x4xbf16, #tpu.memory_space<vmem>>, vector<1x1x4x4xbf16>
    %76 = vector.shape_cast %75 : vector<1x1x4x4xbf16> to vector<4x4xbf16>
    %cst_58 = arith.constant dense<0.000000e+00> : vector<128x4xf32>
    %77 = tpu.matmul %74, %76, %cst_58 {dimension_numbers = #tpu.dot_dimension_numbers<[1], [0], [0], [1], [0, 0, 1, 1], [], []>} : vector<128x4xbf16>, vector<4x4xbf16>, vector<128x4xf32> -> vector<128x4xf32>
    %78 = arith.addf %72, %77 : vector<128x4xf32>
    %79 = vector.extract_strided_slice %55 {offsets = [1, 0, 0], sizes = [8, 16, 4], strides = [1, 1, 1]} : vector<10x16x4xbf16> to vector<8x16x4xbf16>
    %80 = vector.shape_cast %79 : vector<8x16x4xbf16> to vector<128x4xbf16>
    %c1_59 = arith.constant 1 : index
    %c0_60 = arith.constant 0 : index
    %c0_61 = arith.constant 0 : index
    %c0_62 = arith.constant 0 : index
    %81 = vector.load %arg7[%c1_59, %c0_60, %c0_61, %c0_62] : memref<3x3x4x4xbf16, #tpu.memory_space<vmem>>, vector<1x1x4x4xbf16>
    %82 = vector.shape_cast %81 : vector<1x1x4x4xbf16> to vector<4x4xbf16>
    %cst_63 = arith.constant dense<0.000000e+00> : vector<128x4xf32>
    %83 = tpu.matmul %80, %82, %cst_63 {dimension_numbers = #tpu.dot_dimension_numbers<[1], [0], [0], [1], [0, 0, 1, 1], [], []>} : vector<128x4xbf16>, vector<4x4xbf16>, vector<128x4xf32> -> vector<128x4xf32>
    %84 = arith.addf %78, %83 : vector<128x4xf32>
    %85 = vector.extract_strided_slice %57 {offsets = [1, 0, 0], sizes = [8, 16, 4], strides = [1, 1, 1]} : vector<10x16x4xbf16> to vector<8x16x4xbf16>
    %86 = vector.shape_cast %85 : vector<8x16x4xbf16> to vector<128x4xbf16>
    %c1_64 = arith.constant 1 : index
    %c1_65 = arith.constant 1 : index
    %c0_66 = arith.constant 0 : index
    %c0_67 = arith.constant 0 : index
    %87 = vector.load %arg7[%c1_64, %c1_65, %c0_66, %c0_67] : memref<3x3x4x4xbf16, #tpu.memory_space<vmem>>, vector<1x1x4x4xbf16>
    %88 = vector.shape_cast %87 : vector<1x1x4x4xbf16> to vector<4x4xbf16>
    %cst_68 = arith.constant dense<0.000000e+00> : vector<128x4xf32>
    %89 = tpu.matmul %86, %88, %cst_68 {dimension_numbers = #tpu.dot_dimension_numbers<[1], [0], [0], [1], [0, 0, 1, 1], [], []>} : vector<128x4xbf16>, vector<4x4xbf16>, vector<128x4xf32> -> vector<128x4xf32>
    %90 = arith.addf %84, %89 : vector<128x4xf32>
    %91 = vector.extract_strided_slice %59 {offsets = [1, 0, 0], sizes = [8, 16, 4], strides = [1, 1, 1]} : vector<10x16x4xbf16> to vector<8x16x4xbf16>
    %92 = vector.shape_cast %91 : vector<8x16x4xbf16> to vector<128x4xbf16>
    %c1_69 = arith.constant 1 : index
    %c2_70 = arith.constant 2 : index
    %c0_71 = arith.constant 0 : index
    %c0_72 = arith.constant 0 : index
    %93 = vector.load %arg7[%c1_69, %c2_70, %c0_71, %c0_72] : memref<3x3x4x4xbf16, #tpu.memory_space<vmem>>, vector<1x1x4x4xbf16>
    %94 = vector.shape_cast %93 : vector<1x1x4x4xbf16> to vector<4x4xbf16>
    %cst_73 = arith.constant dense<0.000000e+00> : vector<128x4xf32>
    %95 = tpu.matmul %92, %94, %cst_73 {dimension_numbers = #tpu.dot_dimension_numbers<[1], [0], [0], [1], [0, 0, 1, 1], [], []>} : vector<128x4xbf16>, vector<4x4xbf16>, vector<128x4xf32> -> vector<128x4xf32>
    %96 = arith.addf %90, %95 : vector<128x4xf32>
    %97 = vector.extract_strided_slice %55 {offsets = [2, 0, 0], sizes = [8, 16, 4], strides = [1, 1, 1]} : vector<10x16x4xbf16> to vector<8x16x4xbf16>
    %98 = vector.shape_cast %97 : vector<8x16x4xbf16> to vector<128x4xbf16>
    %c2_74 = arith.constant 2 : index
    %c0_75 = arith.constant 0 : index
    %c0_76 = arith.constant 0 : index
    %c0_77 = arith.constant 0 : index
    %99 = vector.load %arg7[%c2_74, %c0_75, %c0_76, %c0_77] : memref<3x3x4x4xbf16, #tpu.memory_space<vmem>>, vector<1x1x4x4xbf16>
    %100 = vector.shape_cast %99 : vector<1x1x4x4xbf16> to vector<4x4xbf16>
    %cst_78 = arith.constant dense<0.000000e+00> : vector<128x4xf32>
    %101 = tpu.matmul %98, %100, %cst_78 {dimension_numbers = #tpu.dot_dimension_numbers<[1], [0], [0], [1], [0, 0, 1, 1], [], []>} : vector<128x4xbf16>, vector<4x4xbf16>, vector<128x4xf32> -> vector<128x4xf32>
    %102 = arith.addf %96, %101 : vector<128x4xf32>
    %103 = vector.extract_strided_slice %57 {offsets = [2, 0, 0], sizes = [8, 16, 4], strides = [1, 1, 1]} : vector<10x16x4xbf16> to vector<8x16x4xbf16>
    %104 = vector.shape_cast %103 : vector<8x16x4xbf16> to vector<128x4xbf16>
    %c2_79 = arith.constant 2 : index
    %c1_80 = arith.constant 1 : index
    %c0_81 = arith.constant 0 : index
    %c0_82 = arith.constant 0 : index
    %105 = vector.load %arg7[%c2_79, %c1_80, %c0_81, %c0_82] : memref<3x3x4x4xbf16, #tpu.memory_space<vmem>>, vector<1x1x4x4xbf16>
    %106 = vector.shape_cast %105 : vector<1x1x4x4xbf16> to vector<4x4xbf16>
    %cst_83 = arith.constant dense<0.000000e+00> : vector<128x4xf32>
    %107 = tpu.matmul %104, %106, %cst_83 {dimension_numbers = #tpu.dot_dimension_numbers<[1], [0], [0], [1], [0, 0, 1, 1], [], []>} : vector<128x4xbf16>, vector<4x4xbf16>, vector<128x4xf32> -> vector<128x4xf32>
    %108 = arith.addf %102, %107 : vector<128x4xf32>
    %109 = vector.extract_strided_slice %59 {offsets = [2, 0, 0], sizes = [8, 16, 4], strides = [1, 1, 1]} : vector<10x16x4xbf16> to vector<8x16x4xbf16>
    %110 = vector.shape_cast %109 : vector<8x16x4xbf16> to vector<128x4xbf16>
    %c2_84 = arith.constant 2 : index
    %c2_85 = arith.constant 2 : index
    %c0_86 = arith.constant 0 : index
    %c0_87 = arith.constant 0 : index
    %111 = vector.load %arg7[%c2_84, %c2_85, %c0_86, %c0_87] : memref<3x3x4x4xbf16, #tpu.memory_space<vmem>>, vector<1x1x4x4xbf16>
    %112 = vector.shape_cast %111 : vector<1x1x4x4xbf16> to vector<4x4xbf16>
    %cst_88 = arith.constant dense<0.000000e+00> : vector<128x4xf32>
    %113 = tpu.matmul %110, %112, %cst_88 {dimension_numbers = #tpu.dot_dimension_numbers<[1], [0], [0], [1], [0, 0, 1, 1], [], []>} : vector<128x4xbf16>, vector<4x4xbf16>, vector<128x4xf32> -> vector<128x4xf32>
    %114 = arith.addf %108, %113 : vector<128x4xf32>
    %115 = vector.shape_cast %114 : vector<128x4xf32> to vector<8x16x4xf32>
    %116 = arith.truncf %115 : vector<8x16x4xf32> to vector<8x16x4xbf16>
    %c0_89 = arith.constant 0 : index
    %c0_90 = arith.constant 0 : index
    %c0_91 = arith.constant 0 : index
    %c0_92 = arith.constant 0 : index
    %117 = vector.load %arg8[%c0_89, %c0_90, %c0_91, %c0_92] : memref<1x8x16x4xbf16, #tpu.memory_space<vmem>>, vector<1x8x16x4xbf16>
    %118 = vector.shape_cast %117 : vector<1x8x16x4xbf16> to vector<8x16x4xbf16>
    %119 = vector.shape_cast %116 : vector<8x16x4xbf16> to vector<1x8x16x4xbf16>
    tpu.vector_store %arg8[%c0_89, %c0_90, %c0_91, %c0_92], %119 {strides = array<i32>} : memref<1x8x16x4xbf16, #tpu.memory_space<vmem>>, vector<1x8x16x4xbf16>,
    %cst_93 = arith.constant dense<0.000000e+00> : vector<4xf32>
    %120 = vector.multi_reduction <add>, %114, %cst_93 [0] : vector<128x4xf32> to vector<4xf32>
    %121 = vector.shape_cast %120 : vector<4xf32> to vector<1x1x1x4xf32>
    %c0_94 = arith.constant 0 : index
    %c0_95 = arith.constant 0 : index
    %c0_96 = arith.constant 0 : index
    %c0_97 = arith.constant 0 : index
    %122 = vector.load %arg9[%c0_94, %c0_95, %c0_96, %c0_97] : memref<1x1x1x4xf32, #tpu.memory_space<vmem>>, vector<1x1x1x4xf32>
    tpu.vector_store %arg9[%c0_94, %c0_95, %c0_96, %c0_97], %121 {strides = array<i32>} : memref<1x1x1x4xf32, #tpu.memory_space<vmem>>, vector<1x1x1x4xf32>,
    %123 = arith.mulf %114, %114 : vector<128x4xf32>
    %cst_98 = arith.constant dense<0.000000e+00> : vector<4xf32>
    %124 = vector.multi_reduction <add>, %123, %cst_98 [0] : vector<128x4xf32> to vector<4xf32>
    %125 = vector.shape_cast %124 : vector<4xf32> to vector<1x1x1x4xf32>
    %c0_99 = arith.constant 0 : index
    %c0_100 = arith.constant 0 : index
    %c0_101 = arith.constant 0 : index
    %c0_102 = arith.constant 0 : index
    %126 = vector.load %arg10[%c0_99, %c0_100, %c0_101, %c0_102] : memref<1x1x1x4xf32, #tpu.memory_space<vmem>>, vector<1x1x1x4xf32>
    tpu.vector_store %arg10[%c0_99, %c0_100, %c0_101, %c0_102], %125 {strides = array<i32>} : memref<1x1x1x4xf32, #tpu.memory_space<vmem>>, vector<1x1x1x4xf32>,
    return
  }
  func.func @transform_0(%arg0: i32, %arg1: i32) -> (i32, i32, i32, i32) {
    %c0_i32 = arith.constant 0 : i32
    %c0_i32_0 = arith.constant 0 : i32
    %c0_i32_1 = arith.constant 0 : i32
    return %arg0, %arg1, %c0_i32, %c0_i32_0 : i32, i32, i32, i32
  }
  func.func @transform_1(%arg0: i32, %arg1: i32) -> (i32, i32, i32, i32) {
    %c8_i32 = arith.constant 8 : i32
    %0 = arith.muli %arg1, %c8_i32 : i32
    %c1_i32 = arith.constant 1 : i32
    %1 = arith.subi %0, %c1_i32 : i32
    %c0_i32 = arith.constant 0 : i32
    %2 = arith.maxsi %1, %c0_i32 : i32
    %c0_i32_0 = arith.constant 0 : i32
    %c0_i32_1 = arith.constant 0 : i32
    %c0_i32_2 = arith.constant 0 : i32
    return %arg0, %2, %c0_i32_0, %c0_i32_1 : i32, i32, i32, i32
  }
  func.func @transform_2(%arg0: i32, %arg1: i32) -> (i32, i32, i32, i32) {
    %c8_i32 = arith.constant 8 : i32
    %0 = arith.muli %arg1, %c8_i32 : i32
    %c8_i32_0 = arith.constant 8 : i32
    %1 = arith.addi %0, %c8_i32_0 : i32
    %c15_i32 = arith.constant 15 : i32
    %2 = arith.minsi %1, %c15_i32 : i32
    %c0_i32 = arith.constant 0 : i32
    %c0_i32_1 = arith.constant 0 : i32
    %c0_i32_2 = arith.constant 0 : i32
    return %arg0, %2, %c0_i32, %c0_i32_1 : i32, i32, i32, i32
  }
  func.func @transform_3(%arg0: i32, %arg1: i32) -> (i32, i32) {
    %c0_i32 = arith.constant 0 : i32
    %c0_i32_0 = arith.constant 0 : i32
    %c0_i32_1 = arith.constant 0 : i32
    return %c0_i32, %c0_i32_0 : i32, i32
  }
  func.func @transform_4(%arg0: i32, %arg1: i32) -> (i32, i32) {
    %c0_i32 = arith.constant 0 : i32
    %c0_i32_0 = arith.constant 0 : i32
    %c0_i32_1 = arith.constant 0 : i32
    return %c0_i32, %c0_i32_0 : i32, i32
  }
  func.func @transform_5(%arg0: i32, %arg1: i32) -> (i32, i32, i32, i32) {
    %c0_i32 = arith.constant 0 : i32
    %c0_i32_0 = arith.constant 0 : i32
    %c0_i32_1 = arith.constant 0 : i32
    %c0_i32_2 = arith.constant 0 : i32
    %c0_i32_3 = arith.constant 0 : i32
    return %c0_i32, %c0_i32_0, %c0_i32_1, %c0_i32_2 : i32, i32, i32, i32
  }
  func.func @transform_6(%arg0: i32, %arg1: i32) -> (i32, i32, i32, i32) {
    %c0_i32 = arith.constant 0 : i32
    %c0_i32_0 = arith.constant 0 : i32
    %c0_i32_1 = arith.constant 0 : i32
    return %arg0, %arg1, %c0_i32, %c0_i32_0 : i32, i32, i32, i32
  }
  func.func @transform_7(%arg0: i32, %arg1: i32) -> (i32, i32, i32, i32) {
    %c0_i32 = arith.constant 0 : i32
    %c0_i32_0 = arith.constant 0 : i32
    %c0_i32_1 = arith.constant 0 : i32
    return %arg0, %arg1, %c0_i32, %c0_i32_0 : i32, i32, i32, i32
  }
  func.func @transform_8(%arg0: i32, %arg1: i32) -> (i32, i32, i32, i32) {
    %c0_i32 = arith.constant 0 : i32
    %c0_i32_0 = arith.constant 0 : i32
    %c0_i32_1 = arith.constant 0 : i32
    return %arg0, %arg1, %c0_i32, %c0_i32_0 : i32, i32, i32, i32
  }
}

module attributes {stable_mosaic.version = 11 : i64} {
  func.func @_bn_relu_conv1x1_stats_kernel(%arg0: i32, %arg1: memref<256x4xbf16, #tpu.memory_space<vmem>>, %arg2: memref<1x4xf32, #tpu.memory_space<vmem>>, %arg3: memref<1x4xf32, #tpu.memory_space<vmem>>, %arg4: memref<4x16xbf16, #tpu.memory_space<vmem>>, %arg5: memref<256x16xbf16, #tpu.memory_space<vmem>>, %arg6: memref<1x1x16xf32, #tpu.memory_space<vmem>>, %arg7: memref<1x1x16xf32, #tpu.memory_space<vmem>>) attributes {dimension_semantics = [#tpu.dimension_semantics<parallel>], iteration_bounds = array<i64: 2>, scalar_prefetch = 0 : i64, scratch_operands = 0 : i64, tpu.core_type = #tpu.core_type<tc>, window_params = [{transform_indices = @transform_0, window_bounds = array<i64: 256, 4>}, {pipeline_mode = #tpu.pipeline_mode<synchronous>, transform_indices = @transform_1, window_bounds = array<i64: 1, 4>}, {pipeline_mode = #tpu.pipeline_mode<synchronous>, transform_indices = @transform_2, window_bounds = array<i64: 1, 4>}, {pipeline_mode = #tpu.pipeline_mode<synchronous>, transform_indices = @transform_3, window_bounds = array<i64: 4, 16>}, {transform_indices = @transform_4, window_bounds = array<i64: 256, 16>}, {transform_indices = @transform_5, window_bounds = array<i64: 1, 1, 16>}, {transform_indices = @transform_6, window_bounds = array<i64: 1, 1, 16>}]} {
    %c0 = arith.constant 0 : index
    %c0_0 = arith.constant 0 : index
    %0 = vector.load %arg1[%c0, %c0_0] : memref<256x4xbf16, #tpu.memory_space<vmem>>, vector<256x4xbf16>
    %1 = arith.extf %0 : vector<256x4xbf16> to vector<256x4xf32>
    %c0_1 = arith.constant 0 : index
    %c0_2 = arith.constant 0 : index
    %2 = vector.load %arg2[%c0_1, %c0_2] : memref<1x4xf32, #tpu.memory_space<vmem>>, vector<1x4xf32>
    %3 = vector.broadcast %2 : vector<1x4xf32> to vector<256x4xf32>
    %4 = arith.mulf %1, %3 : vector<256x4xf32>
    %c0_3 = arith.constant 0 : index
    %c0_4 = arith.constant 0 : index
    %5 = vector.load %arg3[%c0_3, %c0_4] : memref<1x4xf32, #tpu.memory_space<vmem>>, vector<1x4xf32>
    %6 = vector.broadcast %5 : vector<1x4xf32> to vector<256x4xf32>
    %7 = arith.addf %4, %6 : vector<256x4xf32>
    %cst = arith.constant 0.000000e+00 : f32
    %8 = vector.broadcast %cst : f32 to vector<256x4xf32>
    %9 = arith.maximumf %7, %8 : vector<256x4xf32>
    %10 = arith.truncf %9 : vector<256x4xf32> to vector<256x4xbf16>
    %c0_5 = arith.constant 0 : index
    %c0_6 = arith.constant 0 : index
    %11 = vector.load %arg4[%c0_5, %c0_6] : memref<4x16xbf16, #tpu.memory_space<vmem>>, vector<4x16xbf16>
    %cst_7 = arith.constant dense<0.000000e+00> : vector<256x16xf32>
    %12 = tpu.matmul %10, %11, %cst_7 {dimension_numbers = #tpu.dot_dimension_numbers<[1], [0], [0], [1], [0, 0, 1, 1], [], []>} : vector<256x4xbf16>, vector<4x16xbf16>, vector<256x16xf32> -> vector<256x16xf32>
    %13 = arith.truncf %12 : vector<256x16xf32> to vector<256x16xbf16>
    %c0_8 = arith.constant 0 : index
    %c0_9 = arith.constant 0 : index
    %14 = vector.load %arg5[%c0_8, %c0_9] : memref<256x16xbf16, #tpu.memory_space<vmem>>, vector<256x16xbf16>
    tpu.vector_store %arg5[%c0_8, %c0_9], %13 {strides = array<i32>} : memref<256x16xbf16, #tpu.memory_space<vmem>>, vector<256x16xbf16>,
    %cst_10 = arith.constant dense<0.000000e+00> : vector<16xf32>
    %15 = vector.multi_reduction <add>, %12, %cst_10 [0] : vector<256x16xf32> to vector<16xf32>
    %16 = vector.shape_cast %15 : vector<16xf32> to vector<1x1x16xf32>
    %c0_11 = arith.constant 0 : index
    %c0_12 = arith.constant 0 : index
    %c0_13 = arith.constant 0 : index
    %17 = vector.load %arg6[%c0_11, %c0_12, %c0_13] : memref<1x1x16xf32, #tpu.memory_space<vmem>>, vector<1x1x16xf32>
    tpu.vector_store %arg6[%c0_11, %c0_12, %c0_13], %16 {strides = array<i32>} : memref<1x1x16xf32, #tpu.memory_space<vmem>>, vector<1x1x16xf32>,
    %18 = arith.mulf %12, %12 : vector<256x16xf32>
    %cst_14 = arith.constant dense<0.000000e+00> : vector<16xf32>
    %19 = vector.multi_reduction <add>, %18, %cst_14 [0] : vector<256x16xf32> to vector<16xf32>
    %20 = vector.shape_cast %19 : vector<16xf32> to vector<1x1x16xf32>
    %c0_15 = arith.constant 0 : index
    %c0_16 = arith.constant 0 : index
    %c0_17 = arith.constant 0 : index
    %21 = vector.load %arg7[%c0_15, %c0_16, %c0_17] : memref<1x1x16xf32, #tpu.memory_space<vmem>>, vector<1x1x16xf32>
    tpu.vector_store %arg7[%c0_15, %c0_16, %c0_17], %20 {strides = array<i32>} : memref<1x1x16xf32, #tpu.memory_space<vmem>>, vector<1x1x16xf32>,
    return
  }
  func.func @transform_0(%arg0: i32) -> (i32, i32) {
    %c0_i32 = arith.constant 0 : i32
    %c0_i32_0 = arith.constant 0 : i32
    return %arg0, %c0_i32 : i32, i32
  }
  func.func @transform_1(%arg0: i32) -> (i32, i32) {
    %c0_i32 = arith.constant 0 : i32
    %c0_i32_0 = arith.constant 0 : i32
    %c0_i32_1 = arith.constant 0 : i32
    return %c0_i32, %c0_i32_0 : i32, i32
  }
  func.func @transform_2(%arg0: i32) -> (i32, i32) {
    %c0_i32 = arith.constant 0 : i32
    %c0_i32_0 = arith.constant 0 : i32
    %c0_i32_1 = arith.constant 0 : i32
    return %c0_i32, %c0_i32_0 : i32, i32
  }
  func.func @transform_3(%arg0: i32) -> (i32, i32) {
    %c0_i32 = arith.constant 0 : i32
    %c0_i32_0 = arith.constant 0 : i32
    %c0_i32_1 = arith.constant 0 : i32
    return %c0_i32, %c0_i32_0 : i32, i32
  }
  func.func @transform_4(%arg0: i32) -> (i32, i32) {
    %c0_i32 = arith.constant 0 : i32
    %c0_i32_0 = arith.constant 0 : i32
    return %arg0, %c0_i32 : i32, i32
  }
  func.func @transform_5(%arg0: i32) -> (i32, i32, i32) {
    %c0_i32 = arith.constant 0 : i32
    %c0_i32_0 = arith.constant 0 : i32
    %c0_i32_1 = arith.constant 0 : i32
    return %arg0, %c0_i32, %c0_i32_0 : i32, i32, i32
  }
  func.func @transform_6(%arg0: i32) -> (i32, i32, i32) {
    %c0_i32 = arith.constant 0 : i32
    %c0_i32_0 = arith.constant 0 : i32
    %c0_i32_1 = arith.constant 0 : i32
    return %arg0, %c0_i32, %c0_i32_0 : i32, i32, i32
  }
}

module attributes {stable_mosaic.version = 11 : i64} {
  func.func @_bn_add_relu_kernel(%arg0: i32, %arg1: memref<256x16xbf16, #tpu.memory_space<vmem>>, %arg2: memref<256x16xbf16, #tpu.memory_space<vmem>>, %arg3: memref<1x16xf32, #tpu.memory_space<vmem>>, %arg4: memref<1x16xf32, #tpu.memory_space<vmem>>, %arg5: memref<256x16xf32, #tpu.memory_space<vmem>>) attributes {dimension_semantics = [#tpu.dimension_semantics<parallel>], iteration_bounds = array<i64: 2>, scalar_prefetch = 0 : i64, scratch_operands = 0 : i64, tpu.core_type = #tpu.core_type<tc>, window_params = [{transform_indices = @transform_0, window_bounds = array<i64: 256, 16>}, {transform_indices = @transform_1, window_bounds = array<i64: 256, 16>}, {pipeline_mode = #tpu.pipeline_mode<synchronous>, transform_indices = @transform_2, window_bounds = array<i64: 1, 16>}, {pipeline_mode = #tpu.pipeline_mode<synchronous>, transform_indices = @transform_3, window_bounds = array<i64: 1, 16>}, {transform_indices = @transform_4, window_bounds = array<i64: 256, 16>}]} {
    %c0 = arith.constant 0 : index
    %c0_0 = arith.constant 0 : index
    %0 = vector.load %arg1[%c0, %c0_0] : memref<256x16xbf16, #tpu.memory_space<vmem>>, vector<256x16xbf16>
    %1 = arith.extf %0 : vector<256x16xbf16> to vector<256x16xf32>
    %c0_1 = arith.constant 0 : index
    %c0_2 = arith.constant 0 : index
    %2 = vector.load %arg3[%c0_1, %c0_2] : memref<1x16xf32, #tpu.memory_space<vmem>>, vector<1x16xf32>
    %3 = vector.broadcast %2 : vector<1x16xf32> to vector<256x16xf32>
    %4 = arith.mulf %1, %3 : vector<256x16xf32>
    %c0_3 = arith.constant 0 : index
    %c0_4 = arith.constant 0 : index
    %5 = vector.load %arg4[%c0_3, %c0_4] : memref<1x16xf32, #tpu.memory_space<vmem>>, vector<1x16xf32>
    %6 = vector.broadcast %5 : vector<1x16xf32> to vector<256x16xf32>
    %7 = arith.addf %4, %6 : vector<256x16xf32>
    %c0_5 = arith.constant 0 : index
    %c0_6 = arith.constant 0 : index
    %8 = vector.load %arg2[%c0_5, %c0_6] : memref<256x16xbf16, #tpu.memory_space<vmem>>, vector<256x16xbf16>
    %9 = arith.extf %8 : vector<256x16xbf16> to vector<256x16xf32>
    %10 = arith.addf %7, %9 : vector<256x16xf32>
    %cst = arith.constant 0.000000e+00 : f32
    %11 = vector.broadcast %cst : f32 to vector<256x16xf32>
    %12 = arith.maximumf %10, %11 : vector<256x16xf32>
    %c0_7 = arith.constant 0 : index
    %c0_8 = arith.constant 0 : index
    %13 = vector.load %arg5[%c0_7, %c0_8] : memref<256x16xf32, #tpu.memory_space<vmem>>, vector<256x16xf32>
    tpu.vector_store %arg5[%c0_7, %c0_8], %12 {strides = array<i32>} : memref<256x16xf32, #tpu.memory_space<vmem>>, vector<256x16xf32>,
    return
  }
  func.func @transform_0(%arg0: i32) -> (i32, i32) {
    %c0_i32 = arith.constant 0 : i32
    %c0_i32_0 = arith.constant 0 : i32
    return %arg0, %c0_i32 : i32, i32
  }
  func.func @transform_1(%arg0: i32) -> (i32, i32) {
    %c0_i32 = arith.constant 0 : i32
    %c0_i32_0 = arith.constant 0 : i32
    return %arg0, %c0_i32 : i32, i32
  }
  func.func @transform_2(%arg0: i32) -> (i32, i32) {
    %c0_i32 = arith.constant 0 : i32
    %c0_i32_0 = arith.constant 0 : i32
    %c0_i32_1 = arith.constant 0 : i32
    return %c0_i32, %c0_i32_0 : i32, i32
  }
  func.func @transform_3(%arg0: i32) -> (i32, i32) {
    %c0_i32 = arith.constant 0 : i32
    %c0_i32_0 = arith.constant 0 : i32
    %c0_i32_1 = arith.constant 0 : i32
    return %c0_i32, %c0_i32_0 : i32, i32
  }
  func.func @transform_4(%arg0: i32) -> (i32, i32) {
    %c0_i32 = arith.constant 0 : i32
    %c0_i32_0 = arith.constant 0 : i32
    return %arg0, %c0_i32 : i32, i32
  }
}

</mosaic_0001>

<bundles_post_ra>
// kernel: bottleneck_forward.4
= control target key start
LH: loop header
LB: loop body
LE: loop exit
PB: predicated region body
PF: predicated region fallthrough
CT: control target
= control target key end

     0   :  { %s1209_s15 = smov 0   ;;  %s1516_s0 = inlined_call_operand.vmem [shape: bf16[512,16], index: 0, kind: input, shape index: {}]   ;;  %s1517_s1 = inlined_call_operand.vmem [shape: bf16[16,4], index: 1, kind: input, shape index: {}]   ;;  %s1518_s2 = inlined_call_operand.vmem [shape: bf16[512,4], index: 2, kind: output, shape index: {0}]   ;;  %s1519_s3 = inlined_call_operand.vmem [shape: f32[2,1,4], index: 3, kind: output, shape index: {1}]   ;;  %s1520_s4 = inlined_call_operand.vmem [shape: f32[2,1,4], index: 4, kind: output, shape index: {2}]  }
   0x1 LB: > { %s1215_s16 = sadd.s32 4294967295, %s1182_s15   ;;  %p994_p0 = scmp.ge.s32.totalorder %s1182_s15, 1  ;;  %s1182_s15 = sphi %s1209_s15, %s15_s15  }
   0x2   : > { %p168_p1 = scmp.lt.s32.totalorder %s1182_s15, 3 }
   0x4   : > { %p169_p2 = pnand %p994_p0, %p168_p1 }
   0x5   : > { %s995_s19 = sshll.u32 (!%p169_p2), %s1215_s16, 5  ;;  %p212_p4 = scmp.lt.s32.totalorder (!%p169_p2), %s1215_s16, 1 }
   0x6   : > { %172 = sbr.rel (%p169_p2) target bundleno = 293 (0x125), region = 28  ;;  %p201_p3 = scmp.lt.s32.totalorder (!%p169_p2), %s995_s19, 63 }
   0xb   : > { %v1159_v0 = vld [vmem:[%s1517_s1] sm:$0xff]   ;;  %s1522_s19 = smov (!%p201_p3, %s995_s19), 63  ;;  %vm339_vm0 = vcmask 130048   ;;  %vm677_vm1 = vcmask 27648   ;;  %vm710_vm2 = vcmask 31744   ;;  %s1524_s16 = smov (!%p212_p4, %s1215_s16), 1 }
   0xc   : > { %1115 = vmatprep.subr.bf16.mxu0 %v1159_v0  ;;  %1149 = vmatprep.subr.bf16.mxu1 %v1159_v0  ;;  %s996_s20 = sshll.u32 %s1522_s19, 2  ;;  %s214_s29 = scalar_lea.vmem %s1519_s3, %s1524_s16  ;;  %vm780_vm3 = vcmask 24576  }
   0xd   : > { %1116 = vmatpush3.bf16.msra.mxu0 %v1159_v0  ;;  %1150 = vmatpush3.bf16.msra.mxu1 %v1159_v0  ;;  %s1231_s23 = scalar_lea.vmem %s1516_s0, %s996_s20  ;;  %s1270_s26 = scalar_lea.vmem %s1518_s2, %s996_s20 }
   0xe   : > { %v1160_v1 = vld [vmem:[%s1231_s23] sm:$0xff]   ;;  %v1161_v2 = vld [vmem:[%s1231_s23 + $0x8] sm:$0xff]   ;;  %v1162_v3 = vld [vmem:[%s1231_s23 + $0x10] sm:$0xff]   ;;  %s217_s6 = scalar_lea.vmem %s1520_s4, %s1524_s16 }
   0xf   : > { %1117 = vmatprep.mubr.msk.bf16.mxu0 %vm339_vm0, %v1160_v1  ;;  %v1163_v4 = vld [vmem:[%s1231_s23 + $0x18] sm:$0xff]   ;;  %v1164_v5 = vld [vmem:[%s1231_s23 + $0x20] sm:$0xff]   ;;  %v1169_v7 = vld [vmem:[%s1231_s23 + $0x48] sm:$0xff]  }
  0x10   : > { %1118 = vmatmul.mubr.msk.bf16.vlgmr.msra.gmra.mxu0 %vm339_vm0, %v1161_v2  ;;  %v1168_v6 = vld [vmem:[%s1231_s23 + $0x40] sm:$0xff]   ;;  %v1170_v8 = vld [vmem:[%s1231_s23 + $0x50] sm:$0xff]   ;;  %v1165_v9 = vld [vmem:[%s1231_s23 + $0x28] sm:$0xff]  }
  0x11   : > { %1121 = vmatprep.mubr.msk.bf16.mxu0 %vm339_vm0, %v1162_v3  ;;  %1133 = vmatprep.mubr.msk.bf16.mxu1 %vm339_vm0, %v1168_v6  ;;  %v1171_v10 = vld [vmem:[%s1231_s23 + $0x58] sm:$0xff]   ;;  %v1166_v11 = vld [vmem:[%s1231_s23 + $0x30] sm:$0xff]   ;;  %v1172_v12 = vld [vmem:[%s1231_s23 + $0x60] sm:$0xff]  }
  0x12   : > { %1134 = vmatmul.mubr.msk.bf16.vlgmr.msra.gmra.mxu1 %vm339_vm0, %v1169_v7  ;;  %v1167_v13 = vld [vmem:[%s1231_s23 + $0x38] sm:$0xff]   ;;  %v1173_v14 = vld [vmem:[%s1231_s23 + $0x68] sm:$0xff]   ;;  %v1174_v15 = vld [vmem:[%s1231_s23 + $0x70] sm:$0xff]  }
  0x13   : > { %1137 = vmatprep.mubr.msk.bf16.mxu1 %vm339_vm0, %v1170_v8  ;;  %v1175_v16 = vld [vmem:[%s1231_s23 + $0x78] sm:$0xff]  }
  0x18   : > { %1122 = vmatmul.mubr.msk.bf16.gmra.mxu0 %vm339_vm0, %v1163_v4 }
  0x19   : > { %1125 = vmatprep.mubr.msk.bf16.mxu0 %vm339_vm0, %v1164_v5 }
  0x1a   : > { %1138 = vmatmul.mubr.msk.bf16.gmra.mxu1 %vm339_vm0, %v1171_v10 }
  0x1b   : > { %1141 = vmatprep.mubr.msk.bf16.mxu1 %vm339_vm0, %v1172_v12 }
  0x20   : > { %1126 = vmatmul.mubr.msk.bf16.gmra.mxu0 %vm339_vm0, %v1165_v9 }
  0x21   : > { %1129 = vmatprep.mubr.msk.bf16.mxu0 %vm339_vm0, %v1166_v11 }
  0x22   : > { %1142 = vmatmul.mubr.msk.bf16.gmra.mxu1 %vm339_vm0, %v1173_v14 }
  0x23   : > { %1145 = vmatprep.mubr.msk.bf16.mxu1 %vm339_vm0, %v1174_v15 }
  0x28   : > { %1130 = vmatmul.mubr.msk.bf16.gmra.mxu0 %vm339_vm0, %v1167_v13 }
  0x2a   : > { %1146 = vmatmul.mubr.msk.bf16.gmra.mxu1 %vm339_vm0, %v1175_v16 }
  0xd0   : > { %v1119_v17 = vpop.f32.mrf.mxu0 }
  0xd1   : > { %v1068_v18 = vpack.c.bf16 %v1119_v17, %v1119_v17  ;;  %v784_v24 = vmul.f32 %v1119_v17, %v1119_v17  ;;  %v714_v30 = vsel %vm710_vm2, %v1119_v17, 0.0 }
  0xd2   : > { %v422_v19 = vpop.f32.mrf.mxu0  ;;  %v1281_v33 = vpop.f32.mrf.mxu1 }
  0xd3   : > { %680 = vst.msk [vmem:[%s1270_s26 + $0x8] sm:$0xf] %vm677_vm1, %v1068_v18  ;;  %v1066_v20 = vpack.c.bf16 %v422_v19, %v422_v19  ;;  %v782_v22 = vmul.f32 %v422_v19, %v422_v19  ;;  %v711_v26 = vsel %vm710_vm2, %v422_v19, 0.0  ;;  %v1084_v41 = vpack.c.bf16 %v1281_v33, %v1281_v33 }
  0xd4   : > { %v1120_v21 = vpop.f32.mrf.mxu0  ;;  %v1289_v42 = vpop.f32.mrf.mxu1  ;;  %v817_v43 = vsel %vm710_vm2, %v784_v24, 0.0 }
  0xd5   : > { %678 = vst.msk [vmem:[%s1270_s26] sm:$0xf] %vm677_vm1, %v1066_v20  ;;  %v1069_v23 = vpack.c.bf16 %v1120_v21, %v1120_v21  ;;  %v814_v34 = vsel %vm710_vm2, %v782_v22, 0.0  ;;  %v785_v35 = vmul.f32 %v1120_v21, %v1120_v21  ;;  %v716_v44 = vsel %vm710_vm2, %v1120_v21, 0.0  ;;  %696 = vst.msk [vmem:[%s1270_s26 + $0x48] sm:$0xf] %vm677_vm1, %v1084_v41 }
  0xd6   : > { %v425_v25 = vpop.f32.mrf.mxu0  ;;  %v1082_v50 = vpack.c.bf16 %v1289_v42, %v1289_v42  ;;  %v1299_v51 = vpop.f32.mrf.mxu1 }
  0xd7   : > { %681 = vst.msk [vmem:[%s1270_s26 + $0xc] sm:$0xf] %vm677_vm1, %v1069_v23  ;;  %v1067_v27 = vpack.c.bf16 %v425_v25, %v425_v25  ;;  %v712_v28 = vsel %vm710_vm2, %v425_v25, 0.0  ;;  %v783_v29 = vmul.f32 %v425_v25, %v425_v25  ;;  %v819_v52 = vsel %vm710_vm2, %v785_v35, 0.0 }
  0xd8   : > { %v713_v31 = vadd.f32 %v712_v28, %v711_v26  ;;  %v1123_v32 = vpop.f32.mrf.mxu0  ;;  %694 = vst.msk [vmem:[%s1270_s26 + $0x40] sm:$0xf] %vm677_vm1, %v1082_v50  ;;  %v1307_v59 = vpop.f32.mrf.mxu1  ;;  %v1085_v3 = vpack.c.bf16 %v1299_v51, %v1299_v51 }
  0xd9   : > { %679 = vst.msk [vmem:[%s1270_s26 + $0x4] sm:$0xf] %vm677_vm1, %v1067_v27  ;;  %v815_v36 = vsel %vm710_vm2, %v783_v29, 0.0  ;;  %v1072_v37 = vpack.c.bf16 %v1123_v32, %v1123_v32  ;;  %v788_v55 = vmul.f32 %v1123_v32, %v1123_v32  ;;  %v722_v5 = vsel %vm710_vm2, %v1123_v32, 0.0 }
  0xda   : > { %v715_v38 = vadd.f32 %v714_v30, %v713_v31  ;;  %v816_v39 = vadd.f32 %v815_v36, %v814_v34  ;;  %v438_v40 = vpop.f32.mrf.mxu0  ;;  %v1315_v4 = vpop.f32.mrf.mxu1  ;;  %697 = vst.msk [vmem:[%s1270_s26 + $0x4c] sm:$0xf] %vm677_vm1, %v1085_v3  ;;  %v1083_v20 = vpack.c.bf16 %v1307_v59, %v1307_v59 }
  0xdb   : > { %684 = vst.msk [vmem:[%s1270_s26 + $0x18] sm:$0xf] %vm677_vm1, %v1072_v37  ;;  %v1070_v45 = vpack.c.bf16 %v438_v40, %v438_v40  ;;  %v786_v46 = vmul.f32 %v438_v40, %v438_v40  ;;  %v718_v53 = vsel %vm710_vm2, %v438_v40, 0.0  ;;  %v825_v13 = vsel %vm710_vm2, %v788_v55, 0.0 }
  0xdc   : > { %v818_v47 = vadd.f32 %v817_v43, %v816_v39  ;;  %v717_v48 = vadd.f32 %v716_v44, %v715_v38  ;;  %v1124_v49 = vpop.f32.mrf.mxu0  ;;  %v1323_v12 = vpop.f32.mrf.mxu1  ;;  %695 = vst.msk [vmem:[%s1270_s26 + $0x44] sm:$0xf] %vm677_vm1, %v1083_v20  ;;  %v1088_v38 = vpack.c.bf16 %v1315_v4, %v1315_v4 }
  0xdd   : > { %682 = vst.msk [vmem:[%s1270_s26 + $0x10] sm:$0xf] %vm677_vm1, %v1070_v45  ;;  %v1073_v54 = vpack.c.bf16 %v1124_v49, %v1124_v49  ;;  %v821_v60 = vsel %vm710_vm2, %v786_v46, 0.0  ;;  %v789_v6 = vmul.f32 %v1124_v49, %v1124_v49  ;;  %v724_v14 = vsel %vm710_vm2, %v1124_v49, 0.0 }
  0xde   : > { %v719_v56 = vadd.f32 %v718_v53, %v717_v48  ;;  %v820_v57 = vadd.f32 %v819_v52, %v818_v47  ;;  %v441_v58 = vpop.f32.mrf.mxu0  ;;  %v1331_v21 = vpop.f32.mrf.mxu1  ;;  %700 = vst.msk [vmem:[%s1270_s26 + $0x58] sm:$0xf] %vm677_vm1, %v1088_v38  ;;  %v800_v38 = vmul.f32 %v1281_v33, %v1281_v33 }
  0xdf   : > { %685 = vst.msk [vmem:[%s1270_s26 + $0x1c] sm:$0xf] %vm677_vm1, %v1073_v54  ;;  %v1071_v61 = vpack.c.bf16 %v441_v58, %v441_v58  ;;  %v720_v62 = vsel %vm710_vm2, %v441_v58, 0.0  ;;  %v787_v63 = vmul.f32 %v441_v58, %v441_v58  ;;  %v827_v22 = vsel %vm710_vm2, %v789_v6, 0.0 }
  0xe0   : > { %v822_v0 = vadd.f32 %v821_v60, %v820_v57  ;;  %v721_v1 = vadd.f32 %v720_v62, %v719_v56  ;;  %v1127_v2 = vpop.f32.mrf.mxu0  ;;  %v1339_v29 = vpop.f32.mrf.mxu1  ;;  %v1086_v57 = vpack.c.bf16 %v1323_v12, %v1323_v12 }
  0xe1   : > { %683 = vst.msk [vmem:[%s1270_s26 + $0x14] sm:$0xf] %vm677_vm1, %v1071_v61  ;;  %v823_v7 = vsel %vm710_vm2, %v787_v63, 0.0  ;;  %v1076_v8 = vpack.c.bf16 %v1127_v2, %v1127_v2  ;;  %v792_v25 = vmul.f32 %v1127_v2, %v1127_v2  ;;  %v730_v40 = vsel %vm710_vm2, %v1127_v2, 0.0 }
  0xe2   : > { %v723_v9 = vadd.f32 %v722_v5, %v721_v1  ;;  %v824_v10 = vadd.f32 %v823_v7, %v822_v0  ;;  %v454_v11 = vpop.f32.mrf.mxu0  ;;  %v1347_v39 = vpop.f32.mrf.mxu1  ;;  %698 = vst.msk [vmem:[%s1270_s26 + $0x50] sm:$0xf] %vm677_vm1, %v1086_v57 }
  0xe3   : > { %688 = vst.msk [vmem:[%s1270_s26 + $0x28] sm:$0xf] %vm677_vm1, %v1076_v8  ;;  %v1074_v15 = vpack.c.bf16 %v454_v11, %v454_v11  ;;  %v790_v16 = vmul.f32 %v454_v11, %v454_v11  ;;  %v726_v23 = vsel %vm710_vm2, %v454_v11, 0.0  ;;  %v833_v49 = vsel %vm710_vm2, %v792_v25, 0.0 }
  0xe4   : > { %v826_v17 = vadd.f32 %v825_v13, %v824_v10  ;;  %v725_v18 = vadd.f32 %v724_v14, %v723_v9  ;;  %v1128_v19 = vpop.f32.mrf.mxu0  ;;  %v1355_v48 = vpop.f32.mrf.mxu1  ;;  %v1089_v11 = vpack.c.bf16 %v1331_v21, %v1331_v21  ;;  %v1092_v25 = vpack.c.bf16 %v1347_v39, %v1347_v39 }
  0xe5   : > { %686 = vst.msk [vmem:[%s1270_s26 + $0x20] sm:$0xf] %vm677_vm1, %v1074_v15  ;;  %v1077_v24 = vpack.c.bf16 %v1128_v19, %v1128_v19  ;;  %v829_v30 = vsel %vm710_vm2, %v790_v16, 0.0  ;;  %v793_v41 = vmul.f32 %v1128_v19, %v1128_v19  ;;  %v732_v50 = vsel %vm710_vm2, %v1128_v19, 0.0 }
  0xe6   : > { %v727_v26 = vadd.f32 %v726_v23, %v725_v18  ;;  %v828_v27 = vadd.f32 %v827_v22, %v826_v17  ;;  %v457_v28 = vpop.f32.mrf.mxu0  ;;  %v1363_v58 = vpop.f32.mrf.mxu1  ;;  %v1087_v17 = vpack.c.bf16 %v1339_v29, %v1339_v29  ;;  %701 = vst.msk [vmem:[%s1270_s26 + $0x5c] sm:$0xf] %vm677_vm1, %v1089_v11  ;;  %704 = vst.msk [vmem:[%s1270_s26 + $0x68] sm:$0xf] %vm677_vm1, %v1092_v25 }
  0xe7   : > { %689 = vst.msk [vmem:[%s1270_s26 + $0x2c] sm:$0xf] %vm677_vm1, %v1077_v24  ;;  %v1075_v31 = vpack.c.bf16 %v457_v28, %v457_v28  ;;  %v728_v32 = vsel %vm710_vm2, %v457_v28, 0.0  ;;  %v791_v34 = vmul.f32 %v457_v28, %v457_v28  ;;  %v835_v60 = vsel %vm710_vm2, %v793_v41, 0.0 }
  0xe8   : > { %v830_v35 = vadd.f32 %v829_v30, %v828_v27  ;;  %v729_v36 = vadd.f32 %v728_v32, %v727_v26  ;;  %v1131_v37 = vpop.f32.mrf.mxu0  ;;  %v1371_v3 = vpop.f32.mrf.mxu1  ;;  %v798_v24 = vmul.f32 %v1289_v42, %v1289_v42  ;;  %699 = vst.msk [vmem:[%s1270_s26 + $0x54] sm:$0xf] %vm677_vm1, %v1087_v17  ;;  %v1090_v28 = vpack.c.bf16 %v1355_v48, %v1355_v48 }
  0xe9   : > { %687 = vst.msk [vmem:[%s1270_s26 + $0x24] sm:$0xf] %vm677_vm1, %v1075_v31  ;;  %v831_v43 = vsel %vm710_vm2, %v791_v34, 0.0  ;;  %v1080_v44 = vpack.c.bf16 %v1131_v37, %v1131_v37  ;;  %v796_v63 = vmul.f32 %v1131_v37, %v1131_v37  ;;  %v738_v14 = vsel %vm710_vm2, %v1131_v37, 0.0 }
  0xea   : > { %v731_v45 = vadd.f32 %v730_v40, %v729_v36  ;;  %v832_v46 = vadd.f32 %v831_v43, %v830_v35  ;;  %v470_v47 = vpop.f32.mrf.mxu0  ;;  %v1379_v13 = vpop.f32.mrf.mxu1  ;;  %v742_v31 = vsel %vm710_vm2, %v1289_v42, 0.0  ;;  %v799_v32 = vmul.f32 %v1307_v59, %v1307_v59  ;;  %702 = vst.msk [vmem:[%s1270_s26 + $0x60] sm:$0xf] %vm677_vm1, %v1090_v28 }
  0xeb   : > { %692 = vst.msk [vmem:[%s1270_s26 + $0x38] sm:$0xf] %vm677_vm1, %v1080_v44  ;;  %v1078_v52 = vpack.c.bf16 %v470_v47, %v470_v47  ;;  %v794_v53 = vmul.f32 %v470_v47, %v470_v47  ;;  %v734_v61 = vsel %vm710_vm2, %v470_v47, 0.0  ;;  %v841_v22 = vsel %vm710_vm2, %v796_v63, 0.0 }
  0xec   : > { %v834_v54 = vadd.f32 %v833_v49, %v832_v46  ;;  %v733_v55 = vadd.f32 %v732_v50, %v731_v45  ;;  %v1132_v56 = vpop.f32.mrf.mxu0  ;;  %v1389_v20 = vpop.f32.mrf.mxu1  ;;  %v1093_v34 = vpack.c.bf16 %v1363_v58, %v1363_v58  ;;  %v845_v42 = vsel %vm710_vm2, %v798_v24, 0.0 }
  0xed   : > { %690 = vst.msk [vmem:[%s1270_s26 + $0x30] sm:$0xf] %vm677_vm1, %v1078_v52  ;;  %v1081_v62 = vpack.c.bf16 %v1132_v56, %v1132_v56  ;;  %v837_v5 = vsel %vm710_vm2, %v794_v53, 0.0  ;;  %v797_v15 = vmul.f32 %v1132_v56, %v1132_v56  ;;  %v740_v23 = vsel %vm710_vm2, %v1132_v56, 0.0 }
  0xee   : > { %v735_v0 = vadd.f32 %v734_v61, %v733_v55  ;;  %v836_v1 = vadd.f32 %v835_v60, %v834_v54  ;;  %v473_v2 = vpop.f32.mrf.mxu0  ;;  %v1410_v35 = vpop.f32.mrf.mxu1  ;;  %v744_v40 = vsel %vm710_vm2, %v1307_v59, 0.0  ;;  %705 = vst.msk [vmem:[%s1270_s26 + $0x6c] sm:$0xf] %vm677_vm1, %v1093_v34  ;;  %v1091_v41 = vpack.c.bf16 %v1371_v3, %v1371_v3 }
  0xef   : > { %693 = vst.msk [vmem:[%s1270_s26 + $0x3c] sm:$0xf] %vm677_vm1, %v1081_v62  ;;  %v1079_v6 = vpack.c.bf16 %v473_v2, %v473_v2  ;;  %v736_v7 = vsel %vm710_vm2, %v473_v2, 0.0  ;;  %v795_v8 = vmul.f32 %v473_v2, %v473_v2  ;;  %v843_v30 = vsel %vm710_vm2, %v797_v15, 0.0 }
  0xf0   : > { %v838_v9 = vadd.f32 %v837_v5, %v836_v1  ;;  %v737_v10 = vadd.f32 %v736_v7, %v735_v0  ;;  %v1096_v45 = vpack.c.bf16 %v1379_v13, %v1379_v13  ;;  %v746_v46 = vsel %vm710_vm2, %v1281_v33, 0.0  ;;  %703 = vst.msk [vmem:[%s1270_s26 + $0x64] sm:$0xf] %vm677_vm1, %v1091_v41  ;;  %v537_v50 = vpop.f32.mrf.mxu1 }
  0xf1   : > { %691 = vst.msk [vmem:[%s1270_s26 + $0x34] sm:$0xf] %vm677_vm1, %v1079_v6  ;;  %v839_v16 = vsel %vm710_vm2, %v795_v8, 0.0  ;;  %v801_v47 = vmul.f32 %v1299_v51, %v1299_v51  ;;  %v847_v49 = vsel %vm710_vm2, %v799_v32, 0.0  ;;  %v1094_v59 = vpack.c.bf16 %v1389_v20, %v1389_v20 }
  0xf2   : > { %v739_v18 = vadd.f32 %v738_v14, %v737_v10  ;;  %v840_v19 = vadd.f32 %v839_v16, %v838_v9  ;;  %708 = vst.msk [vmem:[%s1270_s26 + $0x78] sm:$0xf] %vm677_vm1, %v1096_v45  ;;  %v849_v54 = vsel %vm710_vm2, %v800_v38, 0.0  ;;  %v748_v33 = vsel %vm710_vm2, %v1299_v51, 0.0 }
  0xf3   : > { %v802_v55 = vmul.f32 %v1323_v12, %v1323_v12  ;;  %706 = vst.msk [vmem:[%s1270_s26 + $0x70] sm:$0xf] %vm677_vm1, %v1094_v59  ;;  %v1097_v56 = vpack.c.bf16 %v1410_v35, %v1410_v35  ;;  %v1095_v61 = vpack.c.bf16 %v537_v50, %v537_v50  ;;  %v851_v62 = vsel %vm710_vm2, %v801_v47, 0.0 }
  0xf4   : > { %v741_v26 = vadd.f32 %v740_v23, %v739_v18  ;;  %v842_v27 = vadd.f32 %v841_v22, %v840_v19  ;;  %v750_v63 = vsel %vm710_vm2, %v1323_v12, 0.0  ;;  %v803_v0 = vmul.f32 %v1339_v29, %v1339_v29 }
  0xf5   : > { %709 = vst.msk [vmem:[%s1270_s26 + $0x7c] sm:$0xf] %vm677_vm1, %v1097_v56  ;;  %707 = vst.msk [vmem:[%s1270_s26 + $0x74] sm:$0xf] %vm677_vm1, %v1095_v61  ;;  %v804_v2 = vmul.f32 %v1315_v4, %v1315_v4  ;;  %v853_v5 = vsel %vm710_vm2, %v802_v55, 0.0  ;;  %v752_v6 = vsel %vm710_vm2, %v1339_v29, 0.0  ;;  %v805_v9 = vmul.f32 %v1331_v21, %v1331_v21 }
  0xf6   : > { %v844_v36 = vadd.f32 %v843_v30, %v842_v27  ;;  %v743_v37 = vadd.f32 %v742_v31, %v741_v26  ;;  %v754_v12 = vsel %vm710_vm2, %v1315_v4, 0.0  ;;  %v855_v10 = vsel %vm710_vm2, %v803_v0, 0.0 }
  0xf7   : > { %v857_v15 = vsel %vm710_vm2, %v804_v2, 0.0  ;;  %v756_v16 = vsel %vm710_vm2, %v1331_v21, 0.0  ;;  %v806_v29 = vmul.f32 %v1355_v48, %v1355_v48  ;;  %v859_v19 = vsel %vm710_vm2, %v805_v9, 0.0 }
  0xf8   : > { %v745_v43 = vadd.f32 %v744_v40, %v743_v37  ;;  %v846_v44 = vadd.f32 %v845_v42, %v844_v36  ;;  %v758_v4 = vsel %vm710_vm2, %v1355_v48, 0.0  ;;  %v807_v22 = vmul.f32 %v1371_v3, %v1371_v3 }
  0xf9   : > { %v808_v25 = vmul.f32 %v1347_v39, %v1347_v39  ;;  %v861_v21 = vsel %vm710_vm2, %v806_v29, 0.0  ;;  %v760_v26 = vsel %vm710_vm2, %v1371_v3, 0.0  ;;  %v762_v30 = vsel %vm710_vm2, %v1347_v39, 0.0 }
  0xfa   : > { %v747_v52 = vadd.f32 %v746_v46, %v745_v43  ;;  %v848_v53 = vadd.f32 %v847_v49, %v846_v44  ;;  %v809_v48 = vmul.f32 %v1363_v58, %v1363_v58  ;;  %v863_v31 = vsel %vm710_vm2, %v807_v22, 0.0 }
  0xfb   : > { %v865_v36 = vsel %vm710_vm2, %v808_v25, 0.0  ;;  %v764_v37 = vsel %vm710_vm2, %v1363_v58, 0.0  ;;  %v810_v3 = vmul.f32 %v1389_v20, %v1389_v20  ;;  %v766_v39 = vsel %vm710_vm2, %v1389_v20, 0.0 }
  0xfc   : > { %v850_v57 = vadd.f32 %v849_v54, %v848_v53  ;;  %v749_v60 = vadd.f32 %v748_v33, %v747_v52  ;;  %v867_v40 = vsel %vm710_vm2, %v809_v48, 0.0  ;;  %v811_v41 = vmul.f32 %v537_v50, %v537_v50 }
  0xfd   : > { %v812_v45 = vmul.f32 %v1379_v13, %v1379_v13  ;;  %v869_v46 = vsel %vm710_vm2, %v810_v3, 0.0  ;;  %v768_v58 = vsel %vm710_vm2, %v537_v50, 0.0  ;;  %v770_v59 = vsel %vm710_vm2, %v1379_v13, 0.0 }
  0xfe   : > { %v751_v51 = vadd.f32 %v750_v63, %v749_v60  ;;  %v852_v1 = vadd.f32 %v851_v62, %v850_v57  ;;  %v813_v52 = vmul.f32 %v1410_v35, %v1410_v35  ;;  %v871_v20 = vsel %vm710_vm2, %v811_v41, 0.0 }
  0xff   : > { %v873_v33 = vsel %vm710_vm2, %v812_v45, 0.0  ;;  %v772_v55 = vsel %vm710_vm2, %v1410_v35, 0.0 }
 0x100   : > { %v854_v7 = vadd.f32 %v853_v5, %v852_v1  ;;  %v753_v8 = vadd.f32 %v752_v6, %v751_v51  ;;  %v875_v57 = vsel %vm710_vm2, %v813_v52, 0.0 }
 0x102   : > { %v755_v11 = vadd.f32 %v754_v12, %v753_v8  ;;  %v856_v14 = vadd.f32 %v855_v10, %v854_v7 }
 0x104   : > { %v858_v17 = vadd.f32 %v857_v15, %v856_v14  ;;  %v757_v18 = vadd.f32 %v756_v16, %v755_v11 }
 0x106   : > { %v759_v23 = vadd.f32 %v758_v4, %v757_v18  ;;  %v860_v24 = vadd.f32 %v859_v19, %v858_v17 }
 0x108   : > { %v862_v27 = vadd.f32 %v861_v21, %v860_v24  ;;  %v761_v28 = vadd.f32 %v760_v26, %v759_v23 }
 0x10a   : > { %v763_v32 = vadd.f32 %v762_v30, %v761_v28  ;;  %v864_v34 = vadd.f32 %v863_v31, %v862_v27 }
 0x10c   : > { %v866_v38 = vadd.f32 %v865_v36, %v864_v34  ;;  %v765_v42 = vadd.f32 %v764_v37, %v763_v32 }
 0x10e   : > { %v767_v43 = vadd.f32 %v766_v39, %v765_v42  ;;  %v868_v44 = vadd.f32 %v867_v40, %v866_v38 }
 0x110   : > { %v870_v47 = vadd.f32 %v869_v46, %v868_v44  ;;  %v769_v49 = vadd.f32 %v768_v58, %v767_v43 }
 0x112   : > { %v771_v53 = vadd.f32 %v770_v59, %v769_v49  ;;  %v872_v54 = vadd.f32 %v871_v20, %v870_v47 }
 0x114   : > { %v773_v56 = vadd.f32 %v772_v55, %v771_v53  ;;  %v874_v50 = vadd.f32 %v873_v33, %v872_v54 }
 0x116   : > { %v774_v60 = vrot.slane %v773_v56, 4  ;;  %v876_v61 = vadd.f32 %v875_v57, %v874_v50 }
 0x118   : > { %v775_v13 = vadd.f32 %v774_v60, %v773_v56  ;;  %v877_v62 = vrot.slane %v876_v61, 4 }
 0x11a   : > { %v776_v63 = vrot.slane %v775_v13, 2  ;;  %v878_v0 = vadd.f32 %v877_v62, %v876_v61 }
 0x11c   : > { %v777_v51 = vadd.f32 %v776_v63, %v775_v13  ;;  %v879_v1 = vrot.slane %v878_v0, 2 }
 0x11e   : > { %v778_v2 = vrot.slane %v777_v51, 1  ;;  %v880_v5 = vadd.f32 %v879_v1, %v878_v0 }
 0x120   : > { %v779_v35 = vadd.f32 %v778_v2, %v777_v51  ;;  %v881_v6 = vrot.slane %v880_v5, 1 }
 0x122   : > { %781 = vst.msk [vmem:[%s214_s29] sm:$0x1] %vm780_vm3, %v779_v35  ;;  %v882_v7 = vadd.f32 %v881_v6, %v880_v5 }
 0x124   : > { %883 = vst.msk [vmem:[%s217_s6] sm:$0x1] %vm780_vm3, %v882_v7 }
 0x125 PF: > { %s15_s15 = sadd.s32 1, %s1182_s15  }
 0x126   : > { %p12_p5 = scmp.ge.s32.totalorder %s15_s15, 4  }
 0x128   :  { %14 = sbr.rel (!%p12_p5) target bundleno = 1 (0x1), region = 82 }

// kernel: bottleneck_forward.6
= control target key start
LH: loop header
LB: loop body
LE: loop exit
PB: predicated region body
PF: predicated region fallthrough
CT: control target
= control target key end

     0   :  { %s1397_s21 = smov 0   ;;  %s1765_s0 = inlined_call_operand.vmem [shape: bf16[512,4], index: 0, kind: input, shape index: {}]   ;;  %s1766_s1 = inlined_call_operand.vmem [shape: f32[1,4], index: 1, kind: input, shape index: {}]   ;;  %s1767_s2 = inlined_call_operand.vmem [shape: f32[1,4], index: 2, kind: input, shape index: {}]   ;;  %s1768_s3 = inlined_call_operand.vmem [shape: bf16[4,16], index: 3, kind: input, shape index: {}]   ;;  %s1769_s4 = inlined_call_operand.vmem [shape: bf16[512,16], index: 4, kind: output, shape index: {0}]   ;;  %s1770_s5 = inlined_call_operand.vmem [shape: f32[2,1,16], index: 5, kind: output, shape index: {1}]   ;;  %s1771_s6 = inlined_call_operand.vmem [shape: f32[2,1,16], index: 6, kind: output, shape index: {2}]  }
   0x1 LB: > { %s1403_s22 = sadd.s32 4294967295, %s1360_s21   ;;  %p1123_p0 = scmp.ge.s32.totalorder %s1360_s21, 1  ;;  %s1360_s21 = sphi %s1397_s21, %s17_s21  }
   0x2   : > { %p218_p1 = scmp.lt.s32.totalorder %s1360_s21, 3 }
   0x4   : > { %p219_p2 = pnand %p1123_p0, %p218_p1 }
   0x5   : > { %s1124_s25 = sshll.u32 (!%p219_p2), %s1403_s22, 5  ;;  %p266_p4 = scmp.lt.s32.totalorder (!%p219_p2), %s1403_s22, 1 }
   0x6   : > { %222 = sbr.rel (%p219_p2) target bundleno = 303 (0x12f), region = 36  ;;  %p255_p3 = scmp.lt.s32.totalorder (!%p219_p2), %s1124_s25, 63 }
   0xb   : > { %v463_v0 = vld [vmem:[%s1768_s3] sm:$0x3]  ;;  %vm513_vm0 = vcmask 1041408   ;;  %s1773_s25 = smov (!%p255_p3, %s1124_s25), 63  ;;  %vm464_vm1 = vcmask 31744   ;;  %vm806_vm2 = vcmask 125952  }
   0xc   : > { %1344 = vmatprep.subr.msk.bf16.mxu0 %vm513_vm0, %v463_v0  ;;  %v515_v1 = vsel %vm513_vm0, %v463_v0, 0  ;;  %1345 = vmatprep.subr.msk.bf16.mxu1 %vm513_vm0, %v463_v0  ;;  %s1125_s26 = sshll.u32 %s1773_s25, 2  ;;  %v1424_v2 = vld [vmem:[%s1766_s1] ss:$0 sm:$0xff]  ;;  %vm839_vm3 = vcmask 130048   ;;  %s1775_s22 = smov (!%p266_p4, %s1403_s22), 1 }
   0xd   : > { %1309 = vmatpush3.bf16.msra.mxu0 %v515_v1  ;;  %1343 = vmatpush3.bf16.msra.mxu1 %v515_v1  ;;  %s1419_s29 = scalar_lea.vmem %s1765_s0, %s1125_s26  ;;  %v1433_v11 = vld [vmem:[%s1767_s2] ss:$0 sm:$0xff]  ;;  %s1540_s12 = scalar_lea.vmem %s1769_s4, %s1125_s26  ;;  %vm909_vm4 = vcmask 122880  }
   0xe   : > { %v1213_v3 = vld [vmem:[%s1419_s29] sm:$0xff]   ;;  %v1276_v4 = vld [vmem:[%s1419_s29 + $0x8] sm:$0xff]   ;;  %v1277_v5 = vld [vmem:[%s1419_s29 + $0x10] sm:$0xff]   ;;  %s268_s15 = scalar_lea.vmem %s1770_s5, %s1775_s22  ;;  %s271_s18 = scalar_lea.vmem %s1771_s6, %s1775_s22 }
   0xf   : > { %v1214_v6 = vunpack.c.l.bf16 %v1213_v3  ;;  %v1215_v7 = vunpack.c.h.bf16 %v1213_v3  ;;  %v1218_v8 = vunpack.c.l.bf16 %v1276_v4  ;;  %v1219_v9 = vunpack.c.h.bf16 %v1276_v4  ;;  %v1278_v10 = vld [vmem:[%s1419_s29 + $0x18] sm:$0xff]   ;;  %v1279_v32 = vld [vmem:[%s1419_s29 + $0x20] sm:$0xff]   ;;  %v1280_v37 = vld [vmem:[%s1419_s29 + $0x28] sm:$0xff]  }
  0x10   : > { %v1222_v12 = vunpack.c.l.bf16 %v1277_v5  ;;  %v1223_v13 = vunpack.c.h.bf16 %v1277_v5  ;;  %v1226_v14 = vunpack.c.l.bf16 %v1278_v10  ;;  %v1227_v15 = vunpack.c.h.bf16 %v1278_v10  ;;  %v1281_v42 = vld [vmem:[%s1419_s29 + $0x30] sm:$0xff]   ;;  %v1282_v47 = vld [vmem:[%s1419_s29 + $0x38] sm:$0xff]   ;;  %v1283_v5 = vld [vmem:[%s1419_s29 + $0x40] sm:$0xff]  }
  0x11   : > { %v344_v16 = vmul.f32 %v1214_v6, %v1424_v2  ;;  %v345_v17 = vmul.f32 %v1215_v7, %v1424_v2  ;;  %v346_v18 = vmul.f32 %v1218_v8, %v1424_v2  ;;  %v347_v19 = vmul.f32 %v1219_v9, %v1424_v2 }
  0x12   : > { %v348_v20 = vmul.f32 %v1222_v12, %v1424_v2  ;;  %v349_v21 = vmul.f32 %v1223_v13, %v1424_v2  ;;  %v350_v22 = vmul.f32 %v1226_v14, %v1424_v2  ;;  %v351_v23 = vmul.f32 %v1227_v15, %v1424_v2  ;;  %v1284_v15 = vld [vmem:[%s1419_s29 + $0x48] sm:$0xff]  }
  0x13   : > { %v383_v24 = vadd.f32 %v1433_v11, %v344_v16  ;;  %v384_v25 = vadd.f32 %v1433_v11, %v345_v17  ;;  %v385_v26 = vadd.f32 %v1433_v11, %v346_v18  ;;  %v386_v27 = vadd.f32 %v1433_v11, %v347_v19 }
  0x14   : > { %v387_v28 = vadd.f32 %v1433_v11, %v348_v20  ;;  %v388_v29 = vadd.f32 %v1433_v11, %v349_v21  ;;  %v389_v30 = vadd.f32 %v1433_v11, %v350_v22  ;;  %v390_v31 = vadd.f32 %v1433_v11, %v351_v23  ;;  %v1285_v20 = vld [vmem:[%s1419_s29 + $0x50] sm:$0xff]  }
  0x15   : > { %v415_v33 = vmax.f32 %v383_v24, 0.0  ;;  %v416_v34 = vmax.f32 %v384_v25, 0.0  ;;  %v417_v35 = vmax.f32 %v385_v26, 0.0  ;;  %v418_v36 = vmax.f32 %v386_v27, 0.0  ;;  %v1286_v24 = vld [vmem:[%s1419_s29 + $0x58] sm:$0xff]  }
  0x16   : > { %v419_v38 = vmax.f32 %v387_v28, 0.0  ;;  %v420_v39 = vmax.f32 %v388_v29, 0.0  ;;  %v421_v40 = vmax.f32 %v389_v30, 0.0  ;;  %v422_v41 = vmax.f32 %v390_v31, 0.0 }
  0x17   : > { %v447_v43 = vpack.c.bf16 %v416_v34, %v415_v33  ;;  %v448_v44 = vpack.c.bf16 %v418_v36, %v417_v35  ;;  %v1230_v45 = vunpack.c.l.bf16 %v1279_v32  ;;  %v1231_v46 = vunpack.c.h.bf16 %v1279_v32 }
  0x18   : > { %v449_v48 = vpack.c.bf16 %v420_v39, %v419_v38  ;;  %v450_v49 = vpack.c.bf16 %v422_v41, %v421_v40  ;;  %v1234_v50 = vunpack.c.l.bf16 %v1280_v37  ;;  %v1235_v51 = vunpack.c.h.bf16 %v1280_v37  ;;  %v1287_v41 = vld [vmem:[%s1419_s29 + $0x60] sm:$0xff]  }
  0x19   : > { %1310 = vmatprep.mubr.msk.bf16.mxu0 %vm464_vm1, %v447_v43  ;;  %v352_v52 = vmul.f32 %v1230_v45, %v1424_v2  ;;  %v353_v53 = vmul.f32 %v1231_v46, %v1424_v2  ;;  %v1238_v54 = vunpack.c.l.bf16 %v1281_v42  ;;  %v1239_v55 = vunpack.c.h.bf16 %v1281_v42 }
  0x1a   : > { %1311 = vmatmul.mubr.msk.bf16.vlgmr.msra.gmra.mxu0 %vm464_vm1, %v448_v44  ;;  %v354_v56 = vmul.f32 %v1234_v50, %v1424_v2  ;;  %v355_v57 = vmul.f32 %v1235_v51, %v1424_v2  ;;  %v1242_v58 = vunpack.c.l.bf16 %v1282_v47  ;;  %v1243_v59 = vunpack.c.h.bf16 %v1282_v47 }
  0x1b   : > { %1314 = vmatprep.mubr.msk.bf16.mxu0 %vm464_vm1, %v449_v48  ;;  %v391_v60 = vadd.f32 %v1433_v11, %v352_v52  ;;  %v392_v61 = vadd.f32 %v1433_v11, %v353_v53  ;;  %v356_v62 = vmul.f32 %v1238_v54, %v1424_v2  ;;  %v357_v63 = vmul.f32 %v1239_v55, %v1424_v2  ;;  %v1288_v54 = vld [vmem:[%s1419_s29 + $0x68] sm:$0xff]  }
  0x1c   : > { %v393_v0 = vadd.f32 %v1433_v11, %v354_v56  ;;  %v394_v1 = vadd.f32 %v1433_v11, %v355_v57  ;;  %v358_v3 = vmul.f32 %v1242_v58, %v1424_v2  ;;  %v359_v4 = vmul.f32 %v1243_v59, %v1424_v2  ;;  %v1289_v59 = vld [vmem:[%s1419_s29 + $0x70] sm:$0xff]  }
  0x1d   : > { %v423_v6 = vmax.f32 %v391_v60, 0.0  ;;  %v424_v7 = vmax.f32 %v392_v61, 0.0  ;;  %v395_v8 = vadd.f32 %v1433_v11, %v356_v62  ;;  %v396_v9 = vadd.f32 %v1433_v11, %v357_v63 }
  0x1e   : > { %v425_v10 = vmax.f32 %v393_v0, 0.0  ;;  %v426_v12 = vmax.f32 %v394_v1, 0.0  ;;  %v1474_v13 = vadd.f32 %v1433_v11, %v358_v3  ;;  %v1477_v14 = vadd.f32 %v1433_v11, %v359_v4 }
  0x1f   : > { %v451_v16 = vpack.c.bf16 %v424_v7, %v423_v6  ;;  %v427_v17 = vmax.f32 %v395_v8, 0.0  ;;  %v428_v18 = vmax.f32 %v396_v9, 0.0  ;;  %v1246_v19 = vunpack.c.l.bf16 %v1283_v5  ;;  %v1290_v9 = vld [vmem:[%s1419_s29 + $0x78] sm:$0xff]  }
  0x20   : > { %v452_v21 = vpack.c.bf16 %v426_v12, %v425_v10  ;;  %v429_v22 = vmax.f32 %v1474_v13, 0.0  ;;  %v1247_v23 = vunpack.c.h.bf16 %v1283_v5  ;;  %v430_v25 = vmax.f32 %v1477_v14, 0.0 }
  0x21   : > { %v360_v26 = vmul.f32 %v1246_v19, %v1424_v2  ;;  %v1250_v27 = vunpack.c.l.bf16 %v1284_v15  ;;  %v1251_v28 = vunpack.c.h.bf16 %v1284_v15  ;;  %v453_v29 = vpack.c.bf16 %v428_v18, %v427_v17 }
  0x22   : > { %1315 = vmatmul.mubr.msk.bf16.gmra.mxu0 %vm464_vm1, %v450_v49  ;;  %v361_v30 = vmul.f32 %v1247_v23, %v1424_v2  ;;  %v1254_v31 = vunpack.c.l.bf16 %v1285_v20  ;;  %v1255_v32 = vunpack.c.h.bf16 %v1285_v20  ;;  %v1258_v36 = vunpack.c.l.bf16 %v1286_v24 }
  0x23   : > { %1318 = vmatprep.mubr.msk.bf16.mxu0 %vm464_vm1, %v451_v16  ;;  %v399_v33 = vadd.f32 %v1433_v11, %v360_v26  ;;  %v362_v34 = vmul.f32 %v1250_v27, %v1424_v2  ;;  %v363_v35 = vmul.f32 %v1251_v28, %v1424_v2  ;;  %v1259_v40 = vunpack.c.h.bf16 %v1286_v24 }
  0x24   : > { %v400_v37 = vadd.f32 %v1433_v11, %v361_v30  ;;  %v364_v38 = vmul.f32 %v1254_v31, %v1424_v2  ;;  %v365_v39 = vmul.f32 %v1255_v32, %v1424_v2  ;;  %v366_v45 = vmul.f32 %v1258_v36, %v1424_v2 }
  0x25   : > { %v431_v42 = vmax.f32 %v399_v33, 0.0  ;;  %v401_v43 = vadd.f32 %v1433_v11, %v362_v34  ;;  %v402_v44 = vadd.f32 %v1433_v11, %v363_v35  ;;  %v367_v49 = vmul.f32 %v1259_v40, %v1424_v2 }
  0x26   : > { %v432_v46 = vmax.f32 %v400_v37, 0.0  ;;  %v403_v47 = vadd.f32 %v1433_v11, %v364_v38  ;;  %v404_v48 = vadd.f32 %v1433_v11, %v365_v39  ;;  %v405_v52 = vadd.f32 %v1433_v11, %v366_v45 }
  0x27   : > { %v433_v50 = vmax.f32 %v401_v43, 0.0  ;;  %v434_v51 = vmax.f32 %v402_v44, 0.0  ;;  %v1262_v53 = vunpack.c.l.bf16 %v1287_v41  ;;  %v406_v58 = vadd.f32 %v1433_v11, %v367_v49 }
  0x28   : > { %v455_v55 = vpack.c.bf16 %v432_v46, %v431_v42  ;;  %v435_v56 = vmax.f32 %v403_v47, 0.0  ;;  %v436_v57 = vmax.f32 %v404_v48, 0.0  ;;  %v437_v61 = vmax.f32 %v405_v52, 0.0 }
  0x29   : > { %v456_v60 = vpack.c.bf16 %v434_v51, %v433_v50  ;;  %v1263_v62 = vunpack.c.h.bf16 %v1287_v41  ;;  %v368_v63 = vmul.f32 %v1262_v53, %v1424_v2  ;;  %v438_v1 = vmax.f32 %v406_v58, 0.0 }
  0x2a   : > { %1319 = vmatmul.mubr.msk.bf16.gmra.mxu0 %vm464_vm1, %v452_v21  ;;  %1326 = vmatprep.mubr.msk.bf16.mxu1 %vm464_vm1, %v455_v55  ;;  %v457_v0 = vpack.c.bf16 %v436_v57, %v435_v56  ;;  %v1266_v3 = vunpack.c.l.bf16 %v1288_v54  ;;  %v1267_v4 = vunpack.c.h.bf16 %v1288_v54  ;;  %v1270_v7 = vunpack.c.l.bf16 %v1289_v59 }
  0x2b   : > { %1322 = vmatprep.mubr.msk.bf16.mxu0 %vm464_vm1, %v453_v29  ;;  %1327 = vmatmul.mubr.msk.bf16.vlgmr.msra.gmra.mxu1 %vm464_vm1, %v456_v60  ;;  %v369_v5 = vmul.f32 %v1263_v62, %v1424_v2  ;;  %v407_v6 = vadd.f32 %v1433_v11, %v368_v63  ;;  %v1271_v8 = vunpack.c.h.bf16 %v1289_v59  ;;  %v454_v18 = vpack.c.bf16 %v430_v25, %v429_v22 }
  0x2c   : > { %1330 = vmatprep.mubr.msk.bf16.mxu1 %vm464_vm1, %v457_v0  ;;  %v370_v10 = vmul.f32 %v1266_v3, %v1424_v2  ;;  %v371_v12 = vmul.f32 %v1267_v4, %v1424_v2  ;;  %v372_v16 = vmul.f32 %v1270_v7, %v1424_v2  ;;  %v458_v19 = vpack.c.bf16 %v438_v1, %v437_v61 }
  0x2d   : > { %v408_v14 = vadd.f32 %v1433_v11, %v369_v5  ;;  %v439_v15 = vmax.f32 %v407_v6, 0.0  ;;  %v373_v17 = vmul.f32 %v1271_v8, %v1424_v2  ;;  %v1274_v20 = vunpack.c.l.bf16 %v1290_v9 }
  0x2e   : > { %v409_v23 = vadd.f32 %v1433_v11, %v370_v10  ;;  %v410_v24 = vadd.f32 %v1433_v11, %v371_v12  ;;  %v1275_v26 = vunpack.c.h.bf16 %v1290_v9  ;;  %v411_v27 = vadd.f32 %v1433_v11, %v372_v16 }
  0x2f   : > { %v440_v21 = vmax.f32 %v408_v14, 0.0  ;;  %v412_v28 = vadd.f32 %v1433_v11, %v373_v17  ;;  %v374_v22 = vmul.f32 %v1274_v20, %v1424_v2 }
  0x30   : > { %v441_v30 = vmax.f32 %v409_v23, 0.0  ;;  %v442_v13 = vmax.f32 %v410_v24, 0.0  ;;  %v375_v25 = vmul.f32 %v1275_v26, %v1424_v2  ;;  %v443_v31 = vmax.f32 %v411_v27, 0.0 }
  0x31   : > { %v459_v29 = vpack.c.bf16 %v440_v21, %v439_v15  ;;  %v444_v32 = vmax.f32 %v412_v28, 0.0  ;;  %v413_v34 = vadd.f32 %v1433_v11, %v374_v22 }
  0x32   : > { %1323 = vmatmul.mubr.msk.bf16.gmra.mxu0 %vm464_vm1, %v454_v18  ;;  %v460_v33 = vpack.c.bf16 %v442_v13, %v441_v30  ;;  %v414_v35 = vadd.f32 %v1433_v11, %v375_v25 }
  0x33   : > { %1331 = vmatmul.mubr.msk.bf16.gmra.mxu1 %vm464_vm1, %v458_v19  ;;  %v461_v36 = vpack.c.bf16 %v444_v32, %v443_v31  ;;  %v445_v37 = vmax.f32 %v413_v34, 0.0 }
  0x34   : > { %1334 = vmatprep.mubr.msk.bf16.mxu1 %vm464_vm1, %v459_v29  ;;  %v446_v38 = vmax.f32 %v414_v35, 0.0 }
  0x36   : > { %v462_v39 = vpack.c.bf16 %v446_v38, %v445_v37 }
  0x3b   : > { %1335 = vmatmul.mubr.msk.bf16.gmra.mxu1 %vm464_vm1, %v460_v33 }
  0x3c   : > { %1338 = vmatprep.mubr.msk.bf16.mxu1 %vm464_vm1, %v461_v36 }
  0x43   : > { %1339 = vmatmul.mubr.msk.bf16.gmra.mxu1 %vm464_vm1, %v462_v39 }
  0xda   : > { %v1312_v2 = vpop.f32.mrf.mxu0 }
  0xdb   : > { %v1182_v11 = vpack.c.bf16 %v1312_v2, %v1312_v2  ;;  %v913_v45 = vmul.f32 %v1312_v2, %v1312_v2  ;;  %v843_v51 = vsel %vm839_vm3, %v1312_v2, 0.0 }
  0xdc   : > { %v551_v40 = vpop.f32.mrf.mxu0 }
  0xdd   : > { %809 = vst.msk [vmem:[%s1540_s12 + $0x8] sm:$0xf] %vm806_vm2, %v1182_v11  ;;  %v1180_v41 = vpack.c.bf16 %v551_v40, %v551_v40  ;;  %v911_v43 = vmul.f32 %v551_v40, %v551_v40  ;;  %v840_v47 = vsel %vm839_vm3, %v551_v40, 0.0  ;;  %v946_v61 = vsel %vm839_vm3, %v913_v45, 0.0 }
  0xde   : > { %v1313_v42 = vpop.f32.mrf.mxu0 }
  0xdf   : > { %807 = vst.msk [vmem:[%s1540_s12] sm:$0xf] %vm806_vm2, %v1180_v41  ;;  %v1183_v44 = vpack.c.bf16 %v1313_v42, %v1313_v42  ;;  %v943_v54 = vsel %vm839_vm3, %v911_v43, 0.0  ;;  %v914_v55 = vmul.f32 %v1313_v42, %v1313_v42  ;;  %v845_v62 = vsel %vm839_vm3, %v1313_v42, 0.0 }
  0xe0   : > { %v554_v46 = vpop.f32.mrf.mxu0 }
  0xe1   : > { %810 = vst.msk [vmem:[%s1540_s12 + $0xc] sm:$0xf] %vm806_vm2, %v1183_v44  ;;  %v1181_v48 = vpack.c.bf16 %v554_v46, %v554_v46  ;;  %v841_v49 = vsel %vm839_vm3, %v554_v46, 0.0  ;;  %v912_v50 = vmul.f32 %v554_v46, %v554_v46  ;;  %v948_v5 = vsel %vm839_vm3, %v914_v55, 0.0 }
  0xe2   : > { %v842_v52 = vadd.f32 %v841_v49, %v840_v47  ;;  %v1316_v53 = vpop.f32.mrf.mxu0 }
  0xe3   : > { %808 = vst.msk [vmem:[%s1540_s12 + $0x4] sm:$0xf] %vm806_vm2, %v1181_v48  ;;  %v944_v56 = vsel %vm839_vm3, %v912_v50, 0.0  ;;  %v1186_v57 = vpack.c.bf16 %v1316_v53, %v1316_v53  ;;  %v917_v8 = vmul.f32 %v1316_v53, %v1316_v53  ;;  %v851_v21 = vsel %vm839_vm3, %v1316_v53, 0.0 }
  0xe4   : > { %v844_v58 = vadd.f32 %v843_v51, %v842_v52  ;;  %v945_v59 = vadd.f32 %v944_v56, %v943_v54  ;;  %v567_v60 = vpop.f32.mrf.mxu0 }
  0xe5   : > { %813 = vst.msk [vmem:[%s1540_s12 + $0x18] sm:$0xf] %vm806_vm2, %v1186_v57  ;;  %v1184_v63 = vpack.c.bf16 %v567_v60, %v567_v60  ;;  %v915_v0 = vmul.f32 %v567_v60, %v567_v60  ;;  %v847_v6 = vsel %vm839_vm3, %v567_v60, 0.0  ;;  %v954_v22 = vsel %vm839_vm3, %v917_v8, 0.0 }
  0xe6   : > { %v947_v1 = vadd.f32 %v946_v61, %v945_v59  ;;  %v846_v3 = vadd.f32 %v845_v62, %v844_v58  ;;  %v1317_v4 = vpop.f32.mrf.mxu0 }
  0xe7   : > { %811 = vst.msk [vmem:[%s1540_s12 + $0x10] sm:$0xf] %vm806_vm2, %v1184_v63  ;;  %v1187_v7 = vpack.c.bf16 %v1317_v4, %v1317_v4  ;;  %v950_v14 = vsel %vm839_vm3, %v915_v0, 0.0  ;;  %v918_v23 = vmul.f32 %v1317_v4, %v1317_v4  ;;  %v853_v25 = vsel %vm839_vm3, %v1317_v4, 0.0 }
  0xe8   : > { %v848_v9 = vadd.f32 %v847_v6, %v846_v3  ;;  %v949_v10 = vadd.f32 %v948_v5, %v947_v1  ;;  %v570_v12 = vpop.f32.mrf.mxu0 }
  0xe9   : > { %814 = vst.msk [vmem:[%s1540_s12 + $0x1c] sm:$0xf] %vm806_vm2, %v1187_v7  ;;  %v1185_v15 = vpack.c.bf16 %v570_v12, %v570_v12  ;;  %v849_v16 = vsel %vm839_vm3, %v570_v12, 0.0  ;;  %v916_v17 = vmul.f32 %v570_v12, %v570_v12  ;;  %v956_v38 = vsel %vm839_vm3, %v918_v23, 0.0 }
  0xea   : > { %v951_v18 = vadd.f32 %v950_v14, %v949_v10  ;;  %v850_v19 = vadd.f32 %v849_v16, %v848_v9  ;;  %v1320_v20 = vpop.f32.mrf.mxu0 }
  0xeb   : > { %812 = vst.msk [vmem:[%s1540_s12 + $0x14] sm:$0xf] %vm806_vm2, %v1185_v15  ;;  %v952_v24 = vsel %vm839_vm3, %v916_v17, 0.0  ;;  %v1190_v26 = vpack.c.bf16 %v1320_v20, %v1320_v20  ;;  %v1571_v27 = vpop.f32.mrf.mxu1  ;;  %v921_v40 = vmul.f32 %v1320_v20, %v1320_v20  ;;  %v859_v53 = vsel %vm839_vm3, %v1320_v20, 0.0 }
  0xec   : > { %v852_v28 = vadd.f32 %v851_v21, %v850_v19  ;;  %v953_v29 = vadd.f32 %v952_v24, %v951_v18  ;;  %v583_v30 = vpop.f32.mrf.mxu0  ;;  %v1198_v13 = vpack.c.bf16 %v1571_v27, %v1571_v27 }
  0xed   : > { %817 = vst.msk [vmem:[%s1540_s12 + $0x28] sm:$0xf] %vm806_vm2, %v1190_v26  ;;  %v1188_v31 = vpack.c.bf16 %v583_v30, %v583_v30  ;;  %v919_v32 = vmul.f32 %v583_v30, %v583_v30  ;;  %v1579_v33 = vpop.f32.mrf.mxu1  ;;  %v855_v39 = vsel %vm839_vm3, %v583_v30, 0.0  ;;  %v962_v61 = vsel %vm839_vm3, %v921_v40, 0.0 }
  0xee   : > { %v955_v34 = vadd.f32 %v954_v22, %v953_v29  ;;  %v854_v35 = vadd.f32 %v853_v25, %v852_v28  ;;  %v1321_v36 = vpop.f32.mrf.mxu0  ;;  %825 = vst.msk [vmem:[%s1540_s12 + $0x48] sm:$0xf] %vm806_vm2, %v1198_v13  ;;  %v1196_v37 = vpack.c.bf16 %v1579_v33, %v1579_v33 }
  0xef   : > { %815 = vst.msk [vmem:[%s1540_s12 + $0x20] sm:$0xf] %vm806_vm2, %v1188_v31  ;;  %v1191_v2 = vpack.c.bf16 %v1321_v36, %v1321_v36  ;;  %v1589_v11 = vpop.f32.mrf.mxu1  ;;  %v958_v44 = vsel %vm839_vm3, %v919_v32, 0.0  ;;  %v922_v54 = vmul.f32 %v1321_v36, %v1321_v36  ;;  %v861_v62 = vsel %vm839_vm3, %v1321_v36, 0.0 }
  0xf0   : > { %v856_v41 = vadd.f32 %v855_v39, %v854_v35  ;;  %v957_v42 = vadd.f32 %v956_v38, %v955_v34  ;;  %v586_v43 = vpop.f32.mrf.mxu0  ;;  %823 = vst.msk [vmem:[%s1540_s12 + $0x40] sm:$0xf] %vm806_vm2, %v1196_v37  ;;  %v1199_v52 = vpack.c.bf16 %v1589_v11, %v1589_v11  ;;  %v927_v35 = vmul.f32 %v1579_v33, %v1579_v33 }
  0xf1   : > { %818 = vst.msk [vmem:[%s1540_s12 + $0x2c] sm:$0xf] %vm806_vm2, %v1191_v2  ;;  %v1189_v45 = vpack.c.bf16 %v586_v43, %v586_v43  ;;  %v857_v46 = vsel %vm839_vm3, %v586_v43, 0.0  ;;  %v920_v47 = vmul.f32 %v586_v43, %v586_v43  ;;  %v1597_v48 = vpop.f32.mrf.mxu1  ;;  %v964_v7 = vsel %vm839_vm3, %v922_v54, 0.0 }
  0xf2   : > { %v959_v49 = vadd.f32 %v958_v44, %v957_v42  ;;  %v858_v50 = vadd.f32 %v857_v46, %v856_v41  ;;  %v1324_v51 = vpop.f32.mrf.mxu0  ;;  %826 = vst.msk [vmem:[%s1540_s12 + $0x4c] sm:$0xf] %vm806_vm2, %v1199_v52  ;;  %v1197_v6 = vpack.c.bf16 %v1597_v48, %v1597_v48  ;;  %v871_v41 = vsel %vm839_vm3, %v1579_v33, 0.0 }
  0xf3   : > { %816 = vst.msk [vmem:[%s1540_s12 + $0x24] sm:$0xf] %vm806_vm2, %v1189_v45  ;;  %v960_v55 = vsel %vm839_vm3, %v920_v47, 0.0  ;;  %v1194_v56 = vpack.c.bf16 %v1324_v51, %v1324_v51  ;;  %v1605_v57 = vpop.f32.mrf.mxu1  ;;  %v925_v12 = vmul.f32 %v1324_v51, %v1324_v51  ;;  %v867_v28 = vsel %vm839_vm3, %v1324_v51, 0.0 }
  0xf4   : > { %v860_v58 = vadd.f32 %v859_v53, %v858_v50  ;;  %v961_v59 = vadd.f32 %v960_v55, %v959_v49  ;;  %v599_v60 = vpop.f32.mrf.mxu0  ;;  %824 = vst.msk [vmem:[%s1540_s12 + $0x44] sm:$0xf] %vm806_vm2, %v1197_v6  ;;  %v1202_v26 = vpack.c.bf16 %v1605_v57, %v1605_v57  ;;  %v928_v42 = vmul.f32 %v1597_v48, %v1597_v48 }
  0xf5   : > { %821 = vst.msk [vmem:[%s1540_s12 + $0x38] sm:$0xf] %vm806_vm2, %v1194_v56  ;;  %v1192_v63 = vpack.c.bf16 %v599_v60, %v599_v60  ;;  %v923_v0 = vmul.f32 %v599_v60, %v599_v60  ;;  %v1613_v1 = vpop.f32.mrf.mxu1  ;;  %v863_v8 = vsel %vm839_vm3, %v599_v60, 0.0  ;;  %v970_v32 = vsel %vm839_vm3, %v925_v12, 0.0 }
  0xf6   : > { %v963_v3 = vadd.f32 %v962_v61, %v961_v59  ;;  %v862_v4 = vadd.f32 %v861_v62, %v860_v58  ;;  %v1325_v5 = vpop.f32.mrf.mxu0  ;;  %v1200_v13 = vpack.c.bf16 %v1613_v1, %v1613_v1  ;;  %829 = vst.msk [vmem:[%s1540_s12 + $0x58] sm:$0xf] %vm806_vm2, %v1202_v26  ;;  %v929_v47 = vmul.f32 %v1571_v27, %v1571_v27 }
  0xf7   : > { %819 = vst.msk [vmem:[%s1540_s12 + $0x30] sm:$0xf] %vm806_vm2, %v1192_v63  ;;  %v1195_v9 = vpack.c.bf16 %v1325_v5, %v1325_v5  ;;  %v1621_v10 = vpop.f32.mrf.mxu1  ;;  %v966_v17 = vsel %vm839_vm3, %v923_v0, 0.0  ;;  %v926_v29 = vmul.f32 %v1325_v5, %v1325_v5  ;;  %v869_v34 = vsel %vm839_vm3, %v1325_v5, 0.0 }
  0xf8   : > { %v864_v14 = vadd.f32 %v863_v8, %v862_v4  ;;  %v965_v15 = vadd.f32 %v964_v7, %v963_v3  ;;  %v602_v16 = vpop.f32.mrf.mxu0  ;;  %827 = vst.msk [vmem:[%s1540_s12 + $0x50] sm:$0xf] %vm806_vm2, %v1200_v13  ;;  %v1203_v36 = vpack.c.bf16 %v1621_v10, %v1621_v10  ;;  %v974_v33 = vsel %vm839_vm3, %v927_v35, 0.0 }
  0xf9   : > { %822 = vst.msk [vmem:[%s1540_s12 + $0x3c] sm:$0xf] %vm806_vm2, %v1195_v9  ;;  %v1193_v18 = vpack.c.bf16 %v602_v16, %v602_v16  ;;  %v865_v19 = vsel %vm839_vm3, %v602_v16, 0.0  ;;  %v924_v20 = vmul.f32 %v602_v16, %v602_v16  ;;  %v1629_v21 = vpop.f32.mrf.mxu1  ;;  %v972_v40 = vsel %vm839_vm3, %v926_v29, 0.0 }
  0xfa   : > { %v967_v23 = vadd.f32 %v966_v17, %v965_v15  ;;  %v866_v24 = vadd.f32 %v865_v19, %v864_v14  ;;  %v1201_v2 = vpack.c.bf16 %v1629_v21, %v1629_v21  ;;  %830 = vst.msk [vmem:[%s1540_s12 + $0x5c] sm:$0xf] %vm806_vm2, %v1203_v36  ;;  %v873_v49 = vsel %vm839_vm3, %v1597_v48, 0.0 }
  0xfb   : > { %820 = vst.msk [vmem:[%s1540_s12 + $0x34] sm:$0xf] %vm806_vm2, %v1193_v18  ;;  %v968_v30 = vsel %vm839_vm3, %v924_v20, 0.0  ;;  %v1639_v22 = vpop.f32.mrf.mxu1  ;;  %v875_v55 = vsel %vm839_vm3, %v1571_v27, 0.0  ;;  %v930_v56 = vmul.f32 %v1589_v11, %v1589_v11  ;;  %v976_v48 = vsel %vm839_vm3, %v928_v42, 0.0 }
  0xfc   : > { %v868_v25 = vadd.f32 %v867_v28, %v866_v24  ;;  %v969_v31 = vadd.f32 %v968_v30, %v967_v23  ;;  %v1206_v43 = vpack.c.bf16 %v1639_v22, %v1639_v22  ;;  %828 = vst.msk [vmem:[%s1540_s12 + $0x54] sm:$0xf] %vm806_vm2, %v1201_v2  ;;  %v978_v62 = vsel %vm839_vm3, %v929_v47, 0.0 }
  0xfd   : > { %v1651_v37 = vpop.f32.mrf.mxu1  ;;  %v877_v27 = vsel %vm839_vm3, %v1589_v11, 0.0  ;;  %v931_v63 = vmul.f32 %v1613_v1, %v1613_v1  ;;  %v980_v7 = vsel %vm839_vm3, %v930_v56, 0.0  ;;  %v879_v8 = vsel %vm839_vm3, %v1613_v1, 0.0 }
  0xfe   : > { %v870_v38 = vadd.f32 %v869_v34, %v868_v25  ;;  %v971_v39 = vadd.f32 %v970_v32, %v969_v31  ;;  %833 = vst.msk [vmem:[%s1540_s12 + $0x68] sm:$0xf] %vm806_vm2, %v1206_v43  ;;  %v1204_v50 = vpack.c.bf16 %v1651_v37, %v1651_v37  ;;  %v932_v11 = vmul.f32 %v1629_v21, %v1629_v21 }
  0xff   : > { %v1664_v44 = vpop.f32.mrf.mxu1  ;;  %v933_v16 = vmul.f32 %v1605_v57, %v1605_v57  ;;  %v982_v17 = vsel %vm839_vm3, %v931_v63, 0.0  ;;  %v881_v1 = vsel %vm839_vm3, %v1629_v21, 0.0  ;;  %v883_v24 = vsel %vm839_vm3, %v1605_v57, 0.0 }
 0x100   : > { %v973_v45 = vadd.f32 %v972_v40, %v971_v39  ;;  %v872_v46 = vadd.f32 %v871_v41, %v870_v38  ;;  %v1207_v54 = vpack.c.bf16 %v1664_v44, %v1664_v44  ;;  %831 = vst.msk [vmem:[%s1540_s12 + $0x60] sm:$0xf] %vm806_vm2, %v1204_v50  ;;  %v934_v26 = vmul.f32 %v1621_v10, %v1621_v10 }
 0x101   : > { %v650_v51 = vpop.f32.mrf.mxu1  ;;  %v984_v28 = vsel %vm839_vm3, %v932_v11, 0.0  ;;  %v986_v21 = vsel %vm839_vm3, %v933_v16, 0.0  ;;  %v885_v13 = vsel %vm839_vm3, %v1621_v10, 0.0  ;;  %v935_v25 = vmul.f32 %v1651_v37, %v1651_v37 }
 0x102   : > { %v874_v52 = vadd.f32 %v873_v49, %v872_v46  ;;  %v975_v53 = vadd.f32 %v974_v33, %v973_v45  ;;  %v1205_v58 = vpack.c.bf16 %v650_v51, %v650_v51  ;;  %834 = vst.msk [vmem:[%s1540_s12 + $0x6c] sm:$0xf] %vm806_vm2, %v1207_v54  ;;  %v988_v57 = vsel %vm839_vm3, %v934_v26, 0.0 }
 0x103   : > { %v1686_v59 = vpop.f32.mrf.mxu1  ;;  %v887_v34 = vsel %vm839_vm3, %v1651_v37, 0.0  ;;  %v936_v35 = vmul.f32 %v650_v51, %v650_v51  ;;  %v937_v39 = vmul.f32 %v1639_v22, %v1639_v22  ;;  %v990_v2 = vsel %vm839_vm3, %v935_v25, 0.0 }
 0x104   : > { %v876_v60 = vadd.f32 %v875_v55, %v874_v52  ;;  %v977_v61 = vadd.f32 %v976_v48, %v975_v53  ;;  %832 = vst.msk [vmem:[%s1540_s12 + $0x64] sm:$0xf] %vm806_vm2, %v1205_v58  ;;  %v1210_v0 = vpack.c.bf16 %v1686_v59, %v1686_v59  ;;  %v889_v10 = vsel %vm839_vm3, %v650_v51, 0.0 }
 0x105   : > { %v663_v3 = vpop.f32.mrf.mxu1  ;;  %v891_v42 = vsel %vm839_vm3, %v1639_v22, 0.0  ;;  %v938_v43 = vmul.f32 %v1664_v44, %v1664_v44  ;;  %v992_v37 = vsel %vm839_vm3, %v936_v35, 0.0  ;;  %v994_v47 = vsel %vm839_vm3, %v937_v39, 0.0 }
 0x106   : > { %v979_v4 = vadd.f32 %v978_v62, %v977_v61  ;;  %v878_v5 = vadd.f32 %v877_v27, %v876_v60  ;;  %v1208_v6 = vpack.c.bf16 %v663_v3, %v663_v3  ;;  %837 = vst.msk [vmem:[%s1540_s12 + $0x78] sm:$0xf] %vm806_vm2, %v1210_v0  ;;  %v893_v33 = vsel %vm839_vm3, %v1664_v44, 0.0 }
 0x107   : > { %v1341_v9 = vpop.f32.mrf.mxu1  ;;  %v939_v49 = vmul.f32 %v663_v3, %v663_v3  ;;  %v996_v52 = vsel %vm839_vm3, %v938_v43, 0.0  ;;  %v895_v53 = vsel %vm839_vm3, %v663_v3, 0.0  ;;  %v941_v56 = vmul.f32 %v1686_v59, %v1686_v59 }
 0x108   : > { %v880_v12 = vadd.f32 %v879_v8, %v878_v5  ;;  %v981_v14 = vadd.f32 %v980_v7, %v979_v4  ;;  %835 = vst.msk [vmem:[%s1540_s12 + $0x70] sm:$0xf] %vm806_vm2, %v1208_v6  ;;  %v1211_v15 = vpack.c.bf16 %v1341_v9, %v1341_v9  ;;  %v899_v61 = vsel %vm839_vm3, %v1686_v59, 0.0 }
 0x109   : > { %v666_v18 = vpop.f32.mrf.mxu1  ;;  %v998_v48 = vsel %vm839_vm3, %v939_v49, 0.0  ;;  %v942_v62 = vmul.f32 %v1341_v9, %v1341_v9  ;;  %v1002_v3 = vsel %vm839_vm3, %v941_v56, 0.0  ;;  %v901_v4 = vsel %vm839_vm3, %v1341_v9, 0.0 }
 0x10a   : > { %v983_v19 = vadd.f32 %v982_v17, %v981_v14  ;;  %v882_v20 = vadd.f32 %v881_v1, %v880_v12  ;;  %838 = vst.msk [vmem:[%s1540_s12 + $0x7c] sm:$0xf] %vm806_vm2, %v1211_v15  ;;  %v1209_v23 = vpack.c.bf16 %v666_v18, %v666_v18  ;;  %v940_v22 = vmul.f32 %v666_v18, %v666_v18 }
 0x10b   : > { %v897_v58 = vsel %vm839_vm3, %v666_v18, 0.0  ;;  %v1004_v7 = vsel %vm839_vm3, %v942_v62, 0.0 }
 0x10c   : > { %v884_v29 = vadd.f32 %v883_v24, %v882_v20  ;;  %v985_v30 = vadd.f32 %v984_v28, %v983_v19  ;;  %836 = vst.msk [vmem:[%s1540_s12 + $0x74] sm:$0xf] %vm806_vm2, %v1209_v23  ;;  %v1000_v27 = vsel %vm839_vm3, %v940_v22, 0.0 }
 0x10e   : > { %v987_v31 = vadd.f32 %v986_v21, %v985_v30  ;;  %v886_v32 = vadd.f32 %v885_v13, %v884_v29 }
 0x110   : > { %v888_v36 = vadd.f32 %v887_v34, %v886_v32  ;;  %v989_v38 = vadd.f32 %v988_v57, %v987_v31 }
 0x112   : > { %v991_v40 = vadd.f32 %v990_v2, %v989_v38  ;;  %v890_v41 = vadd.f32 %v889_v10, %v888_v36 }
 0x114   : > { %v892_v45 = vadd.f32 %v891_v42, %v890_v41  ;;  %v993_v46 = vadd.f32 %v992_v37, %v991_v40 }
 0x116   : > { %v995_v50 = vadd.f32 %v994_v47, %v993_v46  ;;  %v894_v51 = vadd.f32 %v893_v33, %v892_v45 }
 0x118   : > { %v896_v54 = vadd.f32 %v895_v53, %v894_v51  ;;  %v997_v55 = vadd.f32 %v996_v52, %v995_v50 }
 0x11a   : > { %v999_v60 = vadd.f32 %v998_v48, %v997_v55  ;;  %v898_v44 = vadd.f32 %v897_v58, %v896_v54 }
 0x11c   : > { %v900_v63 = vadd.f32 %v899_v61, %v898_v44  ;;  %v1001_v0 = vadd.f32 %v1000_v27, %v999_v60 }
 0x11e   : > { %v902_v5 = vadd.f32 %v901_v4, %v900_v63  ;;  %v1003_v6 = vadd.f32 %v1002_v3, %v1001_v0 }
 0x120   : > { %v903_v8 = vrot.slane %v902_v5, 4  ;;  %v1005_v11 = vadd.f32 %v1004_v7, %v1003_v6 }
 0x122   : > { %v904_v12 = vadd.f32 %v903_v8, %v902_v5  ;;  %v1006_v14 = vrot.slane %v1005_v11, 4 }
 0x124   : > { %v905_v59 = vrot.slane %v904_v12, 2  ;;  %v1007_v15 = vadd.f32 %v1006_v14, %v1005_v11 }
 0x126   : > { %v906_v16 = vadd.f32 %v905_v59, %v904_v12  ;;  %v1008_v17 = vrot.slane %v1007_v15, 2 }
 0x128   : > { %v907_v1 = vrot.slane %v906_v16, 1  ;;  %v1009_v18 = vadd.f32 %v1008_v17, %v1007_v15 }
 0x12a   : > { %v908_v9 = vadd.f32 %v907_v1, %v906_v16  ;;  %v1010_v19 = vrot.slane %v1009_v18, 1 }
 0x12c   : > { %910 = vst.msk [vmem:[%s268_s15] sm:$0x1] %vm909_vm4, %v908_v9  ;;  %v1011_v20 = vadd.f32 %v1010_v19, %v1009_v18 }
 0x12e   : > { %1012 = vst.msk [vmem:[%s271_s18] sm:$0x1] %vm909_vm4, %v1011_v20 }
 0x12f PF: > { %s17_s21 = sadd.s32 1, %s1360_s21  }
 0x130   : > { %p14_p5 = scmp.ge.s32.totalorder %s17_s21, 4  }
 0x132   :  { %16 = sbr.rel (!%p14_p5) target bundleno = 1 (0x1), region = 90 }

// kernel: bottleneck_forward.5
= control target key start
LH: loop header
LB: loop body
LE: loop exit
PB: predicated region body
PF: predicated region fallthrough
CT: control target
= control target key end

     0   :  { %s3175_s27 = smov 0   ;;  %s3177_s28 = smov 0   ;;  %s4011_s0 = inlined_call_operand.vmem [shape: bf16[2,16,16,4], index: 0, kind: input, shape index: {}, may-alias: {0,1,2}]   ;;  %s4012_s1 = inlined_call_operand.vmem [shape: bf16[2,16,16,4], index: 1, kind: input, shape index: {}, may-alias: {0,1,2}]   ;;  %s4013_s2 = inlined_call_operand.vmem [shape: bf16[2,16,16,4], index: 2, kind: input, shape index: {}, may-alias: {0,1,2}]   ;;  %s4014_s3 = inlined_call_operand.vmem [shape: f32[1,4], index: 3, kind: input, shape index: {}]   ;;  %s4015_s4 = inlined_call_operand.vmem [shape: f32[1,4], index: 4, kind: input, shape index: {}]   ;;  %s4016_s5 = inlined_call_operand.vmem [shape: bf16[3,3,4,4], index: 5, kind: input, shape index: {}]   ;;  %s4017_s6 = inlined_call_operand.vmem [shape: bf16[2,16,16,4], index: 6, kind: output, shape index: {0}]   ;;  %s4018_s7 = inlined_call_operand.vmem [shape: f32[2,2,1,4], index: 7, kind: output, shape index: {1}]   ;;  %s4019_s8 = inlined_call_operand.vmem [shape: f32[2,2,1,4], index: 8, kind: output, shape index: {2}]  }
   0x1   :  { %s3179_s29 = smov 0   ;;  %s3181_s30 = smov 0  }
   0x2   :  { %s3183_s9 = smov 0  }
   0x3 LB: > { %s28_s10 = sadd.s32 1, %s3119_s29  ;;  %s31_s11 = sadd.s32 1, %s3123_s30  ;;  %s3127_s9 = sphi %s3183_s9, %s19_s9   ;;  %s3123_s30 = sphi %s3181_s30, %s4068_s30   ;;  %s3119_s29 = sphi %s3179_s29, %s4067_s29   ;;  %s3115_s28 = sphi %s3177_s28, %s4066_s28   ;;  %s3111_s27 = sphi %s3175_s27, %s4065_s27  }
   0x4   : > { %p29_p0 = scmp.ge.s32.totalorder %s28_s10, 2  ;;  %p2596_p1 = scmp.ge.s32.totalorder %s3127_s9, 1 }
   0x5   : > { %p357_p2 = scmp.lt.s32.totalorder %s3127_s9, 5 }
   0x6   : > { %s4070_s10 = smov (%p29_p0, %s28_s10), 0  ;;  %s4072_s11 = smov (!%p29_p0, %s31_s11), %s3123_s30 }
   0x7   : > { %p358_p3 = pnand %p2596_p1, %p357_p2  ;;  %p33_p4 = scmp.ge.s32.totalorder %s4072_s11, 2 }
   0x9   : > { %s4074_s11 = smov (%p33_p4, %s4072_s11), 0  ;;  %361 = sbr.rel (%p358_p3) target bundleno = 413 (0x19d), region = 44 }
   0xe   : > { %v2630_v0 = vld [vmem:[%s4016_s5 + $0x2] sm:$0x3]  ;;  %vm951_vm0 = vcmask 1041408   ;;  %s3211_s14 = sshll.u32 %s3111_s27, 3  ;;  %p442_p5 = scmp.lt.s32.totalorder %s3115_s28, 1  ;;  %vm512_vm1 = vcmask 31744  }
   0xf   : > { %3039 = vmatprep.subr.msk.bf16.mxu1 %vm951_vm0, %v2630_v0  ;;  %v953_v1 = vsel %vm951_vm0, %v2630_v0, 0  ;;  %p444_p6 = scmp.lt.s32.totalorder %s3211_s14, 15  ;;  %3038 = vmatprep.subr.msk.bf16.mxu0 %vm951_vm0, %v2630_v0  ;;  %v924_v2 = vld [vmem:[%s4016_s5] sm:$0x3]  ;;  %v2647_v3 = vld [vmem:[%s4016_s5 + $0x4] sm:$0x3] }
  0x10   : > { %3037 = vmatpush3.bf16.msra.mxu1 %v953_v1  ;;  %s4076_s28 = smov (!%p442_p5, %s3115_s28), 1  ;;  %2875 = vmatpush3.bf16.msra.mxu0 %v953_v1  ;;  %v3129_v4 = vmov 0.0   ;;  %s2602_s21 = sadd.s32 4294967295, %s3211_s14  ;;  %v3261_v5 = vld [vmem:[%s4016_s5 + $0x6] sm:$0x3]  ;;  %v3283_v8 = vsel %vm951_vm0, %v924_v2, 0 }
  0x11   : > { %s3226_s19 = scalar_select %p444_p6, %s3211_s14, 15  ;;  %3040 = vmatprep.subr.msk.bf16.mxu1 %vm951_vm0, %v924_v2  ;;  %513 = vst.msk [vmem:[#allocation2] sm:$0xff] %vm512_vm1, %v3129_v4  ;;  %514 = vst.msk [vmem:[#allocation2 + $0x20] sm:$0xff] %vm512_vm1, %v3129_v4  ;;  %3041 = vmatprep.subr.msk.bf16.mxu0 %vm951_vm0, %v2647_v3  ;;  %v3266_v6 = vld [vmem:[%s4016_s5 + $0x8] sm:$0x3]  ;;  %v3286_v9 = vsel %vm951_vm0, %v2647_v3, 0 }
  0x12   : > { %515 = vst.msk [vmem:[#allocation2 + $0x40] sm:$0xff] %vm512_vm1, %v3129_v4  ;;  %516 = vst.msk [vmem:[#allocation2 + $0x60] sm:$0xff] %vm512_vm1, %v3129_v4  ;;  %s3251_s20 = sshll.u32 %s4076_s28, 5  ;;  %p454_p7 = scmp.gt.s32.totalorder %s2602_s21, 0  ;;  %v3280_v7 = vld [vmem:[%s4014_s3] ss:$0 sm:$0xff] }
  0x13   : > { %517 = vst.msk [vmem:[#allocation2 + $0x80] sm:$0xff] %vm512_vm1, %v3129_v4  ;;  %518 = vst.msk [vmem:[#allocation2 + $0xa0] sm:$0xff] %vm512_vm1, %v3129_v4  ;;  %s2598_s22 = sshll.u32 %s3226_s19, 1  ;;  %p2603_p8 = scmp.lt.s32.totalorder %s2602_s21, 15  ;;  %v3293_v13 = vsel %vm951_vm0, %v3261_v5, 0  ;;  %v3297_v14 = vsel %vm951_vm0, %v3266_v6, 0 }
  0x14   : > { %519 = vst.msk [vmem:[#allocation2 + $0xc0] sm:$0xff] %vm512_vm1, %v3129_v4  ;;  %520 = vst.msk [vmem:[#allocation2 + $0xe0] sm:$0xff] %vm512_vm1, %v3129_v4  ;;  %s3256_s23 = sadd.s32 %s3251_s20, %s2598_s22  ;;  %p644_p9 = scmp.gt.s32.totalorder %s3111_s27, 0  ;;  %v3307_v20 = vld [vmem:[%s4015_s4] ss:$0 sm:$0xff]  ;;  %vm2253_vm4 = vcmask 27648  }
  0x15   : > { %521 = vst.msk [vmem:[#allocation2 + $0x100] sm:$0xff] %vm512_vm1, %v3129_v4  ;;  %522 = vst.msk [vmem:[#allocation2 + $0x120] sm:$0xff] %vm512_vm1, %v3129_v4  ;;  %s2600_s13 = sshll.u32 %s3256_s23, 2  ;;  %vm787_vm2 = vsmask.f32 4352  ;;  %p499_p11 = scmp.lt.s32.totalorder %s3111_s27, 1 }
  0x16   : > { %523 = vst.msk [vmem:[#allocation2 + $0x18] sm:$0xff] %vm512_vm1, %v3129_v4  ;;  %524 = vst.msk [vmem:[#allocation2 + $0x38] sm:$0xff] %vm512_vm1, %v3129_v4  ;;  %s3275_s17 = scalar_lea.vmem %s4011_s0, %s2600_s13  ;;  %vm1176_vm3 = vsmask.f32 7424  ;;  %s2622_s23 = sshll.u32 %s4076_s28, 1  ;;  %vm2307_vm5 = vcmask 24576  }
  0x17   : > { %525 = vst.msk [vmem:[#allocation2 + $0x58] sm:$0xff] %vm512_vm1, %v3129_v4  ;;  %526 = vst.msk [vmem:[#allocation2 + $0x78] sm:$0xff] %vm512_vm1, %v3129_v4  ;;  %v2788_v10 = vld [vmem:[%s3275_s17 + $0x18] sm:$0xff]   ;;  %v2789_v11 = vld [vmem:[%s3275_s17 + $0x20] sm:$0xff]   ;;  %s455_s22 = scalar_select %p454_p7, %s2602_s21, 0 }
  0x18   : > { %527 = vst.msk [vmem:[#allocation2 + $0x98] sm:$0xff] %vm512_vm1, %v3129_v4  ;;  %528 = vst.msk [vmem:[#allocation2 + $0xb8] sm:$0xff] %vm512_vm1, %v3129_v4  ;;  %v2747_v12 = vld [vmem:[%s3275_s17] sm:$0xff]   ;;  %v2760_v15 = vunpack.c.l.bf16 %v2788_v10  ;;  %v2761_v16 = vunpack.c.h.bf16 %v2788_v10  ;;  %v2764_v17 = vunpack.c.l.bf16 %v2789_v11  ;;  %v2765_v18 = vunpack.c.h.bf16 %v2789_v11  ;;  %s3301_s24 = scalar_select %p644_p9, 1.0, 0.0  ;;  %v2790_v19 = vld [vmem:[%s3275_s17 + $0x28] sm:$0xff]  }
  0x19   : > { %529 = vst.msk [vmem:[#allocation2 + $0xd8] sm:$0xff] %vm512_vm1, %v3129_v4  ;;  %530 = vst.msk [vmem:[#allocation2 + $0xf8] sm:$0xff] %vm512_vm1, %v3129_v4  ;;  %s4078_s22 = smov (!%p2603_p8, %s455_s22), 15  ;;  %v2748_v21 = vunpack.c.l.bf16 %v2747_v12  ;;  %v2749_v22 = vunpack.c.h.bf16 %v2747_v12  ;;  %v2768_v23 = vunpack.c.l.bf16 %v2790_v19  ;;  %v2769_v24 = vunpack.c.h.bf16 %v2790_v19  ;;  %v2791_v41 = vld [vmem:[%s3275_s17 + $0x30] sm:$0xff]   ;;  %v2786_v46 = vld [vmem:[%s3275_s17 + $0x8] sm:$0xff]   ;;  %s4084_s27 = smov (!%p499_p11, %s3111_s27), 1 }
  0x1a   : > { %531 = vst.msk [vmem:[#allocation2 + $0x118] sm:$0xff] %vm512_vm1, %v3129_v4  ;;  %532 = vst.msk [vmem:[#allocation2 + $0x138] sm:$0xff] %vm512_vm1, %v3129_v4  ;;  %v578_v25 = vmul.f32 %v2760_v15, %v3280_v7  ;;  %v579_v26 = vmul.f32 %v2761_v16, %v3280_v7  ;;  %v580_v27 = vmul.f32 %v2764_v17, %v3280_v7  ;;  %s2608_s12 = sshll.u32 %s4078_s22, 1  ;;  %v672_v29 = vstv %s3301_s24  ;;  %v2787_v47 = vld [vmem:[%s3275_s17 + $0x10] sm:$0xff]   ;;  %v711_v16 = vld [vmem:[#allocation2 + $0x20] sm:$0xff]  ;;  %s470_s22 = sadd.s32 8, %s3211_s14 }
  0x1b   : > { %v581_v28 = vmul.f32 %v2765_v18, %v3280_v7  ;;  %v572_v30 = vmul.f32 %v2748_v21, %v3280_v7  ;;  %v573_v31 = vmul.f32 %v2749_v22, %v3280_v7  ;;  %v582_v32 = vmul.f32 %v2768_v23, %v3280_v7  ;;  %s462_s21 = sadd.s32 %s2608_s12, %s3251_s20  ;;  %p3448_p10 = scmp.lt.s32.totalorder %s470_s22, 15 }
  0x1c   : > { %v601_v33 = vadd.f32 %v3307_v20, %v578_v25  ;;  %v602_v34 = vadd.f32 %v3307_v20, %v579_v26  ;;  %v603_v35 = vadd.f32 %v3307_v20, %v580_v27  ;;  %s2610_s15 = sshll.u32 %s462_s21, 2  ;;  %v583_v39 = vmul.f32 %v2769_v24, %v3280_v7 }
  0x1d   : > { %v604_v36 = vadd.f32 %v3307_v20, %v581_v28  ;;  %v595_v37 = vadd.f32 %v3307_v20, %v572_v30  ;;  %v596_v38 = vadd.f32 %v3307_v20, %v573_v31  ;;  %v605_v40 = vadd.f32 %v3307_v20, %v582_v32  ;;  %s464_s19 = scalar_lea.vmem %s4012_s1, %s2610_s15  ;;  %v710_v22 = vld [vmem:[#allocation2 + $0x18] sm:$0xff]  ;;  %s4080_s22 = smov (!%p3448_p10, %s470_s22), 15 }
  0x1e   : > { %v617_v42 = vmax.f32 %v601_v33, 0.0  ;;  %v618_v43 = vmax.f32 %v602_v34, 0.0  ;;  %v619_v44 = vmax.f32 %v603_v35, 0.0  ;;  %v2779_v48 = vld [vmem:[%s464_s19] sm:$0xff]   ;;  %v606_v51 = vadd.f32 %v3307_v20, %v583_v39  ;;  %v714_v27 = vld [vmem:[#allocation2 + $0x38] sm:$0xff]  ;;  %s4082_s22 = smov (!%p3448_p10, %s4080_s22), 15 }
  0x1f   : > { %v620_v45 = vmax.f32 %v604_v36, 0.0  ;;  %v611_v49 = vmax.f32 %v595_v37, 0.0  ;;  %v612_v50 = vmax.f32 %v596_v38, 0.0  ;;  %v621_v52 = vmax.f32 %v605_v40, 0.0  ;;  %v718_v28 = vld [vmem:[#allocation2 + $0x58] sm:$0xff]  ;;  %s3524_s21 = sshll.u32 %s4082_s22, 1 }
  0x20   : > { %634 = vst.msk [vmem:[#allocation2 + $0x88] sm:$0xff] %vm512_vm1, %v617_v42  ;;  %635 = vst.msk [vmem:[#allocation2 + $0x90] sm:$0xff] %vm512_vm1, %v618_v43  ;;  %v2780_v53 = vunpack.c.l.bf16 %v2779_v48  ;;  %v2781_v54 = vunpack.c.h.bf16 %v2779_v48  ;;  %v2772_v55 = vunpack.c.l.bf16 %v2791_v41  ;;  %v2773_v56 = vunpack.c.h.bf16 %v2791_v41  ;;  %s479_s15 = sadd.s32 %s3524_s21, %s3251_s20  ;;  %s3880_s21 = scalar_lea.vmem %s4017_s6, %s2600_s13 }
  0x21   : > { %636 = vst.msk [vmem:[#allocation2 + $0xa8] sm:$0xff] %vm512_vm1, %v619_v44  ;;  %637 = vst.msk [vmem:[#allocation2 + $0xb0] sm:$0xff] %vm512_vm1, %v620_v45  ;;  %v622_v57 = vmax.f32 %v606_v51, 0.0  ;;  %v2752_v58 = vunpack.c.l.bf16 %v2786_v46  ;;  %v2753_v59 = vunpack.c.h.bf16 %v2786_v46  ;;  %v2756_v60 = vunpack.c.l.bf16 %v2787_v47  ;;  %s3548_s20 = sshll.u32 %s479_s15, 2  ;;  %s502_s13 = sadd.s32 %s2622_s23, %s4084_s27 }
  0x22   : > { %628 = vst.msk [vmem:[#allocation2 + $0x28] sm:$0xff] %vm512_vm1, %v611_v49  ;;  %629 = vst.msk [vmem:[#allocation2 + $0x30] sm:$0xff] %vm512_vm1, %v612_v50  ;;  %v659_v61 = vmul.f32 %v2780_v53, %v3280_v7  ;;  %v660_v62 = vmul.f32 %v2781_v54, %v3280_v7  ;;  %v584_v63 = vmul.f32 %v2772_v55, %v3280_v7  ;;  %v2757_v3 = vunpack.c.h.bf16 %v2787_v47  ;;  %s481_s19 = scalar_lea.vmem %s4013_s2, %s3548_s20  ;;  %s503_s16 = scalar_lea.vmem %s4018_s7, %s502_s13 }
  0x23   : > { %638 = vst.msk [vmem:[#allocation2 + $0xc8] sm:$0xff] %vm512_vm1, %v621_v52  ;;  %v585_v0 = vmul.f32 %v2773_v56, %v3280_v7  ;;  %639 = vst.msk [vmem:[#allocation2 + $0xd0] sm:$0xff] %vm512_vm1, %v622_v57  ;;  %v574_v1 = vmul.f32 %v2752_v58, %v3280_v7  ;;  %v575_v2 = vmul.f32 %v2753_v59, %v3280_v7  ;;  %v3391_v57 = vld [vmem:[#allocation2 + $0x78] sm:$0xff] }
  0x24   : > { %v576_v4 = vmul.f32 %v2756_v60, %v3280_v7  ;;  %v668_v10 = vadd.f32 %v3307_v20, %v659_v61  ;;  %v669_v11 = vadd.f32 %v3307_v20, %v660_v62  ;;  %v607_v12 = vadd.f32 %v3307_v20, %v584_v63  ;;  %v723_v62 = vld [vmem:[#allocation2 + $0x80] sm:$0xff] }
  0x25   : > { %v608_v15 = vadd.f32 %v3307_v20, %v585_v0  ;;  %v597_v17 = vadd.f32 %v3307_v20, %v574_v1  ;;  %v598_v18 = vadd.f32 %v3307_v20, %v575_v2  ;;  %v577_v19 = vmul.f32 %v2757_v3, %v3280_v7 }
  0x26   : > { %v599_v21 = vadd.f32 %v3307_v20, %v576_v4  ;;  %v670_v23 = vmax.f32 %v668_v10, 0.0  ;;  %v671_v24 = vmax.f32 %v669_v11, 0.0  ;;  %v623_v25 = vmax.f32 %v607_v12, 0.0  ;;  %v715_v4 = vld [vmem:[#allocation2 + $0x40] sm:$0xff] }
  0x27   : > { %v624_v26 = vmax.f32 %v608_v15, 0.0  ;;  %v724_v30 = vld [vmem:[#allocation2 + $0x88] sm:$0xff]  ;;  %v725_v31 = vld [vmem:[#allocation2 + $0x90] sm:$0xff]  ;;  %v613_v33 = vmax.f32 %v597_v17, 0.0  ;;  %v614_v34 = vmax.f32 %v598_v18, 0.0  ;;  %v600_v35 = vadd.f32 %v3307_v20, %v577_v19  ;;  %v707_v12 = vld [vmem:[#allocation2] sm:$0xff] }
  0x28   : > { %v3357_v32 = vld [vmem:[#allocation2 + $0xa8] sm:$0xff]  ;;  %v615_v36 = vmax.f32 %v599_v21, 0.0  ;;  %v3360_v37 = vpack.c.bf16 %v725_v31, %v724_v30  ;;  %v3362_v38 = vld [vmem:[#allocation2 + $0xb0] sm:$0xff]  ;;  %v673_v39 = vmul.f32 %v672_v29, %v670_v23  ;;  %v674_v40 = vmul.f32 %v672_v29, %v671_v24  ;;  %640 = vst.msk [vmem:[#allocation2 + $0xe8] sm:$0xff] %vm512_vm1, %v623_v25 }
  0x29   : > { %v712_v41 = vld [vmem:[#allocation2 + $0x28] sm:$0xff]  ;;  %v713_v42 = vld [vmem:[#allocation2 + $0x30] sm:$0xff]  ;;  %641 = vst.msk [vmem:[#allocation2 + $0xf0] sm:$0xff] %vm512_vm1, %v624_v26  ;;  %v777_v43 = vpack.c.bf16 %v710_v22, %v710_v22  ;;  %v3372_v44 = vpack.c.bf16 %v3362_v38, %v3357_v32  ;;  %630 = vst.msk [vmem:[#allocation2 + $0x48] sm:$0xff] %vm512_vm1, %v613_v33  ;;  %v616_v49 = vmax.f32 %v600_v35, 0.0  ;;  %v778_v51 = vpack.c.bf16 %v714_v27, %v714_v27 }
  0x2a   : > { %v749_v45 = vpack.c.bf16 %v712_v41, %v711_v16  ;;  %v750_v46 = vpack.c.bf16 %v713_v42, %v713_v42  ;;  %v3374_v47 = vpack.c.bf16 %v713_v42, %v712_v41  ;;  %v3376_v48 = vld [vmem:[#allocation2 + $0xc8] sm:$0xff]  ;;  %631 = vst.msk [vmem:[#allocation2 + $0x50] sm:$0xff] %vm512_vm1, %v614_v34  ;;  %632 = vst.msk [vmem:[#allocation2 + $0x68] sm:$0xff] %vm512_vm1, %v615_v36  ;;  %2884 = vmatprep.mubr.msk.bf16.mxu1 %vm512_vm1, %v3360_v37  ;;  %v3385_v29 = vld [vmem:[#allocation2 + $0xd0] sm:$0xff] }
  0x2b   : > { %675 = vst.msk [vmem:[#allocation2 + $0x8] sm:$0xff] %vm512_vm1, %v673_v39  ;;  %676 = vst.msk [vmem:[#allocation2 + $0x10] sm:$0xff] %vm512_vm1, %v674_v40  ;;  %v3387_v50 = vshll.u32 %v777_v43, 16  ;;  %v779_v52 = vpack.c.bf16 %v718_v28, %v718_v28  ;;  %2885 = vmatmul.mubr.msk.bf16.vlgmr.msra.gmra.mxu1 %vm512_vm1, %v3372_v44  ;;  %v3396_v58 = vpack.c.bf16 %v3385_v29, %v3376_v48  ;;  %v1195_v3 = vshll.u32 %v778_v51, 16 }
  0x2c   : > { %v806_v53 = vshrl.u32 %v749_v45, 16  ;;  %v809_v54 = vshll.u32 %v749_v45, 16  ;;  %v814_v55 = vshrl.u32 %v750_v46, 16  ;;  %v817_v56 = vshll.u32 %v750_v46, 16  ;;  %2893 = vmatpush3.bf16.msra.mxu1 %v3283_v8  ;;  %633 = vst.msk [vmem:[#allocation2 + $0x70] sm:$0xff] %vm512_vm1, %v616_v49 }
  0x2d   : > { %v1186_v59 = vrot.slane %v3387_v50, 1  ;;  %v1188_v60 = vshrl.u32 %v3374_v47, 16  ;;  %v1190_v61 = vshll.u32 %v3374_v47, 16  ;;  %3042 = vmatprep.subr.msk.bf16.mxu1 %vm951_vm0, %v3261_v5  ;;  %2888 = vmatprep.mubr.msk.bf16.mxu1 %vm512_vm1, %v3396_v58  ;;  %v3406_v10 = vshll.u32 %v779_v52, 16  ;;  %v3466_v50 = vld [vmem:[%s4016_s5 + $0xa] sm:$0x3] }
  0x2e   : > { %v808_v63 = vrot.slane %v806_v53, 3  ;;  %v811_v0 = vrot.slane %v809_v54, 4  ;;  %v816_v1 = vrot.slane %v814_v55, 3  ;;  %v819_v2 = vrot.slane %v817_v56, 4 }
  0x2f   : > { %v1192_v8 = vrot.slane %v1190_v61, 1  ;;  %v780_v11 = vpack.c.bf16 %v3391_v57, %v3391_v57  ;;  %v3410_v15 = vld [vmem:[#allocation2 + $0xe8] sm:$0xff]  ;;  %v3414_v19 = vpack.c.bf16 %v724_v30, %v723_v62  ;;  %v3416_v5 = vpack.c.bf16 %v725_v31, %v725_v31  ;;  %v719_v62 = vld [vmem:[#allocation2 + $0x60] sm:$0xff] }
  0x30   : > { %v3412_v16 = vld [vmem:[#allocation2 + $0xf0] sm:$0xff]  ;;  %v812_v17 = vor.u32 %v811_v0, %v808_v63  ;;  %v820_v18 = vor.u32 %v819_v2, %v816_v1  ;;  %v716_v22 = vld [vmem:[#allocation2 + $0x48] sm:$0xff]  ;;  %v1197_v25 = vrot.slane %v1195_v3, 1  ;;  %v1208_v26 = vrot.slane %v3406_v10, 1 }
  0x31   : > { %v3420_v21 = vpack.c.bf16 %v3412_v16, %v3410_v15  ;;  %v717_v23 = vld [vmem:[#allocation2 + $0x50] sm:$0xff]  ;;  %v1193_v24 = vor.u32 %v1192_v8, %v1188_v60  ;;  %v751_v30 = vpack.c.bf16 %v716_v22, %v715_v4  ;;  %v720_v40 = vld [vmem:[#allocation2 + $0x68] sm:$0xff] }
  0x32   : > { %v708_v27 = vld [vmem:[#allocation2 + $0x8] sm:$0xff]  ;;  %v709_v28 = vld [vmem:[#allocation2 + $0x10] sm:$0xff]  ;;  %v3423_v33 = vpack.c.bf16 %v717_v23, %v716_v22  ;;  %v3426_v34 = vsel %vm787_vm2, %v812_v17, %v820_v18  ;;  %v752_v31 = vpack.c.bf16 %v717_v23, %v717_v23  ;;  %v753_v22 = vpack.c.bf16 %v720_v40, %v719_v62 }
  0x33   : > { %v747_v35 = vpack.c.bf16 %v708_v27, %v707_v12  ;;  %v748_v36 = vpack.c.bf16 %v709_v28, %v709_v28  ;;  %v767_v39 = vpack.c.bf16 %v709_v28, %v708_v27  ;;  %v3429_v41 = vsel %vm1176_vm3, %v1193_v24, %v1197_v25  ;;  %2889 = vmatmul.mubr.msk.bf16.gmra.mxu1 %vm512_vm1, %v3420_v21  ;;  %v721_v42 = vld [vmem:[#allocation2 + $0x70] sm:$0xff] }
  0x34   : > { %v823_v43 = vshrl.u32 %v751_v30, 16  ;;  %v826_v45 = vshll.u32 %v751_v30, 16  ;;  %v831_v46 = vshrl.u32 %v752_v31, 16  ;;  %v834_v49 = vshll.u32 %v752_v31, 16 }
  0x35   : > { %v789_v51 = vshrl.u32 %v747_v35, 16  ;;  %v792_v52 = vshll.u32 %v747_v35, 16  ;;  %v797_v53 = vshrl.u32 %v748_v36, 16  ;;  %v800_v54 = vshll.u32 %v748_v36, 16  ;;  %2876 = vmatprep.mubr.msk.bf16.mxu0 %vm512_vm1, %v767_v39 }
  0x36   : > { %v1177_v55 = vshrl.u32 %v767_v39, 16  ;;  %v1179_v56 = vshll.u32 %v767_v39, 16  ;;  %2877 = vmatmul.mubr.msk.bf16.vlgmr.msra.gmra.mxu0 %vm512_vm1, %v3374_v47  ;;  %v3436_v60 = vpack.c.bf16 %v721_v42, %v720_v40  ;;  %v825_v61 = vrot.slane %v823_v43, 3 }
  0x37   : > { %v791_v63 = vrot.slane %v789_v51, 3  ;;  %v794_v0 = vrot.slane %v792_v52, 4  ;;  %v799_v1 = vrot.slane %v797_v53, 3  ;;  %v802_v2 = vrot.slane %v800_v54, 4  ;;  %2911 = vmatpush3.bf16.msra.mxu0 %v3286_v9  ;;  %2880 = vmatprep.mubr.msk.bf16.mxu0 %vm512_vm1, %v3423_v33 }
  0x38   : > { %v1181_v8 = vrot.slane %v1179_v56, 1  ;;  %3043 = vmatprep.subr.msk.bf16.mxu0 %vm951_vm0, %v3266_v6  ;;  %v828_v3 = vrot.slane %v826_v45, 4  ;;  %v833_v4 = vrot.slane %v831_v46, 3  ;;  %v836_v12 = vrot.slane %v834_v49, 4  ;;  %v727_v56 = vld [vmem:[#allocation2 + $0xa0] sm:$0xff] }
  0x39   : > { %v795_v17 = vor.u32 %v794_v0, %v791_v63  ;;  %v803_v18 = vor.u32 %v802_v2, %v799_v1  ;;  %v754_v23 = vpack.c.bf16 %v721_v42, %v721_v42  ;;  %v1199_v9 = vshrl.u32 %v3423_v33, 16  ;;  %v726_v63 = vld [vmem:[#allocation2 + $0x98] sm:$0xff] }
  0x3a   : > { %v1182_v24 = vor.u32 %v1181_v8, %v1177_v55  ;;  %v829_v25 = vor.u32 %v828_v3, %v825_v61  ;;  %v837_v27 = vor.u32 %v836_v12, %v833_v4  ;;  %v840_v30 = vshrl.u32 %v753_v22, 16 }
  0x3b   : > { %v804_v28 = vsel %vm787_vm2, %v795_v17, %v803_v18  ;;  %v843_v31 = vshll.u32 %v753_v22, 16  ;;  %v848_v35 = vshrl.u32 %v754_v23, 16  ;;  %v851_v39 = vshll.u32 %v754_v23, 16 }
  0x3c   : > { %2894 = vmatprep.mubr.msk.bf16.mxu1 %vm512_vm1, %v804_v28  ;;  %v1187_v6 = vsel %vm1176_vm3, %v1182_v24, %v1186_v59  ;;  %v3457_v36 = vsel %vm787_vm2, %v829_v25, %v837_v27  ;;  %v1201_v40 = vshll.u32 %v3423_v33, 16  ;;  %v842_v42 = vrot.slane %v840_v30, 3  ;;  %v730_v24 = vld [vmem:[#allocation2 + $0xb8] sm:$0xff] }
  0x3d   : > { %2895 = vmatmul.mubr.msk.bf16.vlgmr.msra.gmra.mxu1 %vm512_vm1, %v3426_v34  ;;  %v845_v43 = vrot.slane %v843_v31, 4  ;;  %v850_v45 = vrot.slane %v848_v35, 3  ;;  %v1210_v46 = vshrl.u32 %v3436_v60, 16  ;;  %v853_v59 = vrot.slane %v851_v39, 4  ;;  %v731_v39 = vld [vmem:[#allocation2 + $0xc0] sm:$0xff] }
  0x3e   : > { %2881 = vmatmul.mubr.msk.bf16.gmra.mxu0 %vm512_vm1, %v3436_v60  ;;  %2929 = vmatpush3.bf16.msra.mxu1 %v3293_v13  ;;  %v1203_v49 = vrot.slane %v1201_v40, 1  ;;  %v1212_v51 = vshll.u32 %v3436_v60, 16  ;;  %v1217_v52 = vshll.u32 %v780_v11, 16  ;;  %v857_v54 = vshrl.u32 %v3414_v19, 16 }
  0x3f   : > { %2912 = vmatprep.mubr.msk.bf16.mxu0 %vm512_vm1, %v1187_v6  ;;  %2898 = vmatprep.mubr.msk.bf16.mxu1 %vm512_vm1, %v3457_v36  ;;  %v846_v53 = vor.u32 %v845_v43, %v842_v42  ;;  %v860_v55 = vshll.u32 %v3414_v19, 16  ;;  %v865_v13 = vshrl.u32 %v3416_v5, 16  ;;  %v854_v61 = vor.u32 %v853_v59, %v850_v45 }
  0x40   : > { %v1204_v57 = vor.u32 %v1203_v49, %v1199_v9  ;;  %v1214_v11 = vrot.slane %v1212_v51, 1  ;;  %v1219_v62 = vrot.slane %v1217_v52, 1  ;;  %3044 = vmatprep.subr.msk.bf16.mxu1 %vm951_vm0, %v3466_v50  ;;  %v859_v0 = vrot.slane %v857_v54, 3 }
  0x41   : > { %v862_v1 = vrot.slane %v860_v55, 4  ;;  %v867_v19 = vrot.slane %v865_v13, 3  ;;  %v868_v2 = vshll.u32 %v3416_v5, 16  ;;  %v3491_v8 = vsel %vm787_vm2, %v846_v53, %v854_v61 }
  0x42   : > { %v3496_v3 = vsel %vm1176_vm3, %v1204_v57, %v1208_v26  ;;  %v1215_v4 = vor.u32 %v1214_v11, %v1210_v46  ;;  %v757_v12 = vpack.c.bf16 %v3357_v32, %v727_v56  ;;  %v758_v22 = vpack.c.bf16 %v3362_v38, %v3362_v38  ;;  %v3514_v38 = vld [vmem:[%s4016_s5 + $0xc] sm:$0x3]  ;;  %v735_v46 = vld [vmem:[#allocation2 + $0xe0] sm:$0xff] }
  0x43   : > { %v863_v17 = vor.u32 %v862_v1, %v859_v0  ;;  %v870_v18 = vrot.slane %v868_v2, 4  ;;  %v781_v23 = vpack.c.bf16 %v726_v63, %v726_v63  ;;  %v1221_v26 = vshrl.u32 %v3360_v37, 16 }
  0x44   : > { %v3505_v5 = vsel %vm1176_vm3, %v1215_v4, %v1219_v62  ;;  %v874_v25 = vshrl.u32 %v757_v12, 16  ;;  %v877_v10 = vshll.u32 %v757_v12, 16  ;;  %v882_v27 = vshrl.u32 %v758_v22, 16  ;;  %v734_v12 = vld [vmem:[#allocation2 + $0xd8] sm:$0xff] }
  0x45   : > { %2899 = vmatmul.mubr.msk.bf16.gmra.mxu1 %vm512_vm1, %v3491_v8  ;;  %v871_v32 = vor.u32 %v870_v18, %v867_v19  ;;  %v885_v9 = vshll.u32 %v758_v22, 16  ;;  %v1223_v28 = vshll.u32 %v3360_v37, 16  ;;  %v1228_v35 = vshll.u32 %v781_v23, 16 }
  0x46   : > { %2913 = vmatmul.mubr.msk.bf16.vlgmr.msra.gmra.mxu0 %vm512_vm1, %v3429_v41  ;;  %v876_v30 = vrot.slane %v874_v25, 3  ;;  %v879_v31 = vrot.slane %v877_v10, 4  ;;  %v782_v6 = vpack.c.bf16 %v730_v24, %v730_v24  ;;  %v884_v42 = vrot.slane %v882_v27, 3  ;;  %v738_v24 = vld [vmem:[#allocation2 + $0xf8] sm:$0xff] }
  0x47   : > { %2947 = vmatpush3.bf16.msra.mxu0 %v3297_v14  ;;  %2916 = vmatprep.mubr.msk.bf16.mxu0 %vm512_vm1, %v3496_v3  ;;  %v3522_v40 = vsel %vm787_vm2, %v863_v17, %v871_v32  ;;  %v887_v43 = vrot.slane %v885_v9, 4  ;;  %v1225_v45 = vrot.slane %v1223_v28, 1  ;;  %v1230_v49 = vrot.slane %v1228_v35, 1 }
  0x48   : > { %2902 = vmatprep.mubr.msk.bf16.mxu1 %vm512_vm1, %v3522_v40  ;;  %v880_v59 = vor.u32 %v879_v31, %v876_v30  ;;  %v1232_v14 = vshrl.u32 %v3372_v44, 16  ;;  %v1234_v51 = vshll.u32 %v3372_v44, 16  ;;  %3045 = vmatprep.subr.msk.bf16.mxu0 %vm951_vm0, %v3514_v38  ;;  %v1239_v54 = vshll.u32 %v782_v6, 16  ;;  %v2792_v31 = vld [vmem:[%s3275_s17 + $0x38] sm:$0xff]   ;;  %s647_s17 = scalar_select %p499_p11, 1.0, 0.0 }
  0x49   : > { %v888_v52 = vor.u32 %v887_v43, %v884_v42  ;;  %v1226_v53 = vor.u32 %v1225_v45, %v1221_v26  ;;  %v759_v55 = vpack.c.bf16 %v3376_v48, %v731_v39  ;;  %v760_v56 = vpack.c.bf16 %v3385_v29, %v3385_v29 }
  0x4a   : > { %v1236_v13 = vrot.slane %v1234_v51, 1  ;;  %v761_v61 = vpack.c.bf16 %v3410_v15, %v735_v46  ;;  %v762_v57 = vpack.c.bf16 %v3412_v16, %v3412_v16  ;;  %v1241_v63 = vrot.slane %v1239_v54, 1 }
  0x4b   : > { %v3541_v11 = vsel %vm787_vm2, %v880_v59, %v888_v52  ;;  %v3544_v62 = vsel %vm1176_vm3, %v1226_v53, %v1230_v49  ;;  %v891_v0 = vshrl.u32 %v759_v55, 16  ;;  %v894_v48 = vshll.u32 %v759_v55, 16  ;;  %v2783_v53 = vld [vmem:[%s481_s19] sm:$0xff]  }
  0x4c   : > { %v1237_v1 = vor.u32 %v1236_v13, %v1232_v14  ;;  %v899_v19 = vshrl.u32 %v760_v56, 16  ;;  %v902_v2 = vshll.u32 %v760_v56, 16  ;;  %v908_v15 = vshrl.u32 %v761_v61, 16 }
  0x4d   : > { %2903 = vmatmul.mubr.msk.bf16.gmra.mxu1 %vm512_vm1, %v3541_v11  ;;  %v893_v29 = vrot.slane %v891_v0, 3  ;;  %v911_v4 = vshll.u32 %v761_v61, 16  ;;  %v916_v16 = vshrl.u32 %v762_v57, 16  ;;  %v896_v18 = vrot.slane %v894_v48, 4 }
  0x4e   : > { %2917 = vmatmul.mubr.msk.bf16.gmra.mxu0 %vm512_vm1, %v3505_v5  ;;  %v3553_v17 = vsel %vm1176_vm3, %v1237_v1, %v1241_v63  ;;  %v901_v22 = vrot.slane %v899_v19, 3  ;;  %v904_v23 = vrot.slane %v902_v2, 4  ;;  %v910_v25 = vrot.slane %v908_v15, 3 }
  0x4f   : > { %2920 = vmatprep.mubr.msk.bf16.mxu0 %vm512_vm1, %v3544_v62  ;;  %v913_v10 = vrot.slane %v911_v4, 4  ;;  %v918_v26 = vrot.slane %v916_v16, 3  ;;  %v919_v32 = vshll.u32 %v762_v57, 16  ;;  %v897_v27 = vor.u32 %v896_v18, %v893_v29 }
  0x50   : > { %v905_v9 = vor.u32 %v904_v23, %v901_v22  ;;  %v783_v28 = vpack.c.bf16 %v734_v12, %v734_v12  ;;  %v1243_v30 = vshrl.u32 %v3396_v58, 16  ;;  %v1245_v39 = vshll.u32 %v3396_v58, 16 }
  0x51   : > { %v914_v35 = vor.u32 %v913_v10, %v910_v25  ;;  %v921_v6 = vrot.slane %v919_v32, 4  ;;  %v784_v42 = vpack.c.bf16 %v738_v24, %v738_v24  ;;  %v1254_v46 = vshrl.u32 %v3420_v21, 16 }
  0x52   : > { %v3565_v43 = vsel %vm787_vm2, %v897_v27, %v905_v9  ;;  %v1250_v45 = vshll.u32 %v783_v28, 16  ;;  %v1256_v59 = vshll.u32 %v3420_v21, 16  ;;  %v1247_v14 = vrot.slane %v1245_v39, 1 }
  0x53   : > { %2906 = vmatprep.mubr.msk.bf16.mxu1 %vm512_vm1, %v3565_v43  ;;  %v922_v49 = vor.u32 %v921_v6, %v918_v26  ;;  %v1261_v51 = vshll.u32 %v784_v42, 16  ;;  %v2776_v52 = vunpack.c.l.bf16 %v2792_v31  ;;  %v2777_v13 = vunpack.c.h.bf16 %v2792_v31 }
  0x54   : > { %v1252_v54 = vrot.slane %v1250_v45, 1  ;;  %v1258_v55 = vrot.slane %v1256_v59, 1  ;;  %v1248_v61 = vor.u32 %v1247_v14, %v1243_v30  ;;  %v2784_v1 = vunpack.c.l.bf16 %v2783_v53 }
  0x55   : > { %v3573_v56 = vsel %vm787_vm2, %v914_v35, %v922_v49  ;;  %v586_v57 = vmul.f32 %v2776_v52, %v3280_v7  ;;  %v1263_v63 = vrot.slane %v1261_v51, 1  ;;  %v587_v0 = vmul.f32 %v2777_v13, %v3280_v7 }
  0x56   : > { %2921 = vmatmul.mubr.msk.bf16.gmra.mxu0 %vm512_vm1, %v3553_v17  ;;  %2907 = vmatmul.mubr.msk.bf16.gmra.mxu1 %vm512_vm1, %v3573_v56  ;;  %v3582_v48 = vsel %vm1176_vm3, %v1248_v61, %v1252_v54  ;;  %v1259_v19 = vor.u32 %v1258_v55, %v1254_v46  ;;  %v2785_v29 = vunpack.c.h.bf16 %v2783_v53  ;;  %v688_v4 = vmul.f32 %v2784_v1, %v3280_v7  ;;  %v742_v54 = vld [vmem:[#allocation2 + $0x118] sm:$0xff] }
  0x57   : > { %2930 = vmatprep.mubr.msk.bf16.mxu1 %vm512_vm1, %v3426_v34  ;;  %v609_v2 = vadd.f32 %v3307_v20, %v586_v57  ;;  %2924 = vmatprep.mubr.msk.bf16.mxu0 %vm512_vm1, %v3582_v48  ;;  %v610_v15 = vadd.f32 %v3307_v20, %v587_v0  ;;  %v701_v24 = vstv %s647_s17  ;;  %v1683_v25 = vsel %vm951_vm0, %v3466_v50, 0  ;;  %v739_v50 = vld [vmem:[#allocation2 + $0x100] sm:$0xff]  ;;  %s510_s17 = scalar_lea.vmem %s4019_s8, %s502_s13 }
  0x58   : > { %v689_v12 = vmul.f32 %v2785_v29, %v3280_v7  ;;  %v697_v22 = vadd.f32 %v3307_v20, %v688_v4  ;;  %v3596_v34 = vsel %vm1176_vm3, %v1259_v19, %v1263_v63  ;;  %v2692_v7 = vld [vmem:[%s4016_s5 + $0xe] sm:$0x3]  ;;  %v1821_v30 = vsel %vm951_vm0, %v3514_v38, 0 }
  0x59   : > { %v625_v16 = vmax.f32 %v609_v2, 0.0  ;;  %v626_v18 = vmax.f32 %v610_v15, 0.0  ;;  %v1942_v53 = vsel %vm951_vm0, %v2692_v7, 0 }
  0x5a   : > { %v698_v23 = vadd.f32 %v3307_v20, %v689_v12  ;;  %v699_v10 = vmax.f32 %v697_v22, 0.0 }
  0x5b   : > { %642 = vst.msk [vmem:[#allocation2 + $0x108] sm:$0xff] %vm512_vm1, %v625_v16  ;;  %643 = vst.msk [vmem:[#allocation2 + $0x110] sm:$0xff] %vm512_vm1, %v626_v18 }
  0x5c   : > { %v700_v26 = vmax.f32 %v698_v23, 0.0  ;;  %v702_v32 = vmul.f32 %v701_v24, %v699_v10 }
  0x5e   : > { %2925 = vmatmul.mubr.msk.bf16.gmra.mxu0 %vm512_vm1, %v3596_v34  ;;  %2931 = vmatmul.mubr.msk.bf16.vlgmr.msra.gmra.mxu1 %vm512_vm1, %v3457_v36  ;;  %v703_v20 = vmul.f32 %v701_v24, %v700_v26  ;;  %705 = vst.msk [vmem:[#allocation2 + $0x128] sm:$0xff] %vm512_vm1, %v702_v32 }
  0x5f   : > { %2965 = vmatpush3.bf16.msra.mxu1 %v1683_v25  ;;  %2948 = vmatprep.mubr.msk.bf16.mxu0 %vm512_vm1, %v3374_v47  ;;  %v2701_v47 = vld [vmem:[%s4016_s5 + $0x10] sm:$0x3] }
  0x60   : > { %2934 = vmatprep.mubr.msk.bf16.mxu1 %vm512_vm1, %v3491_v8  ;;  %3046 = vmatprep.subr.msk.bf16.mxu1 %vm951_vm0, %v2692_v7  ;;  %706 = vst.msk [vmem:[#allocation2 + $0x130] sm:$0xff] %vm512_vm1, %v703_v20  ;;  %v2074_v55 = vsel %vm951_vm0, %v2701_v47, 0 }
  0x62   : > { %v740_v27 = vld [vmem:[#allocation2 + $0x108] sm:$0xff]  ;;  %v741_v9 = vld [vmem:[#allocation2 + $0x110] sm:$0xff] }
  0x63   : > { %v763_v28 = vpack.c.bf16 %v740_v27, %v739_v50  ;;  %v764_v31 = vpack.c.bf16 %v741_v9, %v741_v9  ;;  %v775_v52 = vpack.c.bf16 %v741_v9, %v740_v27 }
  0x65   : > { %v1408_v35 = vshrl.u32 %v763_v28, 16  ;;  %v1411_v6 = vshll.u32 %v763_v28, 16  ;;  %v1416_v39 = vshrl.u32 %v764_v31, 16  ;;  %v1419_v42 = vshll.u32 %v764_v31, 16  ;;  %v744_v61 = vld [vmem:[#allocation2 + $0x128] sm:$0xff] }
  0x66   : > { %2949 = vmatmul.mubr.msk.bf16.vlgmr.msra.gmra.mxu0 %vm512_vm1, %v3423_v33  ;;  %2935 = vmatmul.mubr.msk.bf16.gmra.mxu1 %vm512_vm1, %v3522_v40  ;;  %v1668_v13 = vshll.u32 %v775_v52, 16  ;;  %v1666_v63 = vshrl.u32 %v775_v52, 16 }
  0x67   : > { %2983 = vmatpush3.bf16.msra.mxu0 %v1821_v30  ;;  %2952 = vmatprep.mubr.msk.bf16.mxu0 %vm512_vm1, %v3436_v60  ;;  %v1410_v38 = vrot.slane %v1408_v35, 3  ;;  %v1413_v45 = vrot.slane %v1411_v6, 4  ;;  %v1418_v46 = vrot.slane %v1416_v39, 3  ;;  %v1421_v59 = vrot.slane %v1419_v42, 4  ;;  %v745_v57 = vld [vmem:[#allocation2 + $0x130] sm:$0xff] }
  0x68   : > { %2938 = vmatprep.mubr.msk.bf16.mxu1 %vm512_vm1, %v3541_v11  ;;  %3047 = vmatprep.subr.msk.bf16.mxu0 %vm951_vm0, %v2701_v47  ;;  %v1670_v0 = vrot.slane %v1668_v13, 1 }
  0x69   : > { %v1414_v49 = vor.u32 %v1413_v45, %v1410_v38  ;;  %v1422_v14 = vor.u32 %v1421_v59, %v1418_v46 }
  0x6a   : > { %v1671_v2 = vor.u32 %v1670_v0, %v1666_v63 }
  0x6b   : > { %v1423_v51 = vsel %vm787_vm2, %v1414_v49, %v1422_v14 }
  0x6e   : > { %2953 = vmatmul.mubr.msk.bf16.gmra.mxu0 %vm512_vm1, %v3360_v37  ;;  %2939 = vmatmul.mubr.msk.bf16.gmra.mxu1 %vm512_vm1, %v3565_v43 }
  0x6f   : > { %2956 = vmatprep.mubr.msk.bf16.mxu0 %vm512_vm1, %v3372_v44  ;;  %2942 = vmatprep.mubr.msk.bf16.mxu1 %vm512_vm1, %v3573_v56 }
  0x76   : > { %2957 = vmatmul.mubr.msk.bf16.gmra.mxu0 %vm512_vm1, %v3396_v58  ;;  %2943 = vmatmul.mubr.msk.bf16.gmra.mxu1 %vm512_vm1, %v1423_v51 }
  0x77   : > { %2960 = vmatprep.mubr.msk.bf16.mxu0 %vm512_vm1, %v3420_v21  ;;  %2966 = vmatprep.mubr.msk.bf16.mxu1 %vm512_vm1, %v3429_v41  ;;  %v785_v41 = vpack.c.bf16 %v742_v54, %v742_v54 }
  0x79   : > { %v1673_v1 = vshll.u32 %v785_v41, 16 }
  0x7b   : > { %v1675_v29 = vrot.slane %v1673_v1, 1 }
  0x7d   : > { %v1676_v12 = vsel %vm1176_vm3, %v1671_v2, %v1675_v29 }
  0x7e   : > { %2961 = vmatmul.mubr.msk.bf16.gmra.mxu0 %vm512_vm1, %v775_v52  ;;  %2967 = vmatmul.mubr.msk.bf16.vlgmr.msra.gmra.mxu1 %vm512_vm1, %v3496_v3 }
  0x7f   : > { %3001 = vmatpush3.bf16.msra.mxu1 %v1942_v53  ;;  %2984 = vmatprep.mubr.msk.bf16.mxu0 %vm512_vm1, %v3457_v36  ;;  %v743_v36 = vld [vmem:[#allocation2 + $0x120] sm:$0xff] }
  0x80   : > { %2970 = vmatprep.mubr.msk.bf16.mxu1 %vm512_vm1, %v3505_v5  ;;  %v765_v19 = vpack.c.bf16 %v744_v61, %v743_v36 }
  0x82   : > { %v1802_v15 = vshll.u32 %v765_v19, 16 }
  0x84   : > { %v1804_v22 = vrot.slane %v1802_v15, 4 }
  0x86   : > { %2985 = vmatmul.mubr.msk.bf16.vlgmr.msra.gmra.mxu0 %vm512_vm1, %v3491_v8  ;;  %2971 = vmatmul.mubr.msk.bf16.gmra.mxu1 %vm512_vm1, %v3544_v62  ;;  %v766_v8 = vpack.c.bf16 %v745_v57, %v745_v57 }
  0x87   : > { %3019 = vmatpush3.bf16.msra.mxu0 %v2074_v55  ;;  %2988 = vmatprep.mubr.msk.bf16.mxu0 %vm512_vm1, %v3522_v40  ;;  %v1799_v40 = vshrl.u32 %v765_v19, 16 }
  0x88   : > { %2974 = vmatprep.mubr.msk.bf16.mxu1 %vm512_vm1, %v3553_v17  ;;  %v1807_v4 = vshrl.u32 %v766_v8, 16  ;;  %v1810_v16 = vshll.u32 %v766_v8, 16 }
  0x89   : > { %v1801_v18 = vrot.slane %v1799_v40, 3 }
  0x8a   : > { %v1812_v23 = vrot.slane %v1810_v16, 4 }
  0x8e   : > { %2989 = vmatmul.mubr.msk.bf16.gmra.mxu0 %vm512_vm1, %v3541_v11  ;;  %2975 = vmatmul.mubr.msk.bf16.gmra.mxu1 %vm512_vm1, %v3582_v48  ;;  %v1809_v11 = vrot.slane %v1807_v4, 3 }
  0x8f   : > { %2992 = vmatprep.mubr.msk.bf16.mxu0 %vm512_vm1, %v3565_v43  ;;  %2978 = vmatprep.mubr.msk.bf16.mxu1 %vm512_vm1, %v3596_v34  ;;  %v1805_v43 = vor.u32 %v1804_v22, %v1801_v18 }
  0x90   : > { %v1813_v24 = vor.u32 %v1812_v23, %v1809_v11 }
  0x92   : > { %v1814_v25 = vsel %vm787_vm2, %v1805_v43, %v1813_v24 }
  0x96   : > { %2993 = vmatmul.mubr.msk.bf16.gmra.mxu0 %vm512_vm1, %v3573_v56  ;;  %2979 = vmatmul.mubr.msk.bf16.gmra.mxu1 %vm512_vm1, %v1676_v12 }
  0x97   : > { %2996 = vmatprep.mubr.msk.bf16.mxu0 %vm512_vm1, %v1423_v51  ;;  %3002 = vmatprep.mubr.msk.bf16.mxu1 %vm512_vm1, %v3423_v33  ;;  %v776_v33 = vpack.c.bf16 %v745_v57, %v744_v61 }
  0x9e   : > { %2997 = vmatmul.mubr.msk.bf16.gmra.mxu0 %vm512_vm1, %v1814_v25  ;;  %3003 = vmatmul.mubr.msk.bf16.vlgmr.msra.gmra.mxu1 %vm512_vm1, %v3436_v60  ;;  %v746_v60 = vld [vmem:[#allocation2 + $0x138] sm:$0xff] }
  0x9f   : > { %3020 = vmatprep.mubr.msk.bf16.mxu0 %vm512_vm1, %v3496_v3  ;;  %3006 = vmatprep.mubr.msk.bf16.mxu1 %vm512_vm1, %v3360_v37  ;;  %v786_v37 = vpack.c.bf16 %v746_v60, %v746_v60  ;;  %v2057_v3 = vshrl.u32 %v776_v33, 16 }
  0xa6   : > { %3021 = vmatmul.mubr.msk.bf16.vlgmr.msra.gmra.mxu0 %vm512_vm1, %v3505_v5  ;;  %3007 = vmatmul.mubr.msk.bf16.gmra.mxu1 %vm512_vm1, %v3372_v44  ;;  %v2059_v44 = vshll.u32 %v776_v33, 16 }
  0xa7   : > { %3024 = vmatprep.mubr.msk.bf16.mxu0 %vm512_vm1, %v3544_v62  ;;  %3010 = vmatprep.mubr.msk.bf16.mxu1 %vm512_vm1, %v3396_v58  ;;  %v2064_v62 = vshll.u32 %v786_v37, 16 }
  0xa8   : > { %v2061_v5 = vrot.slane %v2059_v44, 1 }
  0xaa   : > { %v2062_v58 = vor.u32 %v2061_v5, %v2057_v3 }
  0xae   : > { %3025 = vmatmul.mubr.msk.bf16.gmra.mxu0 %vm512_vm1, %v3553_v17  ;;  %3011 = vmatmul.mubr.msk.bf16.gmra.mxu1 %vm512_vm1, %v3420_v21  ;;  %v2066_v17 = vrot.slane %v2064_v62, 1 }
  0xaf   : > { %3028 = vmatprep.mubr.msk.bf16.mxu0 %vm512_vm1, %v3582_v48  ;;  %3014 = vmatprep.mubr.msk.bf16.mxu1 %vm512_vm1, %v775_v52 }
  0xb0   : > { %v2067_v21 = vsel %vm1176_vm3, %v2062_v58, %v2066_v17 }
  0xb6   : > { %3029 = vmatmul.mubr.msk.bf16.gmra.mxu0 %vm512_vm1, %v3596_v34  ;;  %3015 = vmatmul.mubr.msk.bf16.gmra.mxu1 %vm512_vm1, %v776_v33 }
  0xb7   : > { %3032 = vmatprep.mubr.msk.bf16.mxu0 %vm512_vm1, %v1676_v12 }
  0xbe   : > { %3033 = vmatmul.mubr.msk.bf16.gmra.mxu0 %vm512_vm1, %v2067_v21 }
  0xeb   : > { %v2886_v56 = vpop.f32.mrf.mxu1 }
  0xed   : > { %v1021_v48 = vpop.f32.mrf.mxu1 }
  0xef   : > { %v2887_v10 = vpop.f32.mrf.mxu1 }
  0xf1   : > { %v1024_v7 = vpop.f32.mrf.mxu1 }
  0xf3   : > { %v2890_v26 = vpop.f32.mrf.mxu1 }
  0xf5   : > { %v1037_v20 = vpop.f32.mrf.mxu1 }
  0xf6   : > { %v2878_v32 = vpop.f32.mrf.mxu0 }
  0xf7   : > { %v2891_v27 = vpop.f32.mrf.mxu1 }
  0xf8   : > { %v989_v50 = vpop.f32.mrf.mxu0 }
  0xf9   : > { %v1040_v9 = vpop.f32.mrf.mxu1 }
  0xfa   : > { %v2879_v34 = vpop.f32.mrf.mxu0 }
  0xfc   : > { %v992_v28 = vpop.f32.mrf.mxu0 }
  0xfd   : > { %v2896_v30 = vpop.f32.mrf.mxu1 }
  0xfe   : > { %v2882_v31 = vpop.f32.mrf.mxu0  ;;  %v1122_v47 = vadd.f32 %v2896_v30, %v2878_v32 }
  0xff   : > { %v1113_v35 = vpop.f32.mrf.mxu1 }
 0x100   : > { %v1005_v6 = vpop.f32.mrf.mxu0  ;;  %v1114_v39 = vadd.f32 %v1113_v35, %v989_v50 }
 0x101   : > { %v2897_v42 = vpop.f32.mrf.mxu1 }
 0x102   : > { %v2883_v38 = vpop.f32.mrf.mxu0  ;;  %v1125_v45 = vadd.f32 %v2897_v42, %v2879_v34 }
 0x103   : > { %v1116_v46 = vpop.f32.mrf.mxu1 }
 0x104   : > { %v1008_v59 = vpop.f32.mrf.mxu0  ;;  %v1117_v49 = vadd.f32 %v1116_v46, %v992_v28 }
 0x105   : > { %v2900_v14 = vpop.f32.mrf.mxu1 }
 0x106   : > { %v2914_v51 = vpop.f32.mrf.mxu0  ;;  %v1138_v52 = vadd.f32 %v2900_v14, %v2882_v31 }
 0x107   : > { %v3708_v53 = vadd.f32 %v2914_v51, %v1122_v47  ;;  %v1129_v54 = vpop.f32.mrf.mxu1 }
 0x108   : > { %v1328_v55 = vpop.f32.mrf.mxu0  ;;  %v1130_v41 = vadd.f32 %v1129_v54, %v1005_v6 }
 0x109   : > { %v3710_v13 = vadd.f32 %v1328_v55, %v1114_v39  ;;  %v2901_v36 = vpop.f32.mrf.mxu1 }
 0x10a   : > { %v2915_v61 = vpop.f32.mrf.mxu0  ;;  %v1141_v57 = vadd.f32 %v2901_v36, %v2883_v38 }
 0x10b   : > { %v3712_v63 = vadd.f32 %v2915_v61, %v1125_v45  ;;  %v1132_v0 = vpop.f32.mrf.mxu1 }
 0x10c   : > { %v1331_v1 = vpop.f32.mrf.mxu0  ;;  %v1133_v19 = vadd.f32 %v1132_v0, %v1008_v59 }
 0x10d   : > { %v3714_v8 = vadd.f32 %v1331_v1, %v1117_v49  ;;  %v2904_v2 = vpop.f32.mrf.mxu1 }
 0x10e   : > { %v2918_v29 = vpop.f32.mrf.mxu0  ;;  %v1154_v40 = vadd.f32 %v2904_v2, %v2886_v56 }
 0x10f   : > { %v3716_v15 = vadd.f32 %v2918_v29, %v1138_v52  ;;  %v1145_v4 = vpop.f32.mrf.mxu1 }
 0x110   : > { %v1344_v16 = vpop.f32.mrf.mxu0  ;;  %v1146_v12 = vadd.f32 %v1145_v4, %v1021_v48 }
 0x111   : > { %v3718_v18 = vadd.f32 %v1344_v16, %v1130_v41  ;;  %v2905_v22 = vpop.f32.mrf.mxu1 }
 0x112   : > { %v2919_v11 = vpop.f32.mrf.mxu0  ;;  %v1157_v23 = vadd.f32 %v2905_v22, %v2887_v10 }
 0x113   : > { %v3720_v43 = vadd.f32 %v2919_v11, %v1141_v57  ;;  %v1148_v24 = vpop.f32.mrf.mxu1 }
 0x114   : > { %v1347_v25 = vpop.f32.mrf.mxu0  ;;  %v1149_v33 = vadd.f32 %v1148_v24, %v1024_v7 }
 0x115   : > { %v3722_v60 = vadd.f32 %v1347_v25, %v1133_v19 }
 0x116   : > { %v2922_v37 = vpop.f32.mrf.mxu0  ;;  %v2908_v44 = vpop.f32.mrf.mxu1 }
 0x117   : > { %v3724_v3 = vadd.f32 %v2922_v37, %v1154_v40  ;;  %v1170_v5 = vadd.f32 %v2908_v44, %v2890_v26 }
 0x118   : > { %v1360_v62 = vpop.f32.mrf.mxu0  ;;  %v1161_v58 = vpop.f32.mrf.mxu1 }
 0x119   : > { %v3726_v17 = vadd.f32 %v1360_v62, %v1146_v12  ;;  %v1162_v21 = vadd.f32 %v1161_v58, %v1037_v20 }
 0x11a   : > { %v2923_v56 = vpop.f32.mrf.mxu0  ;;  %v2909_v48 = vpop.f32.mrf.mxu1 }
 0x11b   : > { %v3728_v10 = vadd.f32 %v2923_v56, %v1157_v23  ;;  %v1173_v32 = vadd.f32 %v2909_v48, %v2891_v27 }
 0x11c   : > { %v1363_v50 = vpop.f32.mrf.mxu0  ;;  %v1164_v34 = vpop.f32.mrf.mxu1 }
 0x11d   : > { %v3730_v7 = vadd.f32 %v1363_v50, %v1149_v33  ;;  %v1165_v28 = vadd.f32 %v1164_v34, %v1040_v9 }
 0x11e   : > { %v2926_v30 = vpop.f32.mrf.mxu0  ;;  %v3732_v31 = vpop.f32.mrf.mxu1 }
 0x11f   : > { %v3734_v47 = vadd.f32 %v2926_v30, %v1170_v5 }
 0x120   : > { %v1376_v26 = vpop.f32.mrf.mxu0  ;;  %v3736_v35 = vpop.f32.mrf.mxu1 }
 0x121   : > { %v3738_v6 = vadd.f32 %v1376_v26, %v1162_v21 }
 0x122   : > { %v2927_v20 = vpop.f32.mrf.mxu0  ;;  %v2933_v39 = vpop.f32.mrf.mxu1 }
 0x123   : > { %v3740_v42 = vadd.f32 %v2927_v20, %v1173_v32 }
 0x124   : > { %v1379_v27 = vpop.f32.mrf.mxu0  ;;  %v1469_v38 = vpop.f32.mrf.mxu1 }
 0x125   : > { %v3742_v45 = vadd.f32 %v1379_v27, %v1165_v28 }
 0x126   : > { %v2950_v46 = vpop.f32.mrf.mxu0  ;;  %v2936_v9 = vpop.f32.mrf.mxu1 }
 0x128   : > { %v1587_v59 = vpop.f32.mrf.mxu0  ;;  %v1482_v49 = vpop.f32.mrf.mxu1 }
 0x12a   : > { %v2951_v14 = vpop.f32.mrf.mxu0  ;;  %v2937_v51 = vpop.f32.mrf.mxu1 }
 0x12c   : > { %v1590_v52 = vpop.f32.mrf.mxu0  ;;  %v1485_v54 = vpop.f32.mrf.mxu1 }
 0x12e   : > { %v2954_v55 = vpop.f32.mrf.mxu0  ;;  %v3744_v41 = vpop.f32.mrf.mxu1 }
 0x130   : > { %v1603_v36 = vpop.f32.mrf.mxu0  ;;  %v1498_v61 = vpop.f32.mrf.mxu1 }
 0x132   : > { %v2955_v57 = vpop.f32.mrf.mxu0  ;;  %v3746_v0 = vpop.f32.mrf.mxu1 }
 0x134   : > { %v1606_v1 = vpop.f32.mrf.mxu0  ;;  %v1501_v19 = vpop.f32.mrf.mxu1 }
 0x136   : > { %v3748_v2 = vpop.f32.mrf.mxu0  ;;  %v3750_v29 = vpop.f32.mrf.mxu1 }
 0x138   : > { %v3752_v40 = vpop.f32.mrf.mxu0  ;;  %v3754_v4 = vpop.f32.mrf.mxu1 }
 0x13a   : > { %v3756_v16 = vpop.f32.mrf.mxu0  ;;  %v3758_v12 = vpop.f32.mrf.mxu1 }
 0x13c   : > { %v3760_v22 = vpop.f32.mrf.mxu0  ;;  %v3762_v11 = vpop.f32.mrf.mxu1 }
 0x13e   : > { %v3764_v23 = vpop.f32.mrf.mxu0  ;;  %v2968_v24 = vpop.f32.mrf.mxu1 }
 0x140   : > { %v3766_v25 = vpop.f32.mrf.mxu0  ;;  %v3768_v33 = vpop.f32.mrf.mxu1 }
 0x142   : > { %v3770_v37 = vpop.f32.mrf.mxu0  ;;  %v3772_v44 = vpop.f32.mrf.mxu1 }
 0x144   : > { %v3774_v5 = vpop.f32.mrf.mxu0  ;;  %v3776_v62 = vpop.f32.mrf.mxu1 }
 0x145   : > { %4021 = vst [vmem:[#allocation3_spill] sm:$0xff] %v3774_v5 }
 0x146   : > { %v2986_v58 = vpop.f32.mrf.mxu0  ;;  %v3778_v21 = vpop.f32.mrf.mxu1 }
 0x147   : > { %4022 = vst [vmem:[#allocation4_spill] sm:$0xff] %v3778_v21 }
 0x148   : > { %v3780_v56 = vpop.f32.mrf.mxu0  ;;  %v3782_v48 = vpop.f32.mrf.mxu1 }
 0x149   : > { %4023 = vst [vmem:[#allocation5_spill] sm:$0xff] %v3780_v56  ;;  %4024 = vst [vmem:[#allocation6_spill] sm:$0xff] %v3782_v48 }
 0x14a   : > { %v3784_v32 = vpop.f32.mrf.mxu0  ;;  %v3786_v50 = vpop.f32.mrf.mxu1 }
 0x14b   : > { %4025 = vst [vmem:[#allocation7_spill] sm:$0xff] %v3784_v32  ;;  %4026 = vst [vmem:[#allocation8_spill] sm:$0xff] %v3786_v50 }
 0x14c   : > { %v3788_v34 = vpop.f32.mrf.mxu0  ;;  %v3790_v28 = vpop.f32.mrf.mxu1 }
 0x14d   : > { %4027 = vst [vmem:[#allocation9_spill] sm:$0xff] %v3788_v34  ;;  %4028 = vst [vmem:[#allocation10_spill] sm:$0xff] %v3790_v28 }
 0x14e   : > { %v3792_v30 = vpop.f32.mrf.mxu0  ;;  %v3794_v26 = vpop.f32.mrf.mxu1 }
 0x14f   : > { %4029 = vst [vmem:[#allocation11_spill] sm:$0xff] %v3792_v30  ;;  %4030 = vst [vmem:[#allocation12_spill] sm:$0xff] %v3794_v26 }
 0x150   : > { %v3796_v20 = vpop.f32.mrf.mxu0  ;;  %v3798_v27 = vpop.f32.mrf.mxu1 }
 0x151   : > { %4031 = vst [vmem:[#allocation13_spill] sm:$0xff] %v3796_v20  ;;  %4032 = vst [vmem:[#allocation14_spill] sm:$0xff] %v3798_v27  ;;  %v1531_v27 = vadd.f32 %v3732_v31, %v3708_v53  ;;  %v1536_v53 = vadd.f32 %v2937_v51, %v3720_v43  ;;  %v1541_v51 = vadd.f32 %v3754_v4, %v3738_v6 }
 0x152   : > { %v3800_v21 = vpop.f32.mrf.mxu0  ;;  %v3802_v56 = vpop.f32.mrf.mxu1 }
 0x153   : > { %4033 = vst [vmem:[#allocation15_spill] sm:$0xff] %v3800_v21  ;;  %4034 = vst [vmem:[#allocation16_spill] sm:$0xff] %v3802_v56  ;;  %v1529_v56 = vadd.f32 %v3736_v35, %v3710_v13  ;;  %v1534_v13 = vadd.f32 %v1485_v54, %v3722_v60 }
 0x154   : > { %v3804_v48 = vpop.f32.mrf.mxu0  ;;  %v3806_v32 = vpop.f32.mrf.mxu1 }
 0x155   : > { %4035 = vst [vmem:[#allocation17_spill] sm:$0xff] %v3804_v48  ;;  %4036 = vst [vmem:[#allocation18_spill] sm:$0xff] %v3806_v32  ;;  %v1532_v32 = vadd.f32 %v2933_v39, %v3712_v63  ;;  %v1539_v39 = vadd.f32 %v3744_v41, %v3724_v3  ;;  %v1543_v3 = vadd.f32 %v3750_v29, %v3734_v47  ;;  %v4044_v29 = vld [vmem:[#allocation5_spill] sm:$0xff] }
 0x156   : > { %v3808_v50 = vpop.f32.mrf.mxu0  ;;  %v3810_v34 = vpop.f32.mrf.mxu1  ;;  %v1542_v41 = vadd.f32 %v3762_v11, %v3742_v45  ;;  %v4045_v45 = vld [vmem:[#allocation4_spill] sm:$0xff]  ;;  %v4047_v11 = vld [vmem:[#allocation6_spill] sm:$0xff] }
 0x157   : > { %4037 = vst [vmem:[#allocation19_spill] sm:$0xff] %v3808_v50  ;;  %4038 = vst [vmem:[#allocation20_spill] sm:$0xff] %v3810_v34  ;;  %v1530_v50 = vadd.f32 %v1469_v38, %v3714_v8  ;;  %v1653_v21 = vadd.f32 %v2951_v14, %v1532_v32  ;;  %v1537_v38 = vadd.f32 %v1498_v61, %v3726_v17 }
 0x158   : > { %v3812_v28 = vpop.f32.mrf.mxu0  ;;  %v3814_v30 = vpop.f32.mrf.mxu1  ;;  %v1662_v61 = vadd.f32 %v3766_v25, %v1541_v51 }
 0x159   : > { %4039 = vst [vmem:[#allocation21_spill] sm:$0xff] %v3812_v28  ;;  %4040 = vst [vmem:[#allocation22_spill] sm:$0xff] %v3814_v30  ;;  %v1652_v28 = vadd.f32 %v2950_v46, %v1531_v27  ;;  %v1650_v30 = vadd.f32 %v1587_v59, %v1529_v56  ;;  %v1651_v5 = vadd.f32 %v1590_v52, %v1530_v50 }
 0x15a   : > { %v3816_v26 = vpop.f32.mrf.mxu0  ;;  %v3818_v20 = vpop.f32.mrf.mxu1  ;;  %v1657_v46 = vadd.f32 %v2955_v57, %v1536_v53  ;;  %v1660_v59 = vadd.f32 %v3748_v2, %v1539_v39  ;;  %v1785_v57 = vadd.f32 %v3772_v44, %v1653_v21  ;;  %v4051_v21 = vld [vmem:[#allocation10_spill] sm:$0xff]  ;;  %v4054_v27 = vld [vmem:[#allocation15_spill] sm:$0xff] }
 0x15b   : > { %4041 = vst [vmem:[#allocation23_spill] sm:$0xff] %v3816_v26  ;;  %4042 = vst [vmem:[#allocation24_spill] sm:$0xff] %v3818_v20  ;;  %v1535_v26 = vadd.f32 %v2936_v9, %v3716_v15  ;;  %v1533_v20 = vadd.f32 %v1482_v49, %v3718_v18  ;;  %v1655_v15 = vadd.f32 %v1606_v1, %v1534_v13  ;;  %v4055_v13 = vld [vmem:[#allocation14_spill] sm:$0xff] }
 0x15c   : > { %v3826_v48 = vpop.f32.mrf.mxu0  ;;  %v3828_v34 = vpop.f32.mrf.mxu1  ;;  %v1540_v18 = vadd.f32 %v3746_v0, %v3728_v10  ;;  %v1538_v9 = vadd.f32 %v1501_v19, %v3730_v7  ;;  %v1658_v49 = vadd.f32 %v3752_v40, %v1537_v38  ;;  %v1784_v14 = vadd.f32 %v2968_v24, %v1652_v28  ;;  %v4043_v19 = vld [vmem:[#allocation3_spill] sm:$0xff]  ;;  %v4048_v24 = vld [vmem:[#allocation9_spill] sm:$0xff] }
 0x15d   : > { %v1656_v8 = vadd.f32 %v2954_v55, %v1535_v26  ;;  %v1654_v35 = vadd.f32 %v1603_v36, %v1533_v20  ;;  %v1544_v7 = vadd.f32 %v3758_v12, %v3740_v42  ;;  %v1664_v55 = vadd.f32 %v3764_v23, %v1543_v3  ;;  %v4046_v12 = vld [vmem:[#allocation7_spill] sm:$0xff]  ;;  %v4052_v28 = vld [vmem:[#allocation13_spill] sm:$0xff]  ;;  %v4053_v26 = vld [vmem:[#allocation12_spill] sm:$0xff] }
 0x15e   : > { %v3834_v31 = vpop.f32.mrf.mxu0  ;;  %v3004_v63 = vpop.f32.mrf.mxu1  ;;  %v1661_v17 = vadd.f32 %v3756_v16, %v1540_v18  ;;  %v1659_v10 = vadd.f32 %v3760_v22, %v1538_v9  ;;  %v1782_v47 = vadd.f32 %v3768_v33, %v1650_v30  ;;  %v1922_v36 = vadd.f32 %v2986_v58, %v1784_v14  ;;  %v4049_v33 = vld [vmem:[#allocation8_spill] sm:$0xff]  ;;  %v4056_v39 = vld [vmem:[#allocation17_spill] sm:$0xff]  ;;  %v4059_v14 = vld [vmem:[#allocation18_spill] sm:$0xff] }
 0x15f   : > { %v1665_v6 = vadd.f32 %v3770_v37, %v1544_v7  ;;  %v1783_v0 = vadd.f32 %v3776_v62, %v1651_v5  ;;  %v1663_v2 = vadd.f32 %v4043_v19, %v1542_v41  ;;  %v1788_v4 = vadd.f32 %v4045_v45, %v1656_v8  ;;  %v4050_v62 = vld [vmem:[#allocation11_spill] sm:$0xff]  ;;  %v4060_v7 = vld [vmem:[#allocation20_spill] sm:$0xff] }
 0x160   : > { %v3842_v43 = vpop.f32.mrf.mxu0  ;;  %v1978_v60 = vpop.f32.mrf.mxu1  ;;  %v1920_v40 = vadd.f32 %v4044_v29, %v1782_v47  ;;  %v2043_v16 = vadd.f32 %v3004_v63, %v1922_v36  ;;  %v1923_v22 = vadd.f32 %v4046_v12, %v1785_v57  ;;  %v1786_v23 = vadd.f32 %v4047_v11, %v1654_v35 }
 0x161   : > { %v1921_v25 = vadd.f32 %v4048_v24, %v1783_v0  ;;  %v1789_v37 = vadd.f32 %v4049_v33, %v1657_v46  ;;  %v1926_v58 = vadd.f32 %v4050_v62, %v1788_v4  ;;  %v1787_v56 = vadd.f32 %v4051_v21, %v1655_v15  ;;  %v4057_v46 = vld [vmem:[#allocation16_spill] sm:$0xff]  ;;  %v4062_v0 = vld [vmem:[#allocation22_spill] sm:$0xff] }
 0x162   : > { %v3854_v52 = vpop.f32.mrf.mxu0  ;;  %v3005_v54 = vpop.f32.mrf.mxu1  ;;  %v2041_v32 = vadd.f32 %v1978_v60, %v1920_v40  ;;  %v1924_v30 = vadd.f32 %v4052_v28, %v1786_v23  ;;  %v1792_v20 = vadd.f32 %v4053_v26, %v1660_v59  ;;  %v1790_v63 = vadd.f32 %v4055_v13, %v1658_v49  ;;  %v4058_v60 = vld [vmem:[#allocation19_spill] sm:$0xff]  ;;  %v4061_v49 = vld [vmem:[#allocation21_spill] sm:$0xff] }
 0x163   : > { %v1927_v53 = vadd.f32 %v4054_v27, %v1789_v37  ;;  %v1925_v38 = vadd.f32 %v4056_v39, %v1787_v56  ;;  %v1793_v15 = vadd.f32 %v4057_v46, %v1661_v17  ;;  %v1791_v51 = vadd.f32 %v4059_v14, %v1659_v10  ;;  %v4063_v40 = vld [vmem:[#allocation23_spill] sm:$0xff] }
 0x164   : > { %v3864_v42 = vpop.f32.mrf.mxu0  ;;  %v1981_v1 = vpop.f32.mrf.mxu1  ;;  %v3889_v3 = vadd.f32 %v4058_v60, %v1792_v20  ;;  %v1796_v59 = vadd.f32 %v4060_v7, %v1664_v55  ;;  %v2044_v41 = vadd.f32 %v3005_v54, %v1923_v22  ;;  %v3894_v57 = vadd.f32 %v4061_v49, %v1790_v63  ;;  %v4064_v55 = vld [vmem:[#allocation24_spill] sm:$0xff] }
 0x165   : > { %v1794_v19 = vadd.f32 %v4062_v0, %v1662_v61  ;;  %v2042_v17 = vadd.f32 %v1981_v1, %v1921_v25  ;;  %v3900_v45 = vadd.f32 %v4063_v40, %v1793_v15  ;;  %v3903_v10 = vadd.f32 %v3826_v48, %v1791_v51 }
 0x166   : > { %v3022_v44 = vpop.f32.mrf.mxu0  ;;  %v3008_v5 = vpop.f32.mrf.mxu1  ;;  %v1797_v4 = vadd.f32 %v4064_v55, %v1665_v6  ;;  %v3907_v22 = vadd.f32 %v3828_v34, %v1663_v2  ;;  %v3912_v23 = vadd.f32 %v3834_v31, %v1796_v59 }
 0x167   : > { %v2175_v50 = vadd.f32 %v3022_v44, %v2043_v16  ;;  %v2047_v1 = vadd.f32 %v3008_v5, %v1926_v58  ;;  %v3924_v27 = vadd.f32 %v3842_v43, %v1794_v19 }
 0x168   : > { %v2110_v8 = vpop.f32.mrf.mxu0  ;;  %v1994_v35 = vpop.f32.mrf.mxu1 }
 0x169   : > { %v2732_v18 = vpack.c.bf16 %v2175_v50, %v2175_v50  ;;  %v2173_v9 = vadd.f32 %v2110_v8, %v2041_v32  ;;  %v2311_v24 = vmul.f32 %v2175_v50, %v2175_v50  ;;  %v2273_v62 = vsel %vm512_vm1, %v2175_v50, 0.0 }
 0x16a   : > { %v3023_v47 = vpop.f32.mrf.mxu0  ;;  %v3009_v36 = vpop.f32.mrf.mxu1  ;;  %v2045_v58 = vadd.f32 %v1994_v35, %v1924_v30 }
 0x16b   : > { %2256 = vst.msk [vmem:[%s3880_s21 + $0x8] sm:$0xf] %vm2253_vm4, %v2732_v18  ;;  %v2730_v29 = vpack.c.bf16 %v2173_v9, %v2173_v9  ;;  %v2176_v54 = vadd.f32 %v3023_v47, %v2044_v41  ;;  %v2309_v61 = vmul.f32 %v2173_v9, %v2173_v9  ;;  %v2270_v48 = vsel %vm512_vm1, %v2173_v9, 0.0 }
 0x16c   : > { %v2113_v16 = vpop.f32.mrf.mxu0  ;;  %v1997_v12 = vpop.f32.mrf.mxu1  ;;  %v2048_v26 = vadd.f32 %v3009_v36, %v1927_v53  ;;  %v2328_v35 = vsel %vm512_vm1, %v2311_v24, 0.0  ;;  %v1935_v47 = vadd.f32 %v3854_v52, %v1797_v4 }
 0x16d   : > { %2254 = vst.msk [vmem:[%s3880_s21] sm:$0xf] %vm2253_vm4, %v2730_v29  ;;  %v2174_v11 = vadd.f32 %v2113_v16, %v2042_v17  ;;  %v2733_v6 = vpack.c.bf16 %v2176_v54, %v2176_v54  ;;  %v2312_v5 = vmul.f32 %v2176_v54, %v2176_v54  ;;  %v2325_v32 = vsel %vm512_vm1, %v2309_v61, 0.0 }
 0x16e   : > { %v3026_v25 = vpop.f32.mrf.mxu0  ;;  %v3012_v33 = vpop.f32.mrf.mxu1  ;;  %v2275_v39 = vsel %vm512_vm1, %v2176_v54, 0.0  ;;  %v2046_v46 = vadd.f32 %v1997_v12, %v1925_v38  ;;  %v1933_v12 = vadd.f32 %v3864_v42, %v3907_v22 }
 0x16f   : > { %v2731_v37 = vpack.c.bf16 %v2174_v11, %v2174_v11  ;;  %v2271_v34 = vsel %vm512_vm1, %v2174_v11, 0.0  ;;  %v2310_v2 = vmul.f32 %v2174_v11, %v2174_v11  ;;  %v2179_v44 = vadd.f32 %v3026_v25, %v2047_v1  ;;  %2257 = vst.msk [vmem:[%s3880_s21 + $0xc] sm:$0xf] %vm2253_vm4, %v2733_v6 }
 0x170   : > { %v2272_v31 = vadd.f32 %v2271_v34, %v2270_v48  ;;  %v2126_v21 = vpop.f32.mrf.mxu0  ;;  %v2010_v56 = vpop.f32.mrf.mxu1  ;;  %v2330_v53 = vsel %vm512_vm1, %v2312_v5, 0.0  ;;  %v2051_v59 = vadd.f32 %v3012_v33, %v3889_v3 }
 0x171   : > { %2255 = vst.msk [vmem:[%s3880_s21 + $0x4] sm:$0xf] %vm2253_vm4, %v2731_v37  ;;  %v2326_v28 = vsel %vm512_vm1, %v2310_v2, 0.0  ;;  %v2736_v20 = vpack.c.bf16 %v2179_v44, %v2179_v44  ;;  %v2177_v63 = vadd.f32 %v2126_v21, %v2045_v58  ;;  %v2315_v17 = vmul.f32 %v2179_v44, %v2179_v44 }
 0x172   : > { %v2274_v50 = vadd.f32 %v2273_v62, %v2272_v31  ;;  %v2327_v13 = vadd.f32 %v2326_v28, %v2325_v32  ;;  %v3027_v8 = vpop.f32.mrf.mxu0  ;;  %v3013_v30 = vpop.f32.mrf.mxu1  ;;  %v2049_v40 = vadd.f32 %v2010_v56, %v3894_v57  ;;  %v2281_v48 = vsel %vm512_vm1, %v2179_v44, 0.0 }
 0x173   : > { %2260 = vst.msk [vmem:[%s3880_s21 + $0x18] sm:$0xf] %vm2253_vm4, %v2736_v20  ;;  %v2180_v15 = vadd.f32 %v3027_v8, %v2048_v26  ;;  %v2734_v9 = vpack.c.bf16 %v2177_v63, %v2177_v63  ;;  %v2277_v51 = vsel %vm512_vm1, %v2177_v63, 0.0  ;;  %v2313_v7 = vmul.f32 %v2177_v63, %v2177_v63 }
 0x174   : > { %v2329_v18 = vadd.f32 %v2328_v35, %v2327_v13  ;;  %v2276_v43 = vadd.f32 %v2275_v39, %v2274_v50  ;;  %v2129_v60 = vpop.f32.mrf.mxu0  ;;  %v2013_v14 = vpop.f32.mrf.mxu1  ;;  %v2052_v1 = vadd.f32 %v3013_v30, %v3900_v45  ;;  %v2336_v37 = vsel %vm512_vm1, %v2315_v17, 0.0 }
 0x175   : > { %v2737_v41 = vpack.c.bf16 %v2180_v15, %v2180_v15  ;;  %2258 = vst.msk [vmem:[%s3880_s21 + $0x10] sm:$0xf] %vm2253_vm4, %v2734_v9  ;;  %v2178_v49 = vadd.f32 %v2129_v60, %v2046_v46  ;;  %v2332_v29 = vsel %vm512_vm1, %v2313_v7, 0.0  ;;  %v2316_v6 = vmul.f32 %v2180_v15, %v2180_v15 }
 0x176   : > { %v2278_v38 = vadd.f32 %v2277_v51, %v2276_v43  ;;  %v2331_v36 = vadd.f32 %v2330_v53, %v2329_v18  ;;  %v3030_v0 = vpop.f32.mrf.mxu0  ;;  %v3016_v19 = vpop.f32.mrf.mxu1  ;;  %v2283_v45 = vsel %vm512_vm1, %v2180_v15, 0.0  ;;  %v2050_v22 = vadd.f32 %v2013_v14, %v3903_v10 }
 0x177   : > { %2261 = vst.msk [vmem:[%s3880_s21 + $0x1c] sm:$0xf] %vm2253_vm4, %v2737_v41  ;;  %v2183_v55 = vadd.f32 %v3030_v0, %v2051_v59  ;;  %v2735_v54 = vpack.c.bf16 %v2178_v49, %v2178_v49  ;;  %v2279_v52 = vsel %vm512_vm1, %v2178_v49, 0.0  ;;  %v2314_v4 = vmul.f32 %v2178_v49, %v2178_v49 }
 0x178   : > { %v2333_v3 = vadd.f32 %v2332_v29, %v2331_v36  ;;  %v2142_v16 = vpop.f32.mrf.mxu0  ;;  %v2280_v61 = vadd.f32 %v2279_v52, %v2278_v38  ;;  %v2026_v24 = vpop.f32.mrf.mxu1  ;;  %v2055_v21 = vadd.f32 %v3016_v19, %v3912_v23  ;;  %v2338_v28 = vsel %vm512_vm1, %v2316_v6, 0.0 }
 0x179   : > { %v2740_v11 = vpack.c.bf16 %v2183_v55, %v2183_v55  ;;  %2259 = vst.msk [vmem:[%s3880_s21 + $0x14] sm:$0xf] %vm2253_vm4, %v2735_v54  ;;  %v2334_v57 = vsel %vm512_vm1, %v2314_v4, 0.0  ;;  %v2181_v25 = vadd.f32 %v2142_v16, %v2049_v40  ;;  %v2319_v26 = vmul.f32 %v2183_v55, %v2183_v55 }
 0x17a   : > { %v3031_v33 = vpop.f32.mrf.mxu0  ;;  %v2282_v34 = vadd.f32 %v2281_v48, %v2280_v61  ;;  %v2335_v2 = vadd.f32 %v2334_v57, %v2333_v3  ;;  %v3017_v32 = vpop.f32.mrf.mxu1  ;;  %v2053_v8 = vadd.f32 %v2026_v24, %v3924_v27  ;;  %v2289_v14 = vsel %vm512_vm1, %v2183_v55, 0.0 }
 0x17b   : > { %2264 = vst.msk [vmem:[%s3880_s21 + $0x28] sm:$0xf] %vm2253_vm4, %v2740_v11  ;;  %v2184_v42 = vadd.f32 %v3031_v33, %v2052_v1  ;;  %v2738_v44 = vpack.c.bf16 %v2181_v25, %v2181_v25  ;;  %v2317_v62 = vmul.f32 %v2181_v25, %v2181_v25  ;;  %v2285_v20 = vsel %vm512_vm1, %v2181_v25, 0.0 }
 0x17c   : > { %v2145_v5 = vpop.f32.mrf.mxu0  ;;  %v2337_v58 = vadd.f32 %v2336_v37, %v2335_v2  ;;  %v2284_v31 = vadd.f32 %v2283_v45, %v2282_v34  ;;  %v2056_v9 = vadd.f32 %v3017_v32, %v1935_v47  ;;  %v2029_v60 = vpop.f32.mrf.mxu1  ;;  %v2344_v41 = vsel %vm512_vm1, %v2319_v26, 0.0 }
 0x17d   : > { %v2741_v56 = vpack.c.bf16 %v2184_v42, %v2184_v42  ;;  %2262 = vst.msk [vmem:[%s3880_s21 + $0x20] sm:$0xf] %vm2253_vm4, %v2738_v44  ;;  %v2182_v50 = vadd.f32 %v2145_v5, %v2050_v22  ;;  %v2340_v23 = vsel %vm512_vm1, %v2317_v62, 0.0  ;;  %v2320_v51 = vmul.f32 %v2184_v42, %v2184_v42 }
 0x17e   : > { %v3034_v13 = vpop.f32.mrf.mxu0  ;;  %v2286_v10 = vadd.f32 %v2285_v20, %v2284_v31  ;;  %v2339_v63 = vadd.f32 %v2338_v28, %v2337_v58  ;;  %v2291_v47 = vsel %vm512_vm1, %v2184_v42, 0.0  ;;  %v2054_v0 = vadd.f32 %v2029_v60, %v1933_v12 }
 0x17f   : > { %2265 = vst.msk [vmem:[%s3880_s21 + $0x2c] sm:$0xf] %vm2253_vm4, %v2741_v56  ;;  %v2187_v30 = vadd.f32 %v3034_v13, %v2055_v21  ;;  %v2739_v35 = vpack.c.bf16 %v2182_v50, %v2182_v50  ;;  %v2287_v39 = vsel %vm512_vm1, %v2182_v50, 0.0  ;;  %v2318_v46 = vmul.f32 %v2182_v50, %v2182_v50 }
 0x180   : > { %v2158_v15 = vpop.f32.mrf.mxu0  ;;  %v2341_v53 = vadd.f32 %v2340_v23, %v2339_v63  ;;  %v2288_v18 = vadd.f32 %v2287_v39, %v2286_v10  ;;  %v2346_v54 = vsel %vm512_vm1, %v2320_v51, 0.0 }
 0x181   : > { %v2744_v43 = vpack.c.bf16 %v2187_v30, %v2187_v30  ;;  %2263 = vst.msk [vmem:[%s3880_s21 + $0x24] sm:$0xf] %vm2253_vm4, %v2739_v35  ;;  %v2342_v27 = vsel %vm512_vm1, %v2318_v46, 0.0  ;;  %v2185_v7 = vadd.f32 %v2158_v15, %v2053_v8  ;;  %v2323_v16 = vmul.f32 %v2187_v30, %v2187_v30 }
 0x182   : > { %v3035_v59 = vpop.f32.mrf.mxu0  ;;  %v2290_v38 = vadd.f32 %v2289_v14, %v2288_v18  ;;  %v2343_v36 = vadd.f32 %v2342_v27, %v2341_v53  ;;  %v2297_v25 = vsel %vm512_vm1, %v2187_v30, 0.0 }
 0x183   : > { %2268 = vst.msk [vmem:[%s3880_s21 + $0x38] sm:$0xf] %vm2253_vm4, %v2744_v43  ;;  %v2188_v49 = vadd.f32 %v3035_v59, %v2056_v9  ;;  %v2742_v19 = vpack.c.bf16 %v2185_v7, %v2185_v7  ;;  %v2321_v17 = vmul.f32 %v2185_v7, %v2185_v7  ;;  %v2293_v52 = vsel %vm512_vm1, %v2185_v7, 0.0 }
 0x184   : > { %v2161_v29 = vpop.f32.mrf.mxu0  ;;  %v2345_v40 = vadd.f32 %v2344_v41, %v2343_v36  ;;  %v2292_v55 = vadd.f32 %v2291_v47, %v2290_v38  ;;  %v2352_v42 = vsel %vm512_vm1, %v2323_v16, 0.0 }
 0x185   : > { %v2745_v3 = vpack.c.bf16 %v2188_v49, %v2188_v49  ;;  %2266 = vst.msk [vmem:[%s3880_s21 + $0x30] sm:$0xf] %vm2253_vm4, %v2742_v19  ;;  %v2186_v4 = vadd.f32 %v2161_v29, %v2054_v0  ;;  %v2348_v12 = vsel %vm512_vm1, %v2321_v17, 0.0  ;;  %v2324_v33 = vmul.f32 %v2188_v49, %v2188_v49 }
 0x186   : > { %v2294_v61 = vadd.f32 %v2293_v52, %v2292_v55  ;;  %v2347_v1 = vadd.f32 %v2346_v54, %v2345_v40  ;;  %v2299_v45 = vsel %vm512_vm1, %v2188_v49, 0.0 }
 0x187   : > { %2269 = vst.msk [vmem:[%s3880_s21 + $0x3c] sm:$0xf] %vm2253_vm4, %v2745_v3  ;;  %v2743_v11 = vpack.c.bf16 %v2186_v4, %v2186_v4  ;;  %v2295_v24 = vsel %vm512_vm1, %v2186_v4, 0.0  ;;  %v2322_v48 = vmul.f32 %v2186_v4, %v2186_v4  ;;  %v2354_v62 = vsel %vm512_vm1, %v2324_v33, 0.0 }
 0x188   : > { %v2349_v6 = vadd.f32 %v2348_v12, %v2347_v1  ;;  %v2296_v57 = vadd.f32 %v2295_v24, %v2294_v61 }
 0x189   : > { %2267 = vst.msk [vmem:[%s3880_s21 + $0x34] sm:$0xf] %vm2253_vm4, %v2743_v11  ;;  %v2350_v37 = vsel %vm512_vm1, %v2322_v48, 0.0 }
 0x18a   : > { %v2298_v34 = vadd.f32 %v2297_v25, %v2296_v57  ;;  %v2351_v2 = vadd.f32 %v2350_v37, %v2349_v6 }
 0x18c   : > { %v2300_v22 = vadd.f32 %v2299_v45, %v2298_v34  ;;  %v2353_v44 = vadd.f32 %v2352_v42, %v2351_v2 }
 0x18e   : > { %v2301_v5 = vrot.slane %v2300_v22, 4  ;;  %v2355_v58 = vadd.f32 %v2354_v62, %v2353_v44 }
 0x190   : > { %v2302_v31 = vadd.f32 %v2301_v5, %v2300_v22  ;;  %v2356_v21 = vrot.slane %v2355_v58, 4 }
 0x192   : > { %v2303_v56 = vrot.slane %v2302_v31, 2  ;;  %v2357_v32 = vadd.f32 %v2356_v21, %v2355_v58 }
 0x194   : > { %v2304_v28 = vadd.f32 %v2303_v56, %v2302_v31  ;;  %v2358_v26 = vrot.slane %v2357_v32, 2 }
 0x196   : > { %v2305_v20 = vrot.slane %v2304_v28, 1  ;;  %v2359_v50 = vadd.f32 %v2358_v26, %v2357_v32 }
 0x198   : > { %v2306_v13 = vadd.f32 %v2305_v20, %v2304_v28  ;;  %v2360_v10 = vrot.slane %v2359_v50, 1 }
 0x19a   : > { %2308 = vst.msk [vmem:[%s503_s16] sm:$0x1] %vm2307_vm5, %v2306_v13  ;;  %v2361_v63 = vadd.f32 %v2360_v10, %v2359_v50 }
 0x19c   : > { %2362 = vst.msk [vmem:[%s510_s17] sm:$0x1] %vm2307_vm5, %v2361_v63 }
 0x19d PF: > { %s19_s9 = sadd.s32 1, %s3127_s9   ;;  %s4065_s27 = smov %s3119_s29 }
 0x19e   : > { %p16_p12 = scmp.ge.s32.totalorder %s19_s9, 6   ;;  %s4066_s28 = smov %s3123_s30 }
 0x19f   : > { %s4067_s29 = smov %s4070_s10  ;;  %s4068_s30 = smov %s4074_s11 }
 0x1a0   :  { %18 = sbr.rel (!%p16_p12) target bundleno = 3 (0x3), region = 114 }

// kernel: bottleneck_forward.7
= control target key start
LH: loop header
LB: loop body
LE: loop exit
PB: predicated region body
PF: predicated region fallthrough
CT: control target
= control target key end

     0   :  { %s808_s15 = smov 0   ;;  %s1008_s0 = inlined_call_operand.vmem [shape: bf16[512,16], index: 0, kind: input, shape index: {}]   ;;  %s1009_s1 = inlined_call_operand.vmem [shape: bf16[512,16], index: 1, kind: input, shape index: {}]   ;;  %s1010_s2 = inlined_call_operand.vmem [shape: f32[1,16], index: 2, kind: input, shape index: {}]   ;;  %s1011_s3 = inlined_call_operand.vmem [shape: f32[1,16], index: 3, kind: input, shape index: {}]   ;;  %s1012_s4 = inlined_call_operand.vmem [shape: f32[512,16], index: 4, kind: output, shape index: {}]  }
   0x1 LB: > { %s594_s16 = sadd.s32 4294967295, %s781_s15   ;;  %p598_p0 = scmp.ge.s32.totalorder %s781_s15, 1  ;;  %s781_s15 = sphi %s808_s15, %s14_s15  }
   0x2   : > { %p174_p1 = scmp.lt.s32.totalorder %s781_s15, 3 }
   0x4   : > { %p175_p2 = pnand %p598_p0, %p174_p1 }
   0x5   : > { %s599_s17 = sshll.u32 (!%p175_p2), %s594_s16, 5 }
   0x6   : > { %178 = sbr.rel (%p175_p2) target bundleno = 69 (0x45), region = 36  ;;  %p206_p3 = scmp.lt.s32.totalorder (!%p175_p2), %s599_s17, 63 }
   0xb   : > { %s1014_s17 = smov (!%p206_p3, %s599_s17), 63  ;;  %v832_v0 = vld [vmem:[%s1010_s2] ss:$0 sm:$0xff]  ;;  %vm493_vm0 = vcmask 130048  }
   0xc   : > { %s600_s18 = sshll.u32 %s1014_s17, 2  ;;  %v843_v11 = vld [vmem:[%s1011_s3] ss:$0 sm:$0xff]  ;;  %s604_s29 = sshll.u32 %s1014_s17, 3 }
   0xd   : > { %s822_s21 = scalar_lea.vmem %s1008_s0, %s600_s18  ;;  %s827_s24 = scalar_lea.vmem %s1009_s1, %s600_s18 }
   0xe   : > { %v610_v1 = vld [vmem:[%s822_s21] sm:$0xff]   ;;  %v737_v3 = vld [vmem:[%s822_s21 + $0x8] sm:$0xff]   ;;  %v738_v9 = vld [vmem:[%s822_s21 + $0x10] sm:$0xff]   ;;  %s863_s6 = scalar_lea.vmem %s1012_s4, %s604_s29 }
   0xf   : > { %v674_v2 = vld [vmem:[%s827_s24] sm:$0xff]   ;;  %v611_v4 = vunpack.c.l.bf16 %v610_v1  ;;  %v612_v6 = vunpack.c.h.bf16 %v610_v1  ;;  %v752_v8 = vld [vmem:[%s827_s24 + $0x8] sm:$0xff]   ;;  %v753_v10 = vld [vmem:[%s827_s24 + $0x10] sm:$0xff]   ;;  %v615_v12 = vunpack.c.l.bf16 %v737_v3  ;;  %v616_v14 = vunpack.c.h.bf16 %v737_v3 }
  0x10   : > { %v675_v5 = vunpack.c.l.bf16 %v674_v2  ;;  %v676_v7 = vunpack.c.h.bf16 %v674_v2  ;;  %v679_v13 = vunpack.c.l.bf16 %v752_v8  ;;  %v680_v15 = vunpack.c.h.bf16 %v752_v8  ;;  %v739_v16 = vld [vmem:[%s822_s21 + $0x18] sm:$0xff]   ;;  %v740_v42 = vld [vmem:[%s822_s21 + $0x20] sm:$0xff]   ;;  %v741_v52 = vld [vmem:[%s822_s21 + $0x28] sm:$0xff]  }
  0x11   : > { %v294_v17 = vmul.f32 %v611_v4, %v832_v0  ;;  %v295_v18 = vmul.f32 %v612_v6, %v832_v0  ;;  %v619_v19 = vunpack.c.l.bf16 %v738_v9  ;;  %v683_v20 = vunpack.c.l.bf16 %v753_v10  ;;  %v754_v21 = vld [vmem:[%s827_s24 + $0x18] sm:$0xff]   ;;  %v755_v47 = vld [vmem:[%s827_s24 + $0x20] sm:$0xff]   ;;  %v756_v57 = vld [vmem:[%s827_s24 + $0x28] sm:$0xff]  }
  0x12   : > { %v296_v22 = vmul.f32 %v615_v12, %v832_v0  ;;  %v297_v23 = vmul.f32 %v616_v14, %v832_v0  ;;  %v620_v24 = vunpack.c.h.bf16 %v738_v9  ;;  %v684_v25 = vunpack.c.h.bf16 %v753_v10  ;;  %v742_v62 = vld [vmem:[%s822_s21 + $0x30] sm:$0xff]   ;;  %v743_v14 = vld [vmem:[%s822_s21 + $0x38] sm:$0xff]  }
  0x13   : > { %v333_v26 = vadd.f32 %v843_v11, %v294_v17  ;;  %v334_v27 = vadd.f32 %v843_v11, %v295_v18  ;;  %v298_v28 = vmul.f32 %v619_v19, %v832_v0  ;;  %v623_v29 = vunpack.c.l.bf16 %v739_v16  ;;  %v757_v4 = vld [vmem:[%s827_s24 + $0x30] sm:$0xff]  }
  0x14   : > { %v335_v30 = vadd.f32 %v843_v11, %v296_v22  ;;  %v336_v31 = vadd.f32 %v843_v11, %v297_v23  ;;  %v299_v32 = vmul.f32 %v620_v24, %v832_v0  ;;  %v687_v33 = vunpack.c.l.bf16 %v754_v21  ;;  %v758_v23 = vld [vmem:[%s827_s24 + $0x38] sm:$0xff]  }
  0x15   : > { %v429_v34 = vadd.f32 %v675_v5, %v333_v26  ;;  %v430_v35 = vadd.f32 %v676_v7, %v334_v27  ;;  %v337_v36 = vadd.f32 %v843_v11, %v298_v28  ;;  %v300_v37 = vmul.f32 %v623_v29, %v832_v0 }
  0x16   : > { %v431_v38 = vadd.f32 %v679_v13, %v335_v30  ;;  %v432_v39 = vadd.f32 %v680_v15, %v336_v31  ;;  %v338_v40 = vadd.f32 %v843_v11, %v299_v32  ;;  %v624_v41 = vunpack.c.h.bf16 %v739_v16  ;;  %v744_v32 = vld [vmem:[%s822_s21 + $0x40] sm:$0xff]  }
  0x17   : > { %v461_v43 = vmax.f32 %v429_v34, 0.0  ;;  %v462_v44 = vmax.f32 %v430_v35, 0.0  ;;  %v433_v45 = vadd.f32 %v683_v20, %v337_v36  ;;  %v339_v46 = vadd.f32 %v843_v11, %v300_v37  ;;  %v759_v37 = vld [vmem:[%s827_s24 + $0x40] sm:$0xff]  }
  0x18   : > { %v463_v48 = vmax.f32 %v431_v38, 0.0  ;;  %v464_v49 = vmax.f32 %v432_v39, 0.0  ;;  %v434_v50 = vadd.f32 %v684_v25, %v338_v40  ;;  %v301_v51 = vmul.f32 %v624_v41, %v832_v0 }
  0x19   : > { %494 = vst.msk [vmem:[%s863_s6] sm:$0xff] %vm493_vm0, %v461_v43  ;;  %495 = vst.msk [vmem:[%s863_s6 + $0x8] sm:$0xff] %vm493_vm0, %v462_v44  ;;  %v465_v53 = vmax.f32 %v433_v45, 0.0  ;;  %v435_v54 = vadd.f32 %v687_v33, %v339_v46  ;;  %v688_v55 = vunpack.c.h.bf16 %v754_v21  ;;  %v627_v56 = vunpack.c.l.bf16 %v740_v42  ;;  %v745_v46 = vld [vmem:[%s822_s21 + $0x48] sm:$0xff]  }
  0x1a   : > { %496 = vst.msk [vmem:[%s863_s6 + $0x10] sm:$0xff] %vm493_vm0, %v463_v48  ;;  %497 = vst.msk [vmem:[%s863_s6 + $0x18] sm:$0xff] %vm493_vm0, %v464_v49  ;;  %v466_v58 = vmax.f32 %v434_v50, 0.0  ;;  %v340_v59 = vadd.f32 %v843_v11, %v301_v51  ;;  %v691_v60 = vunpack.c.l.bf16 %v755_v47  ;;  %v628_v61 = vunpack.c.h.bf16 %v740_v42 }
  0x1b   : > { %498 = vst.msk [vmem:[%s863_s6 + $0x20] sm:$0xff] %vm493_vm0, %v465_v53  ;;  %v467_v63 = vmax.f32 %v435_v54, 0.0  ;;  %v302_v1 = vmul.f32 %v627_v56, %v832_v0  ;;  %v692_v2 = vunpack.c.h.bf16 %v755_v47  ;;  %v631_v3 = vunpack.c.l.bf16 %v741_v52  ;;  %v760_v47 = vld [vmem:[%s827_s24 + $0x48] sm:$0xff]   ;;  %v746_v56 = vld [vmem:[%s822_s21 + $0x50] sm:$0xff]  }
  0x1c   : > { %499 = vst.msk [vmem:[%s863_s6 + $0x28] sm:$0xff] %vm493_vm0, %v466_v58  ;;  %v436_v5 = vadd.f32 %v688_v55, %v340_v59  ;;  %v303_v6 = vmul.f32 %v628_v61, %v832_v0  ;;  %v695_v7 = vunpack.c.l.bf16 %v756_v57  ;;  %v632_v8 = vunpack.c.h.bf16 %v741_v52  ;;  %v761_v61 = vld [vmem:[%s827_s24 + $0x50] sm:$0xff]  }
  0x1d   : > { %500 = vst.msk [vmem:[%s863_s6 + $0x30] sm:$0xff] %vm493_vm0, %v467_v63  ;;  %v341_v9 = vadd.f32 %v843_v11, %v302_v1  ;;  %v304_v10 = vmul.f32 %v631_v3, %v832_v0  ;;  %v696_v12 = vunpack.c.h.bf16 %v756_v57  ;;  %v635_v13 = vunpack.c.l.bf16 %v742_v62 }
  0x1e   : > { %v468_v15 = vmax.f32 %v436_v5, 0.0  ;;  %v342_v16 = vadd.f32 %v843_v11, %v303_v6  ;;  %v305_v17 = vmul.f32 %v632_v8, %v832_v0  ;;  %v699_v18 = vunpack.c.l.bf16 %v757_v4 }
  0x1f   : > { %v437_v19 = vadd.f32 %v691_v60, %v341_v9  ;;  %v343_v20 = vadd.f32 %v843_v11, %v304_v10  ;;  %v306_v21 = vmul.f32 %v635_v13, %v832_v0  ;;  %v636_v22 = vunpack.c.h.bf16 %v742_v62 }
  0x20   : > { %501 = vst.msk [vmem:[%s863_s6 + $0x38] sm:$0xff] %vm493_vm0, %v468_v15  ;;  %v438_v24 = vadd.f32 %v692_v2, %v342_v16  ;;  %v344_v25 = vadd.f32 %v843_v11, %v305_v17  ;;  %v700_v26 = vunpack.c.h.bf16 %v757_v4  ;;  %v639_v27 = vunpack.c.l.bf16 %v743_v14  ;;  %v762_v17 = vld [vmem:[%s827_s24 + $0x58] sm:$0xff]  }
  0x21   : > { %v469_v28 = vmax.f32 %v437_v19, 0.0  ;;  %v439_v29 = vadd.f32 %v695_v7, %v343_v20  ;;  %v345_v30 = vadd.f32 %v843_v11, %v306_v21  ;;  %v307_v31 = vmul.f32 %v636_v22, %v832_v0 }
  0x22   : > { %v470_v33 = vmax.f32 %v438_v24, 0.0  ;;  %v440_v34 = vadd.f32 %v696_v12, %v344_v25  ;;  %v308_v35 = vmul.f32 %v639_v27, %v832_v0  ;;  %v703_v36 = vunpack.c.l.bf16 %v758_v23  ;;  %v747_v12 = vld [vmem:[%s822_s21 + $0x58] sm:$0xff]  }
  0x23   : > { %502 = vst.msk [vmem:[%s863_s6 + $0x40] sm:$0xff] %vm493_vm0, %v469_v28  ;;  %v471_v38 = vmax.f32 %v439_v29, 0.0  ;;  %v441_v39 = vadd.f32 %v699_v18, %v345_v30  ;;  %v346_v40 = vadd.f32 %v843_v11, %v307_v31  ;;  %v640_v41 = vunpack.c.h.bf16 %v743_v14  ;;  %v763_v31 = vld [vmem:[%s827_s24 + $0x60] sm:$0xff]  }
  0x24   : > { %503 = vst.msk [vmem:[%s863_s6 + $0x48] sm:$0xff] %vm493_vm0, %v470_v33  ;;  %v472_v42 = vmax.f32 %v440_v34, 0.0  ;;  %v347_v43 = vadd.f32 %v843_v11, %v308_v35  ;;  %v704_v44 = vunpack.c.h.bf16 %v758_v23  ;;  %v643_v45 = vunpack.c.l.bf16 %v744_v32 }
  0x25   : > { %504 = vst.msk [vmem:[%s863_s6 + $0x50] sm:$0xff] %vm493_vm0, %v471_v38  ;;  %v473_v48 = vmax.f32 %v441_v39, 0.0  ;;  %v442_v49 = vadd.f32 %v700_v26, %v346_v40  ;;  %v309_v50 = vmul.f32 %v640_v41, %v832_v0  ;;  %v707_v51 = vunpack.c.l.bf16 %v759_v37  ;;  %v748_v26 = vld [vmem:[%s822_s21 + $0x60] sm:$0xff]   ;;  %v749_v40 = vld [vmem:[%s822_s21 + $0x68] sm:$0xff]  }
  0x26   : > { %505 = vst.msk [vmem:[%s863_s6 + $0x58] sm:$0xff] %vm493_vm0, %v472_v42  ;;  %v443_v52 = vadd.f32 %v703_v36, %v347_v43  ;;  %v310_v53 = vmul.f32 %v643_v45, %v832_v0  ;;  %v644_v54 = vunpack.c.h.bf16 %v744_v32  ;;  %v708_v55 = vunpack.c.h.bf16 %v759_v37  ;;  %v764_v41 = vld [vmem:[%s827_s24 + $0x68] sm:$0xff]  }
  0x27   : > { %506 = vst.msk [vmem:[%s863_s6 + $0x60] sm:$0xff] %vm493_vm0, %v473_v48  ;;  %v474_v57 = vmax.f32 %v442_v49, 0.0  ;;  %v348_v58 = vadd.f32 %v843_v11, %v309_v50  ;;  %v647_v59 = vunpack.c.l.bf16 %v745_v46  ;;  %v711_v60 = vunpack.c.l.bf16 %v760_v47  ;;  %v750_v50 = vld [vmem:[%s822_s21 + $0x70] sm:$0xff]  }
  0x28   : > { %v475_v62 = vmax.f32 %v443_v52, 0.0  ;;  %v349_v63 = vadd.f32 %v843_v11, %v310_v53  ;;  %v311_v1 = vmul.f32 %v644_v54, %v832_v0  ;;  %v648_v2 = vunpack.c.h.bf16 %v745_v46 }
  0x29   : > { %507 = vst.msk [vmem:[%s863_s6 + $0x68] sm:$0xff] %vm493_vm0, %v474_v57  ;;  %v444_v3 = vadd.f32 %v704_v44, %v348_v58  ;;  %v312_v4 = vmul.f32 %v647_v59, %v832_v0  ;;  %v712_v5 = vunpack.c.h.bf16 %v760_v47  ;;  %v651_v6 = vunpack.c.l.bf16 %v746_v56  ;;  %v765_v59 = vld [vmem:[%s827_s24 + $0x70] sm:$0xff]  }
  0x2a   : > { %508 = vst.msk [vmem:[%s863_s6 + $0x70] sm:$0xff] %vm493_vm0, %v475_v62  ;;  %v445_v7 = vadd.f32 %v707_v51, %v349_v63  ;;  %v350_v8 = vadd.f32 %v843_v11, %v311_v1  ;;  %v313_v9 = vmul.f32 %v648_v2, %v832_v0  ;;  %v715_v10 = vunpack.c.l.bf16 %v761_v61 }
  0x2b   : > { %v476_v13 = vmax.f32 %v444_v3, 0.0  ;;  %v351_v14 = vadd.f32 %v843_v11, %v312_v4  ;;  %v314_v15 = vmul.f32 %v651_v6, %v832_v0  ;;  %v652_v16 = vunpack.c.h.bf16 %v746_v56 }
  0x2c   : > { %v477_v18 = vmax.f32 %v445_v7, 0.0  ;;  %v446_v19 = vadd.f32 %v708_v55, %v350_v8  ;;  %v352_v20 = vadd.f32 %v843_v11, %v313_v9  ;;  %v716_v21 = vunpack.c.h.bf16 %v761_v61 }
  0x2d   : > { %509 = vst.msk [vmem:[%s863_s6 + $0x78] sm:$0xff] %vm493_vm0, %v476_v13  ;;  %v447_v22 = vadd.f32 %v711_v60, %v351_v14  ;;  %v353_v23 = vadd.f32 %v843_v11, %v314_v15  ;;  %v315_v24 = vmul.f32 %v652_v16, %v832_v0  ;;  %v655_v25 = vunpack.c.l.bf16 %v747_v12 }
  0x2e   : > { %510 = vst.msk [vmem:[%s863_s6 + $0x80] sm:$0xff] %vm493_vm0, %v477_v18  ;;  %v478_v27 = vmax.f32 %v446_v19, 0.0  ;;  %v448_v28 = vadd.f32 %v712_v5, %v352_v20  ;;  %v719_v29 = vunpack.c.l.bf16 %v762_v17  ;;  %v656_v30 = vunpack.c.h.bf16 %v747_v12  ;;  %v751_v5 = vld [vmem:[%s822_s21 + $0x78] sm:$0xff]  }
  0x2f   : > { %v479_v32 = vmax.f32 %v447_v22, 0.0  ;;  %v449_v33 = vadd.f32 %v715_v10, %v353_v23  ;;  %v354_v34 = vadd.f32 %v843_v11, %v315_v24  ;;  %v316_v35 = vmul.f32 %v655_v25, %v832_v0  ;;  %v766_v10 = vld [vmem:[%s827_s24 + $0x78] sm:$0xff]  }
  0x30   : > { %511 = vst.msk [vmem:[%s863_s6 + $0x88] sm:$0xff] %vm493_vm0, %v478_v27  ;;  %v480_v36 = vmax.f32 %v448_v28, 0.0  ;;  %v317_v37 = vmul.f32 %v656_v30, %v832_v0  ;;  %v720_v38 = vunpack.c.h.bf16 %v762_v17  ;;  %v659_v39 = vunpack.c.l.bf16 %v748_v26 }
  0x31   : > { %512 = vst.msk [vmem:[%s863_s6 + $0x90] sm:$0xff] %vm493_vm0, %v479_v32  ;;  %v481_v42 = vmax.f32 %v449_v33, 0.0  ;;  %v450_v43 = vadd.f32 %v716_v21, %v354_v34  ;;  %v355_v44 = vadd.f32 %v843_v11, %v316_v35  ;;  %v723_v45 = vunpack.c.l.bf16 %v763_v31 }
  0x32   : > { %513 = vst.msk [vmem:[%s863_s6 + $0x98] sm:$0xff] %vm493_vm0, %v480_v36  ;;  %v356_v46 = vadd.f32 %v843_v11, %v317_v37  ;;  %v318_v47 = vmul.f32 %v659_v39, %v832_v0  ;;  %v660_v48 = vunpack.c.h.bf16 %v748_v26  ;;  %v724_v49 = vunpack.c.h.bf16 %v763_v31 }
  0x33   : > { %514 = vst.msk [vmem:[%s863_s6 + $0xa0] sm:$0xff] %vm493_vm0, %v481_v42  ;;  %v482_v51 = vmax.f32 %v450_v43, 0.0  ;;  %v451_v52 = vadd.f32 %v719_v29, %v355_v44  ;;  %v663_v53 = vunpack.c.l.bf16 %v749_v40  ;;  %v727_v54 = vunpack.c.l.bf16 %v764_v41 }
  0x34   : > { %v452_v55 = vadd.f32 %v720_v38, %v356_v46  ;;  %v357_v56 = vadd.f32 %v843_v11, %v318_v47  ;;  %v319_v57 = vmul.f32 %v660_v48, %v832_v0  ;;  %v664_v58 = vunpack.c.h.bf16 %v749_v40 }
  0x35   : > { %515 = vst.msk [vmem:[%s863_s6 + $0xa8] sm:$0xff] %vm493_vm0, %v482_v51  ;;  %v483_v60 = vmax.f32 %v451_v52, 0.0  ;;  %v320_v61 = vmul.f32 %v663_v53, %v832_v0  ;;  %v728_v62 = vunpack.c.h.bf16 %v764_v41  ;;  %v667_v63 = vunpack.c.l.bf16 %v750_v50 }
  0x36   : > { %v484_v1 = vmax.f32 %v452_v55, 0.0  ;;  %v453_v2 = vadd.f32 %v723_v45, %v357_v56  ;;  %v358_v3 = vadd.f32 %v843_v11, %v319_v57  ;;  %v321_v4 = vmul.f32 %v664_v58, %v832_v0 }
  0x37   : > { %516 = vst.msk [vmem:[%s863_s6 + $0xb0] sm:$0xff] %vm493_vm0, %v483_v60  ;;  %v359_v6 = vadd.f32 %v843_v11, %v320_v61  ;;  %v322_v7 = vmul.f32 %v667_v63, %v832_v0  ;;  %v731_v8 = vunpack.c.l.bf16 %v765_v59  ;;  %v668_v9 = vunpack.c.h.bf16 %v750_v50 }
  0x38   : > { %517 = vst.msk [vmem:[%s863_s6 + $0xb8] sm:$0xff] %vm493_vm0, %v484_v1  ;;  %v485_v12 = vmax.f32 %v453_v2, 0.0  ;;  %v454_v13 = vadd.f32 %v724_v49, %v358_v3  ;;  %v360_v14 = vadd.f32 %v843_v11, %v321_v4  ;;  %v732_v15 = vunpack.c.h.bf16 %v765_v59 }
  0x39   : > { %v455_v16 = vadd.f32 %v727_v54, %v359_v6  ;;  %v361_v17 = vadd.f32 %v843_v11, %v322_v7  ;;  %v323_v18 = vmul.f32 %v668_v9, %v832_v0  ;;  %v671_v19 = vunpack.c.l.bf16 %v751_v5 }
  0x3a   : > { %518 = vst.msk [vmem:[%s863_s6 + $0xc0] sm:$0xff] %vm493_vm0, %v485_v12  ;;  %v486_v20 = vmax.f32 %v454_v13, 0.0  ;;  %v456_v21 = vadd.f32 %v728_v62, %v360_v14  ;;  %v735_v22 = vunpack.c.l.bf16 %v766_v10  ;;  %v672_v23 = vunpack.c.h.bf16 %v751_v5 }
  0x3b   : > { %v487_v24 = vmax.f32 %v455_v16, 0.0  ;;  %v457_v25 = vadd.f32 %v731_v8, %v361_v17  ;;  %v362_v26 = vadd.f32 %v843_v11, %v323_v18  ;;  %v324_v27 = vmul.f32 %v671_v19, %v832_v0 }
  0x3c   : > { %519 = vst.msk [vmem:[%s863_s6 + $0xc8] sm:$0xff] %vm493_vm0, %v486_v20  ;;  %v488_v28 = vmax.f32 %v456_v21, 0.0  ;;  %v325_v29 = vmul.f32 %v672_v23, %v832_v0  ;;  %v736_v30 = vunpack.c.h.bf16 %v766_v10 }
  0x3d   : > { %520 = vst.msk [vmem:[%s863_s6 + $0xd0] sm:$0xff] %vm493_vm0, %v487_v24  ;;  %v489_v31 = vmax.f32 %v457_v25, 0.0  ;;  %v458_v32 = vadd.f32 %v732_v15, %v362_v26  ;;  %v363_v33 = vadd.f32 %v843_v11, %v324_v27 }
  0x3e   : > { %521 = vst.msk [vmem:[%s863_s6 + $0xd8] sm:$0xff] %vm493_vm0, %v488_v28  ;;  %v364_v34 = vadd.f32 %v843_v11, %v325_v29 }
  0x3f   : > { %522 = vst.msk [vmem:[%s863_s6 + $0xe0] sm:$0xff] %vm493_vm0, %v489_v31  ;;  %v490_v35 = vmax.f32 %v458_v32, 0.0  ;;  %v459_v36 = vadd.f32 %v735_v22, %v363_v33 }
  0x40   : > { %v460_v37 = vadd.f32 %v736_v30, %v364_v34 }
  0x41   : > { %523 = vst.msk [vmem:[%s863_s6 + $0xe8] sm:$0xff] %vm493_vm0, %v490_v35  ;;  %v491_v0 = vmax.f32 %v459_v36, 0.0 }
  0x42   : > { %v492_v38 = vmax.f32 %v460_v37, 0.0 }
  0x43   : > { %524 = vst.msk [vmem:[%s863_s6 + $0xf0] sm:$0xff] %vm493_vm0, %v491_v0 }
  0x44   : > { %525 = vst.msk [vmem:[%s863_s6 + $0xf8] sm:$0xff] %vm493_vm0, %v492_v38 }
  0x45 PF: > { %s14_s15 = sadd.s32 1, %s781_s15  }
  0x46   : > { %p11_p4 = scmp.ge.s32.totalorder %s14_s15, 4  }
  0x48   :  { %13 = sbr.rel (!%p11_p4) target bundleno = 1 (0x1), region = 69 }

</bundles_post_ra>
